<compile_context>
chip_gen: v5e
topology: v5e:2x2
jax: 0.10.0
libtpu: 0.0.40
codegen_flags: <defaults>
</compile_context>

<pallas_src>
import jax
import jax.numpy as jnp
from jax import lax
from jax.experimental import pallas as pl
from jax.experimental.pallas import tpu as pltpu

IN_CH = 8
OUT_CH = 8
R = 4
STRIDE = 1
MID = R * IN_CH            # 32
SQ = MID // (4 * R)        # 2
BN_EPS = 1e-3


def _silu(v):
    return v * jax.nn.sigmoid(v)


def _residual_kernel(x_ref, w1_ref, b1_ref, wdw_ref, bdw_ref,
                     wse1_ref, bse1_ref, wse2_ref, bse2_ref,
                     w3_ref, b3_ref, o_ref):
    B, H = x_ref.shape[0], x_ref.shape[1]
    wc_in = x_ref.shape[2]            # W * IN_CH
    wc_mid = w1_ref.shape[1]          # W * MID
    W = wc_mid // MID
    rows = B * H

    # Lane-dense (rows, W*C) working layout.  Merging the image axis into the
    # sublane axis is a free reshape (H is a multiple of the 8-sublane tile).
    x = x_ref[...].reshape(rows, wc_in)

    # ---- 1x1 expand conv (+folded BN) + SiLU: block-diag bf16 MXU matmul ----
    h = _silu(jnp.dot(x.astype(jnp.bfloat16), w1_ref[...],
                      preferred_element_type=jnp.float32) + b1_ref[...])

    # ---- 3x3 depthwise conv, stride 1, pad 1 (+folded BN) + SiLU ------------
    # lane = w*MID + c.  x-taps = cyclic lane rolls by +-MID; the wrapped
    # (image x-border) contributions were zeroed in the weights host-side,
    # so no lane iota / selects are needed here.
    h_xm = pltpu.roll(h, MID, axis=1)             # data from w-1
    h_xp = pltpu.roll(h, wc_mid - MID, axis=1)    # data from w+1 (cyclic == -MID)
    wdw = wdw_ref[...]                            # (9, W*MID), row = 3*ky + kx

    def combo(ky):
        return (h_xm * wdw[3 * ky + 0:3 * ky + 1, :] +
                h    * wdw[3 * ky + 1:3 * ky + 2, :] +
                h_xp * wdw[3 * ky + 2:3 * ky + 3, :])

    # y-taps = sublane rolls; per-image top/bottom edges masked with one
    # (rows, 1) iota column (lane broadcast of a column is free on the VPU).
    row = lax.broadcasted_iota(jnp.int32, (rows, 1), 0)
    top = (row % H) == 0
    bot = (row % H) == H - 1
    acc = combo(1)                                                           # dy = 0
    acc = acc + jnp.where(top, 0.0, pltpu.roll(combo(0), 1, axis=0))         # tap h-1
    acc = acc + jnp.where(bot, 0.0, pltpu.roll(combo(2), rows - 1, axis=0))  # tap h+1
    d = _silu(acc + bdw_ref[...])                 # (rows, W*MID)

    # ---- squeeze-and-excitation (per image; VPU/XLU only, no MXU) -----------
    s = jnp.sum(d.reshape(B, H, wc_mid), axis=1)  # (B, W*MID) per-image H-sum
    f = wc_mid
    while f > MID:                                # lane-fold the W groups
        f //= 2
        s = s + pltpu.roll(s, wc_mid - f, axis=1)
    s = s[:, :MID] * (1.0 / (H * W))              # (B, MID) per-channel means

    w_se1 = wse1_ref[...]                         # (SQ, MID)
    w_se2 = wse2_ref[...]                         # (SQ, W*MID), pre-tiled
    z = bse2_ref[...]                             # (1, W*MID) -> broadcasts to (B, .)
    for j in range(w_se1.shape[0]):               # SQ == 2: static unroll
        tj = _silu(jnp.sum(s * w_se1[j:j + 1, :], axis=1, keepdims=True)
                   + bse1_ref[j:j + 1, :])        # (B, 1)
        z = z + tj * w_se2[j:j + 1, :]            # (B, W*MID)
    # sigmoid with the divide on the EUP approx-reciprocal path (serial path)
    g = pl.reciprocal(1.0 + jnp.exp(-z), approx=True)
    dse = (d.reshape(B, H, wc_mid) * g[:, None, :]).reshape(rows, wc_mid)

    # ---- 1x1 project conv (+folded BN, identity) + residual add -------------
    y = jnp.dot(dse.astype(jnp.bfloat16), w3_ref[...],
                preferred_element_type=jnp.float32) + b3_ref[...]
    o_ref[...] = (x + y).reshape(o_ref.shape).astype(o_ref.dtype)


def _prep_kernel_params(params, W):
    """Convert folded (logical) params to lane-dense kernel layouts."""
    (w1, b1, wdw, bdw, wse1, bse1, wse2, bse2, w3, b3) = params
    eye = jnp.eye(W, dtype=jnp.float32)
    w1_bd = jnp.kron(eye, w1).astype(jnp.bfloat16)          # (W*Cin, W*MID)
    w3_bd = jnp.kron(eye, w3).astype(jnp.bfloat16)          # (W*MID, W*Cout)
    b1_t = jnp.tile(b1, (1, W))                             # (1, W*MID)
    bdw_t = jnp.tile(bdw, (1, W))                           # (1, W*MID)
    b3_t = jnp.tile(b3, (1, W))                             # (1, W*Cout)
    # Depthwise weights, W-tiled, with the image x-border zero padding folded
    # in: kx=0 taps can't read w=-1 and kx=2 taps can't read w=W, so the lanes
    # that would receive wrapped data from the cyclic roll get weight 0.
    wdw_t = jnp.tile(wdw.reshape(9, MID), (1, W))           # (9, W*MID)
    lane = jnp.arange(W * MID)
    kx = jnp.arange(9) % 3
    edge0 = (kx[:, None] == 0) & (lane[None, :] < MID)
    edge2 = (kx[:, None] == 2) & (lane[None, :] >= (W - 1) * MID)
    wdw_t = jnp.where(edge0 | edge2, 0.0, wdw_t)
    wse1_k = jnp.transpose(wse1)                            # (SQ, MID)
    bse1_k = jnp.transpose(bse1)                            # (SQ, 1)
    wse2_k = jnp.tile(wse2, (1, W))                         # (SQ, W*MID)
    bse2_k = jnp.tile(bse2, (1, W))                         # (1, W*MID)
    return (w1_bd, b1_t, wdw_t, bdw_t, wse1_k, bse1_k, wse2_k, bse2_k, w3_bd, b3_t)


def _images_per_block(n):
    """v7x has 2 TensorCores -> keep the grid length >= 2 so both stay busy;
    single-TC chips (v5e/v6e) run the grid serially -> process the whole batch
    in one step to amortize per-step pipeline overhead and fetch params once."""
    try:
        kind = jax.devices()[0].device_kind.lower()
    except Exception:
        kind = ""
    if "v7" in kind:
        ipb = max(1, n // 2)
        return ipb if n % ipb == 0 else 1
    return max(1, n)


def residual_forward(x_nchw, params, images_per_block=None):
    N, C, H, W = x_nchw.shape
    assert C == IN_CH
    assert W > 0 and (W & (W - 1)) == 0          # lane-fold assumes power-of-two W
    # TODO(synk): for W > ~64 split the lane-dense width into W-chunks (extra
    # grid axis); the kron(I_W, w) weights grow O(W^2) and would not fit v7x's
    # 64 MiB VMEM as a single block.

    if images_per_block is None:
        images_per_block = _images_per_block(N)
    assert N % images_per_block == 0
    grid_n = N // images_per_block

    # NCHW (PyTorch module boundary) -> lane-dense (N, H, W*C).  Callers that
    # already hold NHWC / lane-dense activations can skip these layout ops.
    x = jnp.transpose(x_nchw, (0, 2, 3, 1)).astype(jnp.float32)
    x = x.reshape(N, H, W * IN_CH)

    kp = _prep_kernel_params(params, W)

    def const_spec(a):
        nd = a.ndim
        # grid-invariant parameters: single-buffer (no refetch, half the VMEM)
        return pl.BlockSpec(a.shape, lambda n, _nd=nd: (0,) * _nd,
                            pipeline_mode=pl.Buffered(1))

    out = pl.pallas_call(
        _residual_kernel,
        out_shape=jax.ShapeDtypeStruct((N, H, W * OUT_CH), jnp.float32),
        grid_spec=pltpu.PrefetchScalarGridSpec(
            num_scalar_prefetch=0,
            grid=(grid_n,),
            in_specs=[pl.BlockSpec((images_per_block, H, W * IN_CH),
                                   lambda n: (n, 0, 0))]
                     + [const_spec(a) for a in kp],
            out_specs=pl.BlockSpec((images_per_block, H, W * OUT_CH),
                                   lambda n: (n, 0, 0)),
        ),
        compiler_params=pltpu.CompilerParams(
            dimension_semantics=("parallel",),
            vmem_limit_bytes=32 * 1024 * 1024),
    )(x, *kp)

    out = out.reshape(N, H, W, OUT_CH)                            # undo lane packing
    return jnp.transpose(out, (0, 3, 1, 2))                       # NHWC -> NCHW


def make_params(key):
    ks = jax.random.split(key, 19)

    def normal(k, shape, scale=0.1):
        return scale * jax.random.normal(k, shape, jnp.float32)

    # weights in PyTorch layouts, then converted / BN-folded
    w1_t = normal(ks[0], (MID, IN_CH, 1, 1))          # expand 1x1, bias=False
    wdw_t = normal(ks[1], (MID, 1, 3, 3))             # depthwise 3x3, bias=False
    w3_t = normal(ks[2], (OUT_CH, MID, 1, 1))         # project 1x1, bias=False
    wse1_t = normal(ks[3], (SQ, MID, 1, 1))           # SE reduce (bias=True)
    bse1_t = normal(ks[4], (SQ,))
    wse2_t = normal(ks[5], (MID, SQ, 1, 1))           # SE expand (bias=True)
    bse2_t = normal(ks[6], (MID,))

    def bn(kg, kb, km, kv, ch):
        gamma = 0.5 + jax.random.uniform(kg, (ch,), jnp.float32)
        beta = normal(kb, (ch,))
        mean = normal(km, (ch,))
        var = 0.5 + jax.random.uniform(kv, (ch,), jnp.float32)
        return gamma, beta, mean, var

    g1, be1, m1, v1 = bn(ks[7], ks[8], ks[9], ks[10], MID)
    g2, be2, m2, v2 = bn(ks[11], ks[12], ks[13], ks[14], MID)
    g3, be3, m3, v3 = bn(ks[15], ks[16], ks[17], ks[18], OUT_CH)

    # fold BN (running stats, eps = 0.001) into the convolutions
    s1 = g1 / jnp.sqrt(v1 + BN_EPS)
    w1 = jnp.transpose(w1_t[:, :, 0, 0]) * s1[None, :]                     # (Cin, MID)
    b1 = (be1 - m1 * s1)[None, :]                                          # (1, MID)

    s2 = g2 / jnp.sqrt(v2 + BN_EPS)
    wdw = jnp.transpose(wdw_t[:, 0, :, :], (1, 2, 0)) * s2[None, None, :]  # (3, 3, MID)
    bdw = (be2 - m2 * s2)[None, :]                                         # (1, MID)

    s3 = g3 / jnp.sqrt(v3 + BN_EPS)
    w3 = jnp.transpose(w3_t[:, :, 0, 0]) * s3[None, :]                     # (MID, Cout)
    b3 = (be3 - m3 * s3)[None, :]                                          # (1, Cout)

    wse1 = jnp.transpose(wse1_t[:, :, 0, 0])                               # (MID, SQ)
    bse1 = bse1_t[None, :]                                                 # (1, SQ)
    wse2 = jnp.transpose(wse2_t[:, :, 0, 0])                               # (SQ, MID)
    bse2 = bse2_t[None, :]                                                 # (1, MID)
    return (w1, b1, wdw, bdw, wse1, bse1, wse2, bse2, w3, b3)


def residual_reference(x_nchw, params):
    """Pure-JAX f32 (HIGHEST precision) reference of the BN-folded eval-mode math."""
    (w1, b1, wdw, bdw, wse1, bse1, wse2, bse2, w3, b3) = params
    hp = lax.Precision.HIGHEST
    x = jnp.transpose(x_nchw, (0, 2, 3, 1)).astype(jnp.float32)
    N, H, W, _ = x.shape
    h = _silu(jnp.einsum('nhwc,cm->nhwm', x, w1, precision=hp) + b1)
    hpad = jnp.pad(h, ((0, 0), (1, 1), (1, 1), (0, 0)))
    acc = jnp.zeros((N, H, W, MID), jnp.float32)
    for ky in range(3):
        for kx in range(3):
            acc = acc + hpad[:, ky:ky + H, kx:kx + W, :] * wdw[ky, kx]
    d = _silu(acc + bdw)
    s = d.mean(axis=(1, 2))                                       # (N, MID)
    t = _silu(jnp.dot(s, wse1, precision=hp) + bse1)
    g = jax.nn.sigmoid(jnp.dot(t, wse2, precision=hp) + bse2)
    dse = d * g[:, None, None, :]
    y = jnp.einsum('nhwm,mo->nhwo', dse, w3, precision=hp) + b3
    return jnp.transpose(x + y, (0, 3, 1, 2))


if __name__ == "__main__":
    key = jax.random.PRNGKey(0)
    k_x, k_p = jax.random.split(key)
    x = jax.random.normal(k_x, (2, IN_CH, 16, 16), jnp.float32)   # NCHW like PyTorch
    params = make_params(k_p)

    out = jax.block_until_ready(residual_forward(x, params))
    ref = residual_reference(x, params)

    assert out.shape == (2, OUT_CH, 16, 16)
    max_err = float(jnp.max(jnp.abs(out - ref)))
    # kernel matmuls run in bf16 on the MXU (f32 accumulate) and the SE gate
    # uses the EUP approx reciprocal; reference is f32/HIGHEST
    assert jnp.allclose(out, ref, atol=5e-3, rtol=5e-3), max_err
    print("KERNEL_OK")
</pallas_src>

<mosaic_0001>
module attributes {stable_mosaic.version = 11 : i64} {
  func.func @_residual_kernel(%arg0: i32, %arg1: memref<2x16x128xf32, #tpu.memory_space<vmem>>, %arg2: memref<128x512xbf16, #tpu.memory_space<vmem>>, %arg3: memref<1x512xf32, #tpu.memory_space<vmem>>, %arg4: memref<9x512xf32, #tpu.memory_space<vmem>>, %arg5: memref<1x512xf32, #tpu.memory_space<vmem>>, %arg6: memref<2x32xf32, #tpu.memory_space<vmem>>, %arg7: memref<2x1xf32, #tpu.memory_space<vmem>>, %arg8: memref<2x512xf32, #tpu.memory_space<vmem>>, %arg9: memref<1x512xf32, #tpu.memory_space<vmem>>, %arg10: memref<512x128xbf16, #tpu.memory_space<vmem>>, %arg11: memref<1x128xf32, #tpu.memory_space<vmem>>, %arg12: memref<2x16x128xf32, #tpu.memory_space<vmem>>) attributes {dimension_semantics = [#tpu.dimension_semantics<parallel>], iteration_bounds = array<i64: 1>, scalar_prefetch = 0 : i64, scratch_operands = 0 : i64, tpu.core_type = #tpu.core_type<tc>, window_params = [{transform_indices = @transform_0, window_bounds = array<i64: 2, 16, 128>}, {pipeline_mode = #tpu.pipeline_mode<synchronous>, transform_indices = @transform_1, window_bounds = array<i64: 128, 512>}, {pipeline_mode = #tpu.pipeline_mode<synchronous>, transform_indices = @transform_2, window_bounds = array<i64: 1, 512>}, {pipeline_mode = #tpu.pipeline_mode<synchronous>, transform_indices = @transform_3, window_bounds = array<i64: 9, 512>}, {pipeline_mode = #tpu.pipeline_mode<synchronous>, transform_indices = @transform_4, window_bounds = array<i64: 1, 512>}, {pipeline_mode = #tpu.pipeline_mode<synchronous>, transform_indices = @transform_5, window_bounds = array<i64: 2, 32>}, {pipeline_mode = #tpu.pipeline_mode<synchronous>, transform_indices = @transform_6, window_bounds = array<i64: 2, 1>}, {pipeline_mode = #tpu.pipeline_mode<synchronous>, transform_indices = @transform_7, window_bounds = array<i64: 2, 512>}, {pipeline_mode = #tpu.pipeline_mode<synchronous>, transform_indices = @transform_8, window_bounds = array<i64: 1, 512>}, {pipeline_mode = #tpu.pipeline_mode<synchronous>, transform_indices = @transform_9, window_bounds = array<i64: 512, 128>}, {pipeline_mode = #tpu.pipeline_mode<synchronous>, transform_indices = @transform_10, window_bounds = array<i64: 1, 128>}, {transform_indices = @transform_11, window_bounds = array<i64: 2, 16, 128>}]} {
    %c0 = arith.constant 0 : index
    %c0_0 = arith.constant 0 : index
    %c0_1 = arith.constant 0 : index
    %0 = vector.load %arg1[%c0, %c0_0, %c0_1] : memref<2x16x128xf32, #tpu.memory_space<vmem>>, vector<2x16x128xf32>
    %1 = vector.shape_cast %0 : vector<2x16x128xf32> to vector<32x128xf32>
    %2 = arith.truncf %1 : vector<32x128xf32> to vector<32x128xbf16>
    %c0_2 = arith.constant 0 : index
    %c0_3 = arith.constant 0 : index
    %3 = vector.load %arg2[%c0_2, %c0_3] : memref<128x512xbf16, #tpu.memory_space<vmem>>, vector<128x512xbf16>
    %cst = arith.constant dense<0.000000e+00> : vector<32x512xf32>
    %4 = tpu.matmul %2, %3, %cst {dimension_numbers = #tpu.dot_dimension_numbers<[1], [0], [0], [1], [0, 0, 1, 1], [], []>} : vector<32x128xbf16>, vector<128x512xbf16>, vector<32x512xf32> -> vector<32x512xf32>
    %c0_4 = arith.constant 0 : index
    %c0_5 = arith.constant 0 : index
    %5 = vector.load %arg3[%c0_4, %c0_5] : memref<1x512xf32, #tpu.memory_space<vmem>>, vector<1x512xf32>
    %6 = vector.broadcast %5 : vector<1x512xf32> to vector<32x512xf32>
    %7 = arith.addf %4, %6 : vector<32x512xf32>
    %8 = arith.negf %7 : vector<32x512xf32>
    %9 = math.exp %8 : vector<32x512xf32>
    %cst_6 = arith.constant 1.000000e+00 : f32
    %10 = vector.broadcast %cst_6 : f32 to vector<32x512xf32>
    %11 = arith.addf %10, %9 : vector<32x512xf32>
    %12 = arith.divf %10, %11 : vector<32x512xf32>
    %13 = arith.mulf %7, %12 : vector<32x512xf32>
    %c32_i32 = arith.constant 32 : i32
    %14 = tpu.dynamic_rotate %13 by %c32_i32 dim 1 : vector<32x512xf32>, i32 -> vector<32x512xf32>
    %c480_i32 = arith.constant 480 : i32
    %15 = tpu.dynamic_rotate %13 by %c480_i32 dim 1 : vector<32x512xf32>, i32 -> vector<32x512xf32>
    %c0_7 = arith.constant 0 : index
    %c0_8 = arith.constant 0 : index
    %16 = vector.load %arg4[%c0_7, %c0_8] : memref<9x512xf32, #tpu.memory_space<vmem>>, vector<9x512xf32>
    %17 = tpu.iota {dimensions = array<i32: 0>} : vector<32x1xi32>
    %c16_i32 = arith.constant 16 : i32
    %c0_i32 = arith.constant 0 : i32
    %18 = arith.cmpi eq, %c16_i32, %c0_i32 : i32
    %c1_i32 = arith.constant 1 : i32
    %19 = arith.select %18, %c1_i32, %c16_i32 : i32
    %20 = vector.broadcast %19 : i32 to vector<32x1xi32>
    %21 = arith.remsi %17, %20 : vector<32x1xi32>
    %c0_i32_9 = arith.constant 0 : i32
    %22 = vector.broadcast %c0_i32_9 : i32 to vector<32x1xi32>
    %23 = arith.cmpi ne, %21, %22 : vector<32x1xi32>
    %c0_i32_10 = arith.constant 0 : i32
    %24 = vector.broadcast %c0_i32_10 : i32 to vector<32x1xi32>
    %25 = arith.cmpi slt, %21, %24 : vector<32x1xi32>
    %c0_i32_11 = arith.constant 0 : i32
    %26 = arith.cmpi slt, %19, %c0_i32_11 : i32
    %27 = vector.broadcast %26 : i1 to vector<32x1xi1>
    %28 = vector.broadcast %27 : vector<32x1xi1> to vector<32x1xi1>
    %29 = arith.xori %25, %28 : vector<32x1xi1>
    %30 = arith.andi %29, %23 : vector<32x1xi1>
    %31 = vector.broadcast %19 : i32 to vector<32x1xi32>
    %32 = arith.addi %21, %31 : vector<32x1xi32>
    %33 = arith.select %30, %32, %21 : vector<32x1xi1>, vector<32x1xi32>
    %c0_i32_12 = arith.constant 0 : i32
    %34 = vector.broadcast %c0_i32_12 : i32 to vector<32x1xi32>
    %35 = arith.cmpi eq, %33, %34 : vector<32x1xi32>
    %c16_i32_13 = arith.constant 16 : i32
    %c0_i32_14 = arith.constant 0 : i32
    %36 = arith.cmpi eq, %c16_i32_13, %c0_i32_14 : i32
    %c1_i32_15 = arith.constant 1 : i32
    %37 = arith.select %36, %c1_i32_15, %c16_i32_13 : i32
    %38 = vector.broadcast %37 : i32 to vector<32x1xi32>
    %39 = arith.remsi %17, %38 : vector<32x1xi32>
    %c0_i32_16 = arith.constant 0 : i32
    %40 = vector.broadcast %c0_i32_16 : i32 to vector<32x1xi32>
    %41 = arith.cmpi ne, %39, %40 : vector<32x1xi32>
    %c0_i32_17 = arith.constant 0 : i32
    %42 = vector.broadcast %c0_i32_17 : i32 to vector<32x1xi32>
    %43 = arith.cmpi slt, %39, %42 : vector<32x1xi32>
    %c0_i32_18 = arith.constant 0 : i32
    %44 = arith.cmpi slt, %37, %c0_i32_18 : i32
    %45 = vector.broadcast %44 : i1 to vector<32x1xi1>
    %46 = vector.broadcast %45 : vector<32x1xi1> to vector<32x1xi1>
    %47 = arith.xori %43, %46 : vector<32x1xi1>
    %48 = arith.andi %47, %41 : vector<32x1xi1>
    %49 = vector.broadcast %37 : i32 to vector<32x1xi32>
    %50 = arith.addi %39, %49 : vector<32x1xi32>
    %51 = arith.select %48, %50, %39 : vector<32x1xi1>, vector<32x1xi32>
    %c15_i32 = arith.constant 15 : i32
    %52 = vector.broadcast %c15_i32 : i32 to vector<32x1xi32>
    %53 = arith.cmpi eq, %51, %52 : vector<32x1xi32>
    %54 = vector.extract_strided_slice %16 {offsets = [3, 0], sizes = [1, 512], strides = [1, 1]} : vector<9x512xf32> to vector<1x512xf32>
    %55 = vector.broadcast %54 : vector<1x512xf32> to vector<32x512xf32>
    %56 = arith.mulf %14, %55 : vector<32x512xf32>
    %57 = vector.extract_strided_slice %16 {offsets = [4, 0], sizes = [1, 512], strides = [1, 1]} : vector<9x512xf32> to vector<1x512xf32>
    %58 = vector.broadcast %57 : vector<1x512xf32> to vector<32x512xf32>
    %59 = arith.mulf %13, %58 : vector<32x512xf32>
    %60 = arith.addf %56, %59 : vector<32x512xf32>
    %61 = vector.extract_strided_slice %16 {offsets = [5, 0], sizes = [1, 512], strides = [1, 1]} : vector<9x512xf32> to vector<1x512xf32>
    %62 = vector.broadcast %61 : vector<1x512xf32> to vector<32x512xf32>
    %63 = arith.mulf %15, %62 : vector<32x512xf32>
    %64 = arith.addf %60, %63 : vector<32x512xf32>
    %65 = vector.extract_strided_slice %16 {offsets = [0, 0], sizes = [1, 512], strides = [1, 1]} : vector<9x512xf32> to vector<1x512xf32>
    %66 = vector.broadcast %65 : vector<1x512xf32> to vector<32x512xf32>
    %67 = arith.mulf %14, %66 : vector<32x512xf32>
    %68 = vector.extract_strided_slice %16 {offsets = [1, 0], sizes = [1, 512], strides = [1, 1]} : vector<9x512xf32> to vector<1x512xf32>
    %69 = vector.broadcast %68 : vector<1x512xf32> to vector<32x512xf32>
    %70 = arith.mulf %13, %69 : vector<32x512xf32>
    %71 = arith.addf %67, %70 : vector<32x512xf32>
    %72 = vector.extract_strided_slice %16 {offsets = [2, 0], sizes = [1, 512], strides = [1, 1]} : vector<9x512xf32> to vector<1x512xf32>
    %73 = vector.broadcast %72 : vector<1x512xf32> to vector<32x512xf32>
    %74 = arith.mulf %15, %73 : vector<32x512xf32>
    %75 = arith.addf %71, %74 : vector<32x512xf32>
    %c1_i32_19 = arith.constant 1 : i32
    %76 = tpu.dynamic_rotate %75 by %c1_i32_19 dim 0 : vector<32x512xf32>, i32 -> vector<32x512xf32>
    %cst_20 = arith.constant 0.000000e+00 : f32
    %77 = vector.shape_cast %35 : vector<32x1xi1> to vector<32x1xi1>
    %78 = vector.broadcast %77 : vector<32x1xi1> to vector<32x512xi1>
    %79 = vector.broadcast %cst_20 : f32 to vector<32x512xf32>
    %80 = arith.select %78, %79, %76 : vector<32x512xi1>, vector<32x512xf32>
    %81 = arith.addf %64, %80 : vector<32x512xf32>
    %82 = vector.extract_strided_slice %16 {offsets = [6, 0], sizes = [1, 512], strides = [1, 1]} : vector<9x512xf32> to vector<1x512xf32>
    %83 = vector.broadcast %82 : vector<1x512xf32> to vector<32x512xf32>
    %84 = arith.mulf %14, %83 : vector<32x512xf32>
    %85 = vector.extract_strided_slice %16 {offsets = [7, 0], sizes = [1, 512], strides = [1, 1]} : vector<9x512xf32> to vector<1x512xf32>
    %86 = vector.broadcast %85 : vector<1x512xf32> to vector<32x512xf32>
    %87 = arith.mulf %13, %86 : vector<32x512xf32>
    %88 = arith.addf %84, %87 : vector<32x512xf32>
    %89 = vector.extract_strided_slice %16 {offsets = [8, 0], sizes = [1, 512], strides = [1, 1]} : vector<9x512xf32> to vector<1x512xf32>
    %90 = vector.broadcast %89 : vector<1x512xf32> to vector<32x512xf32>
    %91 = arith.mulf %15, %90 : vector<32x512xf32>
    %92 = arith.addf %88, %91 : vector<32x512xf32>
    %c31_i32 = arith.constant 31 : i32
    %93 = tpu.dynamic_rotate %92 by %c31_i32 dim 0 : vector<32x512xf32>, i32 -> vector<32x512xf32>
    %cst_21 = arith.constant 0.000000e+00 : f32
    %94 = vector.shape_cast %53 : vector<32x1xi1> to vector<32x1xi1>
    %95 = vector.broadcast %94 : vector<32x1xi1> to vector<32x512xi1>
    %96 = vector.broadcast %cst_21 : f32 to vector<32x512xf32>
    %97 = arith.select %95, %96, %93 : vector<32x512xi1>, vector<32x512xf32>
    %98 = arith.addf %81, %97 : vector<32x512xf32>
    %c0_22 = arith.constant 0 : index
    %c0_23 = arith.constant 0 : index
    %99 = vector.load %arg5[%c0_22, %c0_23] : memref<1x512xf32, #tpu.memory_space<vmem>>, vector<1x512xf32>
    %100 = vector.broadcast %99 : vector<1x512xf32> to vector<32x512xf32>
    %101 = arith.addf %98, %100 : vector<32x512xf32>
    %102 = arith.negf %101 : vector<32x512xf32>
    %103 = math.exp %102 : vector<32x512xf32>
    %cst_24 = arith.constant 1.000000e+00 : f32
    %104 = vector.broadcast %cst_24 : f32 to vector<32x512xf32>
    %105 = arith.addf %104, %103 : vector<32x512xf32>
    %106 = arith.divf %104, %105 : vector<32x512xf32>
    %107 = arith.mulf %101, %106 : vector<32x512xf32>
    %108 = vector.shape_cast %107 : vector<32x512xf32> to vector<2x16x512xf32>
    %cst_25 = arith.constant dense<0.000000e+00> : vector<2x512xf32>
    %109 = vector.multi_reduction <add>, %108, %cst_25 [1] : vector<2x16x512xf32> to vector<2x512xf32>
    %c256_i32 = arith.constant 256 : i32
    %110 = tpu.dynamic_rotate %109 by %c256_i32 dim 1 : vector<2x512xf32>, i32 -> vector<2x512xf32>
    %111 = arith.addf %109, %110 : vector<2x512xf32>
    %c384_i32 = arith.constant 384 : i32
    %112 = tpu.dynamic_rotate %111 by %c384_i32 dim 1 : vector<2x512xf32>, i32 -> vector<2x512xf32>
    %113 = arith.addf %111, %112 : vector<2x512xf32>
    %c448_i32 = arith.constant 448 : i32
    %114 = tpu.dynamic_rotate %113 by %c448_i32 dim 1 : vector<2x512xf32>, i32 -> vector<2x512xf32>
    %115 = arith.addf %113, %114 : vector<2x512xf32>
    %c480_i32_26 = arith.constant 480 : i32
    %116 = tpu.dynamic_rotate %115 by %c480_i32_26 dim 1 : vector<2x512xf32>, i32 -> vector<2x512xf32>
    %117 = arith.addf %115, %116 : vector<2x512xf32>
    %118 = vector.extract_strided_slice %117 {offsets = [0, 0], sizes = [2, 32], strides = [1, 1]} : vector<2x512xf32> to vector<2x32xf32>
    %cst_27 = arith.constant 3.906250e-03 : f32
    %119 = vector.broadcast %cst_27 : f32 to vector<2x32xf32>
    %120 = arith.mulf %118, %119 : vector<2x32xf32>
    %c0_28 = arith.constant 0 : index
    %c0_29 = arith.constant 0 : index
    %121 = vector.load %arg6[%c0_28, %c0_29] : memref<2x32xf32, #tpu.memory_space<vmem>>, vector<2x32xf32>
    %c0_30 = arith.constant 0 : index
    %c0_31 = arith.constant 0 : index
    %122 = vector.load %arg8[%c0_30, %c0_31] : memref<2x512xf32, #tpu.memory_space<vmem>>, vector<2x512xf32>
    %c0_32 = arith.constant 0 : index
    %c0_33 = arith.constant 0 : index
    %123 = vector.load %arg9[%c0_32, %c0_33] : memref<1x512xf32, #tpu.memory_space<vmem>>, vector<1x512xf32>
    %124 = vector.extract_strided_slice %121 {offsets = [0, 0], sizes = [1, 32], strides = [1, 1]} : vector<2x32xf32> to vector<1x32xf32>
    %125 = vector.broadcast %124 : vector<1x32xf32> to vector<2x32xf32>
    %126 = arith.mulf %120, %125 : vector<2x32xf32>
    %cst_34 = arith.constant dense<0.000000e+00> : vector<2xf32>
    %127 = vector.multi_reduction <add>, %126, %cst_34 [1] : vector<2x32xf32> to vector<2xf32>
    %128 = vector.shape_cast %127 : vector<2xf32> to vector<2x1xf32>
    %c0_35 = arith.constant 0 : index
    %c0_36 = arith.constant 0 : index
    %129 = vector.load %arg7[%c0_35, %c0_36] : memref<2x1xf32, #tpu.memory_space<vmem>>, vector<1x1xf32>
    %130 = vector.broadcast %129 : vector<1x1xf32> to vector<2x1xf32>
    %131 = arith.addf %128, %130 : vector<2x1xf32>
    %132 = arith.negf %131 : vector<2x1xf32>
    %133 = math.exp %132 : vector<2x1xf32>
    %cst_37 = arith.constant 1.000000e+00 : f32
    %134 = vector.broadcast %cst_37 : f32 to vector<2x1xf32>
    %135 = arith.addf %134, %133 : vector<2x1xf32>
    %136 = arith.divf %134, %135 : vector<2x1xf32>
    %137 = arith.mulf %131, %136 : vector<2x1xf32>
    %138 = vector.extract_strided_slice %122 {offsets = [0, 0], sizes = [1, 512], strides = [1, 1]} : vector<2x512xf32> to vector<1x512xf32>
    %139 = vector.broadcast %137 : vector<2x1xf32> to vector<2x512xf32>
    %140 = vector.broadcast %138 : vector<1x512xf32> to vector<2x512xf32>
    %141 = arith.mulf %139, %140 : vector<2x512xf32>
    %142 = vector.broadcast %123 : vector<1x512xf32> to vector<2x512xf32>
    %143 = arith.addf %142, %141 : vector<2x512xf32>
    %144 = vector.extract_strided_slice %121 {offsets = [1, 0], sizes = [1, 32], strides = [1, 1]} : vector<2x32xf32> to vector<1x32xf32>
    %145 = vector.broadcast %144 : vector<1x32xf32> to vector<2x32xf32>
    %146 = arith.mulf %120, %145 : vector<2x32xf32>
    %cst_38 = arith.constant dense<0.000000e+00> : vector<2xf32>
    %147 = vector.multi_reduction <add>, %146, %cst_38 [1] : vector<2x32xf32> to vector<2xf32>
    %148 = vector.shape_cast %147 : vector<2xf32> to vector<2x1xf32>
    %c1 = arith.constant 1 : index
    %c0_39 = arith.constant 0 : index
    %149 = vector.load %arg7[%c1, %c0_39] : memref<2x1xf32, #tpu.memory_space<vmem>>, vector<1x1xf32>
    %150 = vector.broadcast %149 : vector<1x1xf32> to vector<2x1xf32>
    %151 = arith.addf %148, %150 : vector<2x1xf32>
    %152 = arith.negf %151 : vector<2x1xf32>
    %153 = math.exp %152 : vector<2x1xf32>
    %cst_40 = arith.constant 1.000000e+00 : f32
    %154 = vector.broadcast %cst_40 : f32 to vector<2x1xf32>
    %155 = arith.addf %154, %153 : vector<2x1xf32>
    %156 = arith.divf %154, %155 : vector<2x1xf32>
    %157 = arith.mulf %151, %156 : vector<2x1xf32>
    %158 = vector.extract_strided_slice %122 {offsets = [1, 0], sizes = [1, 512], strides = [1, 1]} : vector<2x512xf32> to vector<1x512xf32>
    %159 = vector.broadcast %157 : vector<2x1xf32> to vector<2x512xf32>
    %160 = vector.broadcast %158 : vector<1x512xf32> to vector<2x512xf32>
    %161 = arith.mulf %159, %160 : vector<2x512xf32>
    %162 = arith.addf %143, %161 : vector<2x512xf32>
    %cst_41 = arith.constant 0.000000e+00 : f32
    %163 = vector.broadcast %cst_41 : f32 to vector<2x512xf32>
    %164 = arith.subf %163, %162 : vector<2x512xf32>
    %165 = math.exp %164 : vector<2x512xf32>
    %cst_42 = arith.constant 1.000000e+00 : f32
    %166 = vector.broadcast %cst_42 : f32 to vector<2x512xf32>
    %167 = arith.addf %166, %165 : vector<2x512xf32>
    %168 = tpu.reciprocal %167 {approx = true} : vector<2x512xf32> -> vector<2x512xf32>
    %169 = vector.shape_cast %107 : vector<32x512xf32> to vector<2x16x512xf32>
    %170 = vector.shape_cast %168 : vector<2x512xf32> to vector<2x1x512xf32>
    %171 = vector.broadcast %170 : vector<2x1x512xf32> to vector<2x16x512xf32>
    %172 = arith.mulf %169, %171 : vector<2x16x512xf32>
    %173 = vector.shape_cast %172 : vector<2x16x512xf32> to vector<32x512xf32>
    %174 = arith.truncf %173 : vector<32x512xf32> to vector<32x512xbf16>
    %c0_43 = arith.constant 0 : index
    %c0_44 = arith.constant 0 : index
    %175 = vector.load %arg10[%c0_43, %c0_44] : memref<512x128xbf16, #tpu.memory_space<vmem>>, vector<512x128xbf16>
    %cst_45 = arith.constant dense<0.000000e+00> : vector<32x128xf32>
    %176 = tpu.matmul %174, %175, %cst_45 {dimension_numbers = #tpu.dot_dimension_numbers<[1], [0], [0], [1], [0, 0, 1, 1], [], []>} : vector<32x512xbf16>, vector<512x128xbf16>, vector<32x128xf32> -> vector<32x128xf32>
    %c0_46 = arith.constant 0 : index
    %c0_47 = arith.constant 0 : index
    %177 = vector.load %arg11[%c0_46, %c0_47] : memref<1x128xf32, #tpu.memory_space<vmem>>, vector<1x128xf32>
    %178 = vector.broadcast %177 : vector<1x128xf32> to vector<32x128xf32>
    %179 = arith.addf %176, %178 : vector<32x128xf32>
    %180 = arith.addf %1, %179 : vector<32x128xf32>
    %181 = vector.shape_cast %180 : vector<32x128xf32> to vector<2x16x128xf32>
    %c0_48 = arith.constant 0 : index
    %c0_49 = arith.constant 0 : index
    %c0_50 = arith.constant 0 : index
    %182 = vector.load %arg12[%c0_48, %c0_49, %c0_50] : memref<2x16x128xf32, #tpu.memory_space<vmem>>, vector<2x16x128xf32>
    tpu.vector_store %arg12[%c0_48, %c0_49, %c0_50], %181 {strides = array<i32>} : memref<2x16x128xf32, #tpu.memory_space<vmem>>, vector<2x16x128xf32>,
    return
  }
  func.func @transform_0(%arg0: i32) -> (i32, i32, i32) {
    %c0_i32 = arith.constant 0 : i32
    %c0_i32_0 = arith.constant 0 : i32
    %c0_i32_1 = arith.constant 0 : i32
    return %arg0, %c0_i32, %c0_i32_0 : i32, i32, i32
  }
  func.func @transform_1(%arg0: i32) -> (i32, i32) {
    %c0_i32 = arith.constant 0 : i32
    %c0_i32_0 = arith.constant 0 : i32
    %c0_i32_1 = arith.constant 0 : i32
    return %c0_i32, %c0_i32_0 : i32, i32
  }
  func.func @transform_2(%arg0: i32) -> (i32, i32) {
    %c0_i32 = arith.constant 0 : i32
    %c0_i32_0 = arith.constant 0 : i32
    %c0_i32_1 = arith.constant 0 : i32
    return %c0_i32, %c0_i32_0 : i32, i32
  }
  func.func @transform_3(%arg0: i32) -> (i32, i32) {
    %c0_i32 = arith.constant 0 : i32
    %c0_i32_0 = arith.constant 0 : i32
    %c0_i32_1 = arith.constant 0 : i32
    return %c0_i32, %c0_i32_0 : i32, i32
  }
  func.func @transform_4(%arg0: i32) -> (i32, i32) {
    %c0_i32 = arith.constant 0 : i32
    %c0_i32_0 = arith.constant 0 : i32
    %c0_i32_1 = arith.constant 0 : i32
    return %c0_i32, %c0_i32_0 : i32, i32
  }
  func.func @transform_5(%arg0: i32) -> (i32, i32) {
    %c0_i32 = arith.constant 0 : i32
    %c0_i32_0 = arith.constant 0 : i32
    %c0_i32_1 = arith.constant 0 : i32
    return %c0_i32, %c0_i32_0 : i32, i32
  }
  func.func @transform_6(%arg0: i32) -> (i32, i32) {
    %c0_i32 = arith.constant 0 : i32
    %c0_i32_0 = arith.constant 0 : i32
    %c0_i32_1 = arith.constant 0 : i32
    return %c0_i32, %c0_i32_0 : i32, i32
  }
  func.func @transform_7(%arg0: i32) -> (i32, i32) {
    %c0_i32 = arith.constant 0 : i32
    %c0_i32_0 = arith.constant 0 : i32
    %c0_i32_1 = arith.constant 0 : i32
    return %c0_i32, %c0_i32_0 : i32, i32
  }
  func.func @transform_8(%arg0: i32) -> (i32, i32) {
    %c0_i32 = arith.constant 0 : i32
    %c0_i32_0 = arith.constant 0 : i32
    %c0_i32_1 = arith.constant 0 : i32
    return %c0_i32, %c0_i32_0 : i32, i32
  }
  func.func @transform_9(%arg0: i32) -> (i32, i32) {
    %c0_i32 = arith.constant 0 : i32
    %c0_i32_0 = arith.constant 0 : i32
    %c0_i32_1 = arith.constant 0 : i32
    return %c0_i32, %c0_i32_0 : i32, i32
  }
  func.func @transform_10(%arg0: i32) -> (i32, i32) {
    %c0_i32 = arith.constant 0 : i32
    %c0_i32_0 = arith.constant 0 : i32
    %c0_i32_1 = arith.constant 0 : i32
    return %c0_i32, %c0_i32_0 : i32, i32
  }
  func.func @transform_11(%arg0: i32) -> (i32, i32, i32) {
    %c0_i32 = arith.constant 0 : i32
    %c0_i32_0 = arith.constant 0 : i32
    %c0_i32_1 = arith.constant 0 : i32
    return %arg0, %c0_i32, %c0_i32_0 : i32, i32, i32
  }
}

</mosaic_0001>

<bundles_post_ra>
// kernel: tpu_custom_call.1
= control target key start
LH: loop header
LB: loop body
LE: loop exit
PB: predicated region body
PF: predicated region fallthrough
CT: control target
= control target key end

     0   :  { %16 = vsyncpa [#allocation3], 0  ;;  %s5166_s0 = inlined_call_operand.hbm [shape: f32[2,16,128], index: 0, kind: input, shape index: {}]   ;;  %s5167_s1 = inlined_call_operand.hbm [shape: bf16[128,512], index: 1, kind: input, shape index: {}]   ;;  %s5168_s2 = inlined_call_operand.hbm [shape: f32[1,512], index: 2, kind: input, shape index: {}]   ;;  %s5169_s3 = inlined_call_operand.hbm [shape: f32[9,512], index: 3, kind: input, shape index: {}]   ;;  %s5170_s4 = inlined_call_operand.hbm [shape: f32[1,512], index: 4, kind: input, shape index: {}]   ;;  %s5171_s5 = inlined_call_operand.vmem [shape: f32[2,32], index: 5, kind: input, shape index: {}]   ;;  %s5172_s6 = inlined_call_operand.vmem [shape: f32[2,1], index: 6, kind: input, shape index: {}]   ;;  %s5173_s7 = inlined_call_operand.hbm [shape: f32[2,512], index: 7, kind: input, shape index: {}]   ;;  %s5174_s8 = inlined_call_operand.vmem [shape: f32[1,512], index: 8, kind: input, shape index: {}]   ;;  %s5175_s9 = inlined_call_operand.hbm [shape: bf16[512,128], index: 9, kind: input, shape index: {}]   ;;  %s5176_s10 = inlined_call_operand.vmem [shape: f32[1,128], index: 10, kind: input, shape index: {}]   ;;  %s5177_s11 = inlined_call_operand.hbm [shape: f32[2,16,128], index: 11, kind: output, shape index: {}]  }
   0x1   :  { %17 = vsyncpa [#allocation6], 0 }
   0x2   :  { %18 = vsyncpa [#allocation9], 0 }
   0x3   :  { %19 = vsyncpa [#allocation12], 0  ;;  %s38_s19 = sshll.u32 %s5167_s1, 4  ;;  %s39_s19 = int_to_ptr.hbm [resolvable:$true] %s38_s19 }
   0x4   :  { %20 = vsyncpa [#allocation4], 0  ;;  %s3174_s20 = smov [#allocation5]   ;;  %s62_s24 = sshll.u32 %s5169_s3, 4  ;;  %s63_s24 = int_to_ptr.hbm [resolvable:$true] %s62_s24 }
   0x5   :  { %s40_s21 = sshll.u32 %s3174_s20, 4  ;;  %s3175_s25 = smov 256   ;;  %s41_s21 = int_to_ptr.vmem [resolvable:$true] %s40_s21 }
   0x6   :  { %s3176_s26 = smov 16   ;;  %s3177_s27 = smov [#allocation8]  }
   0x7   :  { %46 = dma.hbm_to_vmem [thread:$0]  %s39_s19, 4096, %s41_s21, [#allocation6], %s3175_s25, %s3175_s25, %s3176_s26  }
   0x8   :  { %s64_s28 = sshll.u32 %s3177_s27, 4  ;;  %s3178_s29 = smov 512   ;;  %s65_s28 = int_to_ptr.vmem [resolvable:$true] %s64_s28 }
   0x9   :  { %s3179_s30 = smov 32   ;;  %s91_s13 = sshll.u32 %s5173_s7, 4  ;;  %s92_s13 = int_to_ptr.hbm [resolvable:$true] %s91_s13 }
   0xa   :  { %70 = dma.hbm_to_vmem [thread:$0]  %s63_s24, 1024, %s65_s28, [#allocation9], %s3178_s29, %s3178_s29, %s3179_s30  }
   0xb   :  { %s3180_s14 = smov [#allocation11]   ;;  %s25_s17 = sshll.u32 %s5166_s0, 4  ;;  %s26_s17 = int_to_ptr.hbm [resolvable:$true] %s25_s17 }
   0xc   :  { %s93_s15 = sshll.u32 %s3180_s14, 4  ;;  %s3181_s18 = smov [#allocation2]   ;;  %s94_s15 = int_to_ptr.vmem [resolvable:$true] %s93_s15 }
   0xd   :  { %96 = dma.hbm_to_vmem [thread:$0]  %s92_s13, 128, %s94_s15, [#allocation12]  }
   0xe   :  { %s27_s19 = sshll.u32 %s3181_s18, 4  ;;  %s3182_s20 = smov 128   ;;  %s28_s19 = int_to_ptr.vmem [resolvable:$true] %s27_s19 }
   0xf   :  { %s3183_s21 = smov 8   ;;  %s52_s23 = sshll.u32 %s5168_s2, 4  ;;  %s53_s23 = int_to_ptr.hbm [resolvable:$true] %s52_s23 }
  0x10   :  { %33 = dma.hbm_to_vmem [thread:$0]  %s26_s17, 512, %s28_s19, [#allocation3], %s3182_s20, %s3182_s20, %s3183_s21  }
  0x11   :  { %s3184_s24 = smov [#allocation7]   ;;  %s76_s27 = sshll.u32 %s5170_s4, 4  ;;  %s77_s27 = int_to_ptr.hbm [resolvable:$true] %s76_s27 }
  0x12   :  { %s54_s25 = sshll.u32 %s3184_s24, 4  ;;  %s3185_s28 = smov [#allocation10]   ;;  %s55_s25 = int_to_ptr.vmem [resolvable:$true] %s54_s25 }
  0x13   :  { %57 = dma.hbm_to_vmem [thread:$0]  %s53_s23, 64, %s55_s25, [#allocation6]  }
  0x14   :  { %s78_s29 = sshll.u32 %s3185_s28, 4  ;;  %s103_s13 = sshll.u32 %s5175_s9, 4  ;;  %s79_s29 = int_to_ptr.vmem [resolvable:$true] %s78_s29  ;;  %s104_s13 = int_to_ptr.hbm [resolvable:$true] %s103_s13 }
  0x15   :  { %81 = dma.hbm_to_vmem [thread:$0]  %s77_s27, 64, %s79_s29, [#allocation9]  }
  0x16   :  { %s3186_s2 = smov [#allocation13]   ;;  %s3187_s15 = smov 64  }
  0x17   :  { %s105_s14 = sshll.u32 %s3186_s2, 4  ;;  %s3188_s3 = smov 4   ;;  %s106_s14 = int_to_ptr.vmem [resolvable:$true] %s105_s14 }
  0x18   :  { %111 = dma.hbm_to_vmem [thread:$0]  %s104_s13, 4096, %s106_s14, [#allocation12], %s3187_s15, %s3187_s15, %s3188_s3  }
  0x19   :  { %3164 = dma.done.wait [#allocation3], 512  }
  0x1a   :  { %3165 = vsyncadd [#allocation3], 4294966784 }
  0x1b   :  { %3166 = dma.done.wait [#allocation6], 4160  }
  0x1c   :  { %3167 = vsyncadd [#allocation6], 4294963136 }
  0x1d   :  { %3168 = dma.done.wait [#allocation9], 1088  }
  0x1e   :  { %3169 = vsyncadd [#allocation9], 4294966208 }
  0x1f   :  { %3170 = dma.done.wait [#allocation12], 4224  }
  0x20   :  { %3171 = vsyncadd [#allocation12], 4294963072  ;;  %v2549_v0 = vld [vmem:[#allocation5 + $0xe0] sm:$0xf]  ;;  %v2755_v1 = vld [vmem:[#allocation5 + $0xec] sm:$0xf0] }
  0x21   :  { %v2753_v2 = vld [vmem:[#allocation5 + $0xe4] sm:$0xf]  ;;  %v2550_v3 = vor.u32 %v2755_v1, %v2549_v0  ;;  %v2551_v4 = vld [vmem:[#allocation5 + $0xf0] sm:$0xf0]  ;;  %v2557_v5 = vld [vmem:[#allocation5 + $0xe8] sm:$0xf] }
  0x22   :  { %v2756_v6 = vld [vmem:[#allocation5 + $0xf4] sm:$0xf0]  ;;  %v2554_v7 = vor.u32 %v2753_v2, %v2551_v4  ;;  %v2754_v9 = vld [vmem:[#allocation5 + $0xec] sm:$0xf]  ;;  %v2559_v10 = vld [vmem:[#allocation5 + $0xf8] sm:$0xf0] }
  0x23   :  { %v2558_v8 = vor.u32 %v2756_v6, %v2557_v5  ;;  %v2533_v11 = vld [vmem:[#allocation5 + $0xc0] sm:$0xf]  ;;  %350 = vmatpush.bf16.msra.mxu0 %v2550_v3  ;;  %v2562_v12 = vor.u32 %v2754_v9, %v2559_v10  ;;  %v2751_v13 = vld [vmem:[#allocation5 + $0xcc] sm:$0xf0]  ;;  %v2749_v14 = vld [vmem:[#allocation5 + $0xc4] sm:$0xf] }
  0x24   :  { %v2535_v15 = vld [vmem:[#allocation5 + $0xd0] sm:$0xf0]  ;;  %369 = vmatpush.bf16.msra.mxu1 %v2554_v7  ;;  %v2534_v16 = vor.u32 %v2751_v13, %v2533_v11  ;;  %v2541_v18 = vld [vmem:[#allocation5 + $0xc8] sm:$0xf]  ;;  %v2752_v19 = vld [vmem:[#allocation5 + $0xd4] sm:$0xf0] }
  0x25   :  { %388 = vmatpush.bf16.msra.mxu2 %v2558_v8  ;;  %v2538_v17 = vor.u32 %v2749_v14, %v2535_v15  ;;  %v2750_v20 = vld [vmem:[#allocation5 + $0xcc] sm:$0xf]  ;;  %407 = vmatpush.bf16.msra.mxu3 %v2562_v12  ;;  %v2542_v21 = vor.u32 %v2752_v19, %v2541_v18  ;;  %v2543_v22 = vld [vmem:[#allocation5 + $0xd8] sm:$0xf0]  ;;  %v2517_v23 = vld [vmem:[#allocation5 + $0xa0] sm:$0xf] }
  0x26   :  { %v2747_v24 = vld [vmem:[#allocation5 + $0xac] sm:$0xf0]  ;;  %v2546_v25 = vor.u32 %v2750_v20, %v2543_v22  ;;  %v2745_v26 = vld [vmem:[#allocation5 + $0xa4] sm:$0xf]  ;;  %v2519_v27 = vld [vmem:[#allocation5 + $0xb0] sm:$0xf0] }
  0x27   :  { %v2525_v28 = vld [vmem:[#allocation5 + $0xa8] sm:$0xf]  ;;  %351 = vmatpush.bf16.msra.mxu0 %v2534_v16  ;;  %v2518_v29 = vor.u32 %v2747_v24, %v2517_v23  ;;  %v2748_v30 = vld [vmem:[#allocation5 + $0xb4] sm:$0xf0]  ;;  %v2746_v31 = vld [vmem:[#allocation5 + $0xac] sm:$0xf]  ;;  %v2522_v33 = vor.u32 %v2745_v26, %v2519_v27 }
  0x28   :  { %v2527_v32 = vld [vmem:[#allocation5 + $0xb8] sm:$0xf0]  ;;  %370 = vmatpush.bf16.msra.mxu1 %v2538_v17  ;;  %v2526_v34 = vor.u32 %v2748_v30, %v2525_v28  ;;  %v2501_v35 = vld [vmem:[#allocation5 + $0x80] sm:$0xf]  ;;  %v2743_v36 = vld [vmem:[#allocation5 + $0x8c] sm:$0xf0] }
  0x29   :  { %389 = vmatpush.bf16.msra.mxu2 %v2542_v21  ;;  %v2741_v37 = vld [vmem:[#allocation5 + $0x84] sm:$0xf]  ;;  %408 = vmatpush.bf16.msra.mxu3 %v2546_v25  ;;  %v2530_v38 = vor.u32 %v2746_v31, %v2527_v32  ;;  %v2503_v39 = vld [vmem:[#allocation5 + $0x90] sm:$0xf0]  ;;  %v2509_v40 = vld [vmem:[#allocation5 + $0x88] sm:$0xf]  ;;  %v2502_v44 = vor.u32 %v2743_v36, %v2501_v35 }
  0x2a   :  { %v2744_v41 = vld [vmem:[#allocation5 + $0x94] sm:$0xf0]  ;;  %v2742_v42 = vld [vmem:[#allocation5 + $0x8c] sm:$0xf]  ;;  %v2511_v43 = vld [vmem:[#allocation5 + $0x98] sm:$0xf0]  ;;  %v2506_v45 = vor.u32 %v2741_v37, %v2503_v39 }
  0x2b   :  { %352 = vmatpush.bf16.msra.mxu0 %v2518_v29  ;;  %v2510_v46 = vor.u32 %v2744_v41, %v2509_v40  ;;  %v2485_v47 = vld [vmem:[#allocation5 + $0x60] sm:$0xf]  ;;  %v2739_v48 = vld [vmem:[#allocation5 + $0x6c] sm:$0xf0]  ;;  %v2737_v49 = vld [vmem:[#allocation5 + $0x64] sm:$0xf]  ;;  %v2514_v50 = vor.u32 %v2742_v42, %v2511_v43 }
  0x2c   :  { %371 = vmatpush.bf16.msra.mxu1 %v2522_v33  ;;  %v2487_v51 = vld [vmem:[#allocation5 + $0x70] sm:$0xf0]  ;;  %v2493_v52 = vld [vmem:[#allocation5 + $0x68] sm:$0xf]  ;;  %v2740_v53 = vld [vmem:[#allocation5 + $0x74] sm:$0xf0]  ;;  %v2486_v56 = vor.u32 %v2739_v48, %v2485_v47 }
  0x2d   :  { %390 = vmatpush.bf16.msra.mxu2 %v2526_v34  ;;  %409 = vmatpush.bf16.msra.mxu3 %v2530_v38  ;;  %v2738_v54 = vld [vmem:[#allocation5 + $0x6c] sm:$0xf]  ;;  %v2495_v55 = vld [vmem:[#allocation5 + $0x78] sm:$0xf0]  ;;  %v2490_v57 = vor.u32 %v2737_v49, %v2487_v51  ;;  %v2494_v58 = vor.u32 %v2740_v53, %v2493_v52  ;;  %v2469_v59 = vld [vmem:[#allocation5 + $0x40] sm:$0xf] }
  0x2e   :  { %v2735_v60 = vld [vmem:[#allocation5 + $0x4c] sm:$0xf0]  ;;  %v2733_v61 = vld [vmem:[#allocation5 + $0x44] sm:$0xf]  ;;  %v2498_v62 = vor.u32 %v2738_v54, %v2495_v55  ;;  %v2471_v63 = vld [vmem:[#allocation5 + $0x50] sm:$0xf0] }
  0x2f   :  { %353 = vmatpush.bf16.msra.mxu0 %v2502_v44  ;;  %v2477_v0 = vld [vmem:[#allocation5 + $0x48] sm:$0xf]  ;;  %v2736_v1 = vld [vmem:[#allocation5 + $0x54] sm:$0xf0]  ;;  %v2734_v2 = vld [vmem:[#allocation5 + $0x4c] sm:$0xf]  ;;  %v2470_v4 = vor.u32 %v2735_v60, %v2469_v59  ;;  %v2474_v6 = vor.u32 %v2733_v61, %v2471_v63 }
  0x30   :  { %372 = vmatpush.bf16.msra.mxu1 %v2506_v45  ;;  %v2479_v3 = vld [vmem:[#allocation5 + $0x58] sm:$0xf0]  ;;  %v2453_v5 = vld [vmem:[#allocation5 + $0x20] sm:$0xf]  ;;  %v2478_v7 = vor.u32 %v2736_v1, %v2477_v0  ;;  %v2731_v8 = vld [vmem:[#allocation5 + $0x2c] sm:$0xf0] }
  0x31   :  { %391 = vmatpush.bf16.msra.mxu2 %v2510_v46  ;;  %410 = vmatpush.bf16.msra.mxu3 %v2514_v50  ;;  %v2729_v9 = vld [vmem:[#allocation5 + $0x24] sm:$0xf]  ;;  %v2455_v10 = vld [vmem:[#allocation5 + $0x30] sm:$0xf0]  ;;  %v2482_v11 = vor.u32 %v2734_v2, %v2479_v3  ;;  %v2461_v12 = vld [vmem:[#allocation5 + $0x28] sm:$0xf]  ;;  %v2454_v18 = vor.u32 %v2731_v8, %v2453_v5 }
  0x32   :  { %v2732_v13 = vld [vmem:[#allocation5 + $0x34] sm:$0xf0]  ;;  %v2730_v14 = vld [vmem:[#allocation5 + $0x2c] sm:$0xf]  ;;  %v2463_v15 = vld [vmem:[#allocation5 + $0x38] sm:$0xf0]  ;;  %v2458_v22 = vor.u32 %v2729_v9, %v2455_v10 }
  0x33   :  { %354 = vmatpush.bf16.msra.mxu0 %v2486_v56  ;;  %v2437_v16 = vld [vmem:[#allocation5] sm:$0xf]  ;;  %v2727_v17 = vld [vmem:[#allocation5 + $0xc] sm:$0xf0]  ;;  %v2725_v19 = vld [vmem:[#allocation5 + $0x4] sm:$0xf]  ;;  %v2462_v23 = vor.u32 %v2732_v13, %v2461_v12  ;;  %v2466_v24 = vor.u32 %v2730_v14, %v2463_v15 }
  0x34   :  { %373 = vmatpush.bf16.msra.mxu1 %v2490_v57  ;;  %v2439_v20 = vld [vmem:[#allocation5 + $0x10] sm:$0xf0]  ;;  %v2445_v21 = vld [vmem:[#allocation5 + $0x8] sm:$0xf]  ;;  %v2728_v25 = vld [vmem:[#allocation5 + $0x14] sm:$0xf0]  ;;  %v2438_v28 = vor.u32 %v2727_v17, %v2437_v16 }
  0x35   :  { %392 = vmatpush.bf16.msra.mxu2 %v2494_v58  ;;  %411 = vmatpush.bf16.msra.mxu3 %v2498_v62  ;;  %v2726_v26 = vld [vmem:[#allocation5 + $0xc] sm:$0xf]  ;;  %v2447_v27 = vld [vmem:[#allocation5 + $0x18] sm:$0xf0]  ;;  %v142_v29 = vld [vmem:[#allocation2] sm:$0xff]  ;;  %v2442_v31 = vor.u32 %v2725_v19, %v2439_v20  ;;  %v2446_v32 = vor.u32 %v2728_v25, %v2445_v21  ;;  %s3189_s4 = smov 96  }
  0x36   :  { %v143_v30 = vld [vmem:[#allocation2 + $0x8] sm:$0xff]  ;;  %v2450_v33 = vor.u32 %v2726_v26, %v2447_v27  ;;  %v144_v35 = vld [vmem:[#allocation2 + $0x10] sm:$0xff]  ;;  %v145_v36 = vld [vmem:[#allocation2 + $0x18] sm:$0xff]  ;;  %s2419_s25 = sshll.u32 %s5177_s11, 4  ;;  %s2420_s25 = int_to_ptr.hbm [resolvable:$true] %s2419_s25 }
  0x37   :  { %355 = vmatpush.bf16.msra.mxu0 %v2470_v4  ;;  %v146_v34 = vpack.c.bf16 %v143_v30, %v142_v29  ;;  %v147_v37 = vpack.c.bf16 %v145_v36, %v144_v35  ;;  %v180_v38 = vld [vmem:[#allocation7] sm:$0xf] }
  0x38   :  { %374 = vmatpush.bf16.msra.mxu1 %v2474_v6  ;;  %v3279_v39 = vperm.slane %v180_v38, 0  ;;  %v3281_v40 = vperm.slane %v180_v38, 1  ;;  %v3291_v47 = vperm.slane %v180_v38, 2  ;;  %v3293_v48 = vperm.slane %v180_v38, 3 }
  0x39   :  { %393 = vmatpush.bf16.msra.mxu2 %v2478_v7  ;;  %412 = vmatpush.bf16.msra.mxu3 %v2482_v11 }
  0x3b   :  { %356 = vmatpush.bf16.msra.mxu0 %v2454_v18 }
  0x3c   :  { %375 = vmatpush.bf16.msra.mxu1 %v2458_v22 }
  0x3d   :  { %394 = vmatpush.bf16.msra.mxu2 %v2462_v23  ;;  %413 = vmatpush.bf16.msra.mxu3 %v2466_v24 }
  0x3f   :  { %357 = vmatpush.bf16.msra.mxu0 %v2438_v28 }
  0x40   :  { %376 = vmatpush.bf16.msra.mxu1 %v2442_v31 }
  0x41   :  { %395 = vmatpush.bf16.msra.mxu2 %v2446_v32  ;;  %414 = vmatpush.bf16.msra.mxu3 %v2450_v33 }
  0x42   :  { %358 = vmatmul.bf16.vlgmr.msra.gmra.mxu0 %v146_v34 }
  0x43   :  { %377 = vmatmul.bf16.vlgmr.msra.gmra.mxu1 %v146_v34 }
  0x44   :  { %396 = vmatmul.bf16.vlgmr.msra.gmra.mxu2 %v146_v34  ;;  %415 = vmatmul.bf16.vlgmr.msra.gmra.mxu3 %v146_v34 }
  0x52   :  { %363 = vmatmul.bf16.gmra.mxu0 %v147_v37 }
  0x53   :  { %382 = vmatmul.bf16.gmra.mxu1 %v147_v37 }
  0x54   :  { %401 = vmatmul.bf16.gmra.mxu2 %v147_v37  ;;  %420 = vmatmul.bf16.gmra.mxu3 %v147_v37 }
  0xbf   :  { %v359_v41 = vpop.f32.mrf.mxu0 }
  0xc0   :  { %v3284_v42 = vadd.f32 %v359_v41, %v3279_v39  ;;  %v378_v43 = vpop.f32.mrf.mxu1 }
  0xc1   :  { %v3287_v44 = vadd.f32 %v378_v43, %v3281_v40 }
  0xc2   :  { %v2563_v45 = vmul.f32 -1.442695, %v3284_v42 }
  0xc3   :  { %v2564_v46 = vmul.f32 -1.442695, %v3287_v44 }
  0xc4   :  { %2815 = vpow2.f32 %v2563_v45 }
  0xc5   :  { %2817 = vpow2.f32 %v2564_v46 }
  0xc7   :  { %v397_v49 = vpop.f32.mrf.mxu2  ;;  %v416_v51 = vpop.f32.mrf.mxu3 }
  0xc8   :  { %v3296_v50 = vadd.f32 %v397_v49, %v3291_v47  ;;  %v361_v52 = vpop.f32.mrf.mxu0  ;;  %v3299_v53 = vadd.f32 %v416_v51, %v3293_v48  ;;  %v380_v55 = vpop.f32.mrf.mxu1 }
  0xc9   :  { %v3302_v54 = vadd.f32 %v361_v52, %v3279_v39  ;;  %v3306_v57 = vadd.f32 %v380_v55, %v3281_v40 }
  0xca   :  { %v2565_v56 = vmul.f32 -1.442695, %v3296_v50  ;;  %v2816_v58 = vpop.eup %2815  ;;  %v2566_v59 = vmul.f32 -1.442695, %v3299_v53 }
  0xcb   :  { %v2818_v60 = vpop.eup %2817  ;;  %v474_v61 = vadd.f32 1.0, %v2816_v58  ;;  %v2567_v62 = vmul.f32 -1.442695, %v3302_v54  ;;  %v2568_v0 = vmul.f32 -1.442695, %v3306_v57 }
  0xcc   :  { %2819 = vpow2.f32 %v2565_v56  ;;  %v475_v63 = vadd.f32 1.0, %v2818_v60 }
  0xcd   :  { %2821 = vpow2.f32 %v2566_v59  ;;  %v499_v13 = vand.u32 2147483647, %v474_v61  ;;  %v501_v16 = vand.u32 2147483648, %v474_v61  ;;  %vm495_vm3 = vweird.f32 %v474_v61 }
  0xce   :  { %2823 = vrcp.f32 %v474_v61  ;;  %vm510_vm0 = vweird.f32 %v475_v63  ;;  %v514_v21 = vand.u32 2147483647, %v475_v63  ;;  %v516_v22 = vand.u32 2147483648, %v475_v63 }
  0xcf   :  { %2825 = vrcp.f32 %v475_v63  ;;  %v399_v1 = vpop.f32.mrf.mxu2  ;;  %v418_v3 = vpop.f32.mrf.mxu3  ;;  %v502_v33 = vor.u32 1.1754944e-38, %v501_v16  ;;  %vm500_vm7 = vcmp.eq.f32.partialorder %v499_v13, 8.507059e+37 }
  0xd0   :  { %2827 = vpow2.f32 %v2567_v62  ;;  %v3312_v2 = vadd.f32 %v399_v1, %v3291_v47  ;;  %v3315_v5 = vadd.f32 %v418_v3, %v3293_v48  ;;  %v364_v14 = vpop.f32.mrf.mxu0  ;;  %v517_v32 = vor.u32 1.1754944e-38, %v516_v22  ;;  %v383_v36 = vpop.f32.mrf.mxu1 }
  0xd1   :  { %2829 = vpow2.f32 %v2568_v0  ;;  %v3326_v24 = vadd.f32 %v364_v14, %v3279_v39  ;;  %vm515_vm6 = vcmp.eq.f32.partialorder %v514_v21, 8.507059e+37  ;;  %v3351_v56 = vadd.f32 %v383_v36, %v3281_v40 }
  0xd2   :  { %v2820_v4 = vpop.eup %2819  ;;  %v2569_v10 = vmul.f32 -1.442695, %v3312_v2  ;;  %v2570_v18 = vmul.f32 -1.442695, %v3315_v5 }
  0xd3   :  { %v2822_v6 = vpop.eup %2821  ;;  %v3317_v7 = vadd.f32 1.0, %v2820_v4  ;;  %v2571_v41 = vmul.f32 -1.442695, %v3326_v24  ;;  %v2572_v16 = vmul.f32 -1.442695, %v3351_v56 }
  0xd4   :  { %v2824_v8 = vpop.eup %2823  ;;  %v3319_v9 = vadd.f32 1.0, %v2822_v6 }
  0xd5   :  { %v2826_v11 = vpop.eup %2825  ;;  %v491_v12 = vmul.f32 %v2824_v8, %v474_v61  ;;  %2831 = vrcp.f32 %v3317_v7  ;;  %vm496_vm2 = vweird.f32 %v2824_v8  ;;  %vm525_vm8 = vweird.f32 %v3317_v7 }
  0xd6   :  { %v2828_v15 = vpop.eup %2827  ;;  %v506_v17 = vmul.f32 %v2826_v11, %v475_v63  ;;  %2833 = vrcp.f32 %v3319_v9  ;;  %vm511_vm1 = vweird.f32 %v2826_v11  ;;  %vm497_vm5 = vmor %vm495_vm3, %vm496_vm2  ;;  %v531_v63 = vand.u32 2147483648, %v3317_v7 }
  0xd7   :  { %v2830_v19 = vpop.eup %2829  ;;  %v492_v20 = vsub.f32 1.0, %v491_v12  ;;  %2835 = vpow2.f32 %v2569_v10  ;;  %v3328_v26 = vadd.f32 1.0, %v2828_v15  ;;  %vm3335_vm4 = vmor %vm510_vm0, %vm511_vm1  ;;  %v544_v1 = vand.u32 2147483647, %v3319_v9  ;;  %v402_v13 = vpop.f32.mrf.mxu2 }
  0xd8   :  { %v507_v23 = vsub.f32 1.0, %v506_v17  ;;  %v3330_v27 = vadd.f32 1.0, %v2830_v19  ;;  %2837 = vpow2.f32 %v2570_v18  ;;  %vm540_vm11 = vweird.f32 %v3319_v9  ;;  %v421_v31 = vpop.f32.mrf.mxu3 }
  0xd9   :  { %v493_v25 = vmul.f32 %v2824_v8, %v492_v20  ;;  %2839 = vrcp.f32 %v3328_v26  ;;  %v529_v14 = vand.u32 2147483647, %v3317_v7  ;;  %vm545_vm13 = vcmp.eq.f32.partialorder %v544_v1, 8.507059e+37 }
  0xda   :  { %v508_v28 = vmul.f32 %v2826_v11, %v507_v23  ;;  %2841 = vrcp.f32 %v3330_v27  ;;  %v559_v22 = vand.u32 2147483647, %v3328_v26  ;;  %v3397_v23 = vadd.f32 %v402_v13, %v3291_v47 }
  0xdb   :  { %v3332_v29 = vpop.eup %2831  ;;  %v494_v30 = vadd.f32 %v2824_v8, %v493_v25  ;;  %2843 = vpow2.f32 %v2571_v41  ;;  %vm530_vm15 = vcmp.eq.f32.partialorder %v529_v14, 8.507059e+37  ;;  %vm570_vm0 = vweird.f32 %v3330_v27 }
  0xdc   :  { %v509_v34 = vadd.f32 %v2826_v11, %v508_v28  ;;  %v521_v35 = vmul.f32 %v3332_v29, %v3317_v7  ;;  %v2834_v37 = vpop.eup %2833  ;;  %vm526_vm10 = vweird.f32 %v3332_v29  ;;  %vm555_vm2 = vweird.f32 %v3328_v26 }
  0xdd   :  { %v498_v38 = vsel %vm497_vm5, %v2824_v8, %v494_v30  ;;  %v2836_v43 = vpop.eup %2835  ;;  %v536_v51 = vmul.f32 %v2834_v37, %v3319_v9  ;;  %vm541_vm9 = vweird.f32 %v2834_v37  ;;  %vm3390_vm14 = vmor %vm525_vm8, %vm526_vm10  ;;  %v561_v30 = vand.u32 2147483648, %v3328_v26 }
  0xde   :  { %v503_v45 = vsel %vm500_vm7, %v502_v33, %v498_v38  ;;  %v513_v46 = vsel %vm3335_vm4, %v2826_v11, %v509_v34  ;;  %v522_v49 = vsub.f32 1.0, %v521_v35  ;;  %v2838_v58 = vpop.eup %2837  ;;  %v3362_v0 = vadd.f32 1.0, %v2836_v43  ;;  %vm542_vm12 = vmor %vm540_vm11, %vm541_vm9 }
  0xdf   :  { %v3348_v52 = vmul.f32 %v503_v45, %v3284_v42  ;;  %v518_v55 = vsel %vm515_vm6, %v517_v32, %v513_v46  ;;  %v537_v61 = vsub.f32 1.0, %v536_v51  ;;  %v3358_v62 = vpop.eup %2839  ;;  %v546_v42 = vand.u32 2147483648, %v3319_v9 }
  0xe0   :  { %v3354_v59 = vmul.f32 %v518_v55, %v3287_v44  ;;  %v523_v60 = vmul.f32 %v3332_v29, %v522_v49  ;;  %v551_v3 = vmul.f32 %v3358_v62, %v3328_v26  ;;  %v3373_v4 = vpop.eup %2841  ;;  %2845 = vrcp.f32 %v3362_v0 }
  0xe1   :  { %797 = vrot.lane.b32.xlu1 %v3348_v52, %s3189_s4  ;;  %746 = vrot.lane.b32.xlu0 %v3348_v52, %s3179_s30  ;;  %v538_v44 = vmul.f32 %v2834_v37, %v537_v61  ;;  %v3378_v6 = vadd.f32 1.0, %v2838_v58  ;;  %v566_v12 = vmul.f32 %v3373_v4, %v3330_v27  ;;  %v547_v15 = vor.u32 1.1754944e-38, %v546_v42  ;;  %v2844_v19 = vpop.eup %2843  ;;  %v366_v61 = vpop.f32.mrf.mxu0 }
  0xe2   :  { %754 = vrot.lane.b32.xlu2 %v3354_v59, %s3179_s30  ;;  %v524_v8 = vadd.f32 %v3332_v29, %v523_v60  ;;  %v552_v11 = vsub.f32 1.0, %v551_v3  ;;  %v532_v9 = vor.u32 1.1754944e-38, %v531_v63  ;;  %v574_v34 = vand.u32 2147483647, %v3330_v27  ;;  %v385_v63 = vpop.f32.mrf.mxu1 }
  0xe3   :  { %v539_v10 = vadd.f32 %v2834_v37, %v538_v44  ;;  %v567_v18 = vsub.f32 1.0, %v566_v12  ;;  %2847 = vrcp.f32 %v3378_v6  ;;  %v3411_v35 = vadd.f32 1.0, %v2844_v19 }
  0xe4   :  { %v528_v25 = vsel %vm3390_vm14, %v3332_v29, %v524_v8  ;;  %v553_v7 = vmul.f32 %v3358_v62, %v552_v11  ;;  %2849 = vpow2.f32 %v2572_v16  ;;  %v576_v29 = vand.u32 2147483648, %v3330_v27 }
  0xe5   :  { %v543_v17 = vsel %vm542_vm12, %v2834_v37, %v539_v10  ;;  %v568_v33 = vmul.f32 %v3373_v4, %v567_v18  ;;  %v533_v36 = vsel %vm530_vm15, %v532_v9, %v528_v25  ;;  %vm571_vm1 = vweird.f32 %v3373_v4  ;;  %v423_v18 = vpop.f32.mrf.mxu3 }
  0xe6   :  { %v548_v21 = vsel %vm545_vm13, %v547_v15, %v543_v17  ;;  %v3407_v32 = vpop.eup %2845  ;;  %2851 = vrcp.f32 %v3411_v35  ;;  %v554_v37 = vadd.f32 %v3358_v62, %v553_v7  ;;  %vm556_vm3 = vweird.f32 %v3358_v62  ;;  %vm3441_vm6 = vmor %vm570_vm0, %vm571_vm1  ;;  %v404_v15 = vpop.f32.mrf.mxu2 }
  0xe7   :  { %v3403_v28 = vmul.f32 %v548_v21, %v3299_v53  ;;  %v581_v53 = vmul.f32 %v3407_v32, %v3362_v0  ;;  %vm3428_vm4 = vcmp.eq.f32.partialorder %v559_v22, 8.507059e+37  ;;  %v562_v43 = vor.u32 1.1754944e-38, %v561_v30  ;;  %vm3450_vm7 = vmor %vm555_vm2, %vm556_vm3 }
  0xe8   :  { %v569_v27 = vadd.f32 %v3373_v4, %v568_v33  ;;  %vm3433_vm5 = vcmp.eq.f32.partialorder %v574_v34, 8.507059e+37  ;;  %v2573_v46 = vmul.f32 -1.442695, %v3397_v23  ;;  %v3439_v49 = vmul.f32 %v533_v36, %v3296_v50 }
  0xe9   :  { %821 = vrot.lane.b32.xlu1 %v3403_v28, %s3189_s4  ;;  %770 = vrot.lane.b32.xlu0 %v3403_v28, %s3179_s30  ;;  %v2848_v41 = vpop.eup %2847  ;;  %v577_v55 = vor.u32 1.1754944e-38, %v576_v29  ;;  %v582_v58 = vsub.f32 1.0, %v581_v53  ;;  %vm600_vm8 = vweird.f32 %v3378_v6  ;;  %v604_v50 = vand.u32 2147483647, %v3378_v6 }
  0xea   :  { %805 = vrot.lane.b32.xlu2 %v3354_v59, %s3189_s4  ;;  %v596_v60 = vmul.f32 %v2848_v41, %v3378_v6  ;;  %v2850_v42 = vpop.eup %2849  ;;  %2853 = vpow2.f32 %v2573_v46  ;;  %v3457_v1 = vadd.f32 %v421_v31, %v3293_v48  ;;  %v558_v3 = vsel %vm3450_vm7, %v3358_v62, %v554_v37 }
  0xeb   :  { %vm585_vm9 = vweird.f32 %v3362_v0  ;;  %v606_v26 = vand.u32 2147483648, %v3378_v6  ;;  %v3464_v10 = vadd.f32 1.0, %v2850_v42  ;;  %v573_v12 = vsel %vm3441_vm6, %v3373_v4, %v569_v27 }
  0xec   :  { %v597_v8 = vsub.f32 1.0, %v596_v60  ;;  %v3466_v11 = vpop.eup %2851  ;;  %v2574_v13 = vmul.f32 -1.442695, %v3457_v1  ;;  %v3473_v14 = vadd.f32 %v366_v61, %v3279_v39  ;;  %v3476_v62 = vadd.f32 %v385_v63, %v3281_v40 }
  0xed   :  { %v583_v16 = vmul.f32 %v3407_v32, %v582_v58  ;;  %vm601_vm10 = vweird.f32 %v2848_v41  ;;  %v611_v17 = vmul.f32 %v3466_v11, %v3411_v35  ;;  %v563_v4 = vsel %vm3428_vm4, %v562_v43, %v558_v3 }
  0xee   :  { %v598_v9 = vmul.f32 %v2848_v41, %v597_v8  ;;  %vm586_vm11 = vweird.f32 %v3407_v32  ;;  %vm3486_vm12 = vcmp.eq.f32.partialorder %v604_v50, 8.507059e+37  ;;  %2855 = vrcp.f32 %v3464_v10  ;;  %vm602_vm13 = vmor %vm600_vm8, %vm601_vm10 }
  0xef   :  { %v578_v40 = vsel %vm3433_vm5, %v577_v55, %v573_v12  ;;  %v607_v20 = vor.u32 1.1754944e-38, %v606_v26  ;;  %v3496_v21 = vadd.f32 %v404_v15, %v3291_v47  ;;  %2857 = vpow2.f32 %v2574_v13  ;;  %vm3529_vm14 = vmor %vm585_vm9, %vm586_vm11 }
  0xf0   :  { %v599_v19 = vadd.f32 %v2848_v41, %v598_v9  ;;  %v2854_v22 = vpop.eup %2853  ;;  %v2575_v25 = vmul.f32 -1.442695, %v3473_v14  ;;  %v2576_v7 = vmul.f32 -1.442695, %v3476_v62  ;;  %v3503_v30 = vadd.f32 %v423_v18, %v3293_v48 }
  0xf1   :  { %813 = vrot.lane.b32.xlu0 %v3439_v49, %s3189_s4  ;;  %v584_v31 = vadd.f32 %v3407_v32, %v583_v16  ;;  %v612_v34 = vsub.f32 1.0, %v611_v17  ;;  %v3506_v29 = vadd.f32 1.0, %v2854_v22  ;;  %v589_v47 = vand.u32 2147483647, %v3362_v0 }
  0xf2   :  { %762 = vrot.lane.b32.xlu2 %v3439_v49, %s3179_s30  ;;  %v603_v33 = vsel %vm602_vm13, %v2848_v41, %v599_v19  ;;  %v591_v53 = vand.u32 2147483648, %v3362_v0  ;;  %2859 = vpow2.f32 %v2575_v25  ;;  %v3513_v36 = vmul.f32 %v578_v40, %v3306_v57 }
  0xf3   :  { %v608_v6 = vsel %vm3486_vm12, %v607_v20, %v603_v33  ;;  %2861 = vrcp.f32 %v3506_v29  ;;  %v2577_v37 = vmul.f32 -1.442695, %v3496_v21  ;;  %v3523_v41 = vmul.f32 %v563_v4, %v3302_v54 }
  0xf4   :  { %v3516_v48 = vmul.f32 %v608_v6, %v3315_v5  ;;  %v3520_v38 = vpop.eup %2855  ;;  %2863 = vpow2.f32 %v2576_v7  ;;  %v2578_v57 = vmul.f32 -1.442695, %v3503_v30  ;;  %v588_v5 = vsel %vm3529_vm14, %v3407_v32, %v584_v31 }
  0xf5   :  { %v613_v27 = vmul.f32 %v3466_v11, %v612_v34  ;;  %v626_v54 = vmul.f32 %v3520_v38, %v3464_v10  ;;  %v2858_v0 = vpop.eup %2857  ;;  %vm590_vm15 = vcmp.eq.f32.partialorder %v589_v47, 8.507059e+37  ;;  %v592_v45 = vor.u32 1.1754944e-38, %v591_v53 }
  0xf6   :  { %5301 = vst [vmem:[#allocation20_spill] sm:$0xff] %v3516_v48  ;;  %772 = vrot.lane.b32.xlu1 %v3516_v48, %s3179_s30  ;;  %vm615_vm0 = vweird.f32 %v3411_v35  ;;  %vm616_vm1 = vweird.f32 %v3466_v11  ;;  %v485_v32 = vadd.f32 1.0, %v2858_v0  ;;  %2865 = vpow2.f32 %v2577_v37 }
  0xf7   :  { %v593_v51 = vsel %vm590_vm15, %v592_v45, %v588_v5  ;;  %v621_v55 = vand.u32 2147483648, %v3411_v35  ;;  %2867 = vpow2.f32 %v2578_v57  ;;  %v614_v60 = vadd.f32 %v3466_v11, %v613_v27  ;;  %vm3553_vm2 = vmor %vm615_vm0, %vm616_vm1 }
  0xf8   :  { %v2860_v46 = vpop.eup %2859  ;;  %v619_v61 = vand.u32 2147483647, %v3411_v35  ;;  %v627_v63 = vsub.f32 1.0, %v626_v54  ;;  %2869 = vrcp.f32 %v485_v32  ;;  %v3560_v3 = vmul.f32 %v593_v51, %v3312_v2 }
  0xf9   :  { %748 = vrot.lane.b32.xlu0 %v3523_v41, %s3179_s30  ;;  %v3549_v58 = vpop.eup %2861  ;;  %v3557_v50 = vadd.f32 1.0, %v2860_v46  ;;  %v622_v26 = vor.u32 1.1754944e-38, %v621_v55  ;;  %v618_v13 = vsel %vm3553_vm2, %v3466_v11, %v614_v60  ;;  %vm630_vm4 = vweird.f32 %v3464_v10 }
  0xfa   :  { %756 = vrot.lane.b32.xlu2 %v3513_v36, %s3179_s30  ;;  %v2864_v42 = vpop.eup %2863  ;;  %v641_v12 = vmul.f32 %v3549_v58, %v3506_v29  ;;  %vm620_vm3 = vcmp.eq.f32.partialorder %v619_v61, 8.507059e+37  ;;  %v628_v15 = vmul.f32 %v3520_v38, %v627_v63  ;;  %vm631_vm5 = vweird.f32 %v3520_v38 }
  0xfb   :  { %v3562_v8 = vadd.f32 1.0, %v2864_v42  ;;  %2871 = vrcp.f32 %v3557_v50  ;;  %v634_v11 = vand.u32 2147483647, %v3464_v10  ;;  %v623_v9 = vsel %vm620_vm3, %v622_v26, %v618_v13  ;;  %vm3587_vm7 = vmor %vm630_vm4, %vm631_vm5 }
  0xfc   :  { %v2866_v35 = vpop.eup %2865  ;;  %v636_v17 = vand.u32 2147483648, %v3464_v10  ;;  %v642_v18 = vsub.f32 1.0, %v641_v12  ;;  %v629_v39 = vadd.f32 %v3520_v38, %v628_v15  ;;  %vm660_vm6 = vweird.f32 %v485_v32 }
  0xfd   :  { %2873 = vrcp.f32 %v3562_v8  ;;  %v2868_v2 = vpop.eup %2867  ;;  %v666_v40 = vand.u32 2147483648, %v485_v32  ;;  %v3583_v19 = vadd.f32 1.0, %v2866_v35  ;;  %v664_v7 = vand.u32 2147483647, %v485_v32 }
  0xfe   :  { %815 = vrot.lane.b32.xlu1 %v3560_v3, %s3189_s4  ;;  %v2870_v16 = vpop.eup %2869  ;;  %v3591_v31 = vadd.f32 1.0, %v2868_v2  ;;  %v3596_v33 = vmul.f32 %v623_v9, %v3326_v24  ;;  %vm3598_vm9 = vcmp.eq.f32.partialorder %v634_v11, 8.507059e+37  ;;  %v637_v47 = vor.u32 1.1754944e-38, %v636_v17 }
  0xff   :  { %v656_v4 = vmul.f32 %v2870_v16, %v485_v32  ;;  %vm661_vm8 = vweird.f32 %v2870_v16  ;;  %2875 = vrcp.f32 %v3583_v19  ;;  %v643_v53 = vmul.f32 %v3549_v58, %v642_v18 }
 0x100   :  { %5308 = vst [vmem:[#allocation21_spill] sm:$0xff] %v3596_v33  ;;  %v633_v43 = vsel %vm3587_vm7, %v3520_v38, %v629_v39  ;;  %vm645_vm10 = vweird.f32 %v3506_v29  ;;  %vm3611_vm11 = vmor %vm660_vm6, %vm661_vm8  ;;  %v667_v57 = vor.u32 1.1754944e-38, %v666_v40  ;;  %vm646_vm12 = vweird.f32 %v3549_v58 }
 0x101   :  { %807 = vrot.lane.b32.xlu0 %v3513_v36, %s3189_s4  ;;  %v3585_v20 = vpop.eup %2871  ;;  %v657_v25 = vsub.f32 1.0, %v656_v4  ;;  %vm665_vm13 = vcmp.eq.f32.partialorder %v664_v7, 8.507059e+37  ;;  %2877 = vrcp.f32 %v3591_v31  ;;  %v649_v38 = vand.u32 2147483647, %v3506_v29  ;;  %vm3634_vm14 = vmor %vm645_vm10, %vm646_vm12 }
 0x102   :  { %799 = vrot.lane.b32.xlu2 %v3523_v41, %s3189_s4  ;;  %v671_v5 = vmul.f32 %v3585_v20, %v3557_v50  ;;  %v651_v54 = vand.u32 2147483648, %v3506_v29  ;;  %v638_v0 = vsel %vm3598_vm9, %v637_v47, %v633_v43  ;;  %v644_v45 = vadd.f32 %v3549_v58, %v643_v53 }
 0x103   :  { %v3593_v10 = vpop.eup %2873  ;;  %v658_v6 = vmul.f32 %v2870_v16, %v657_v25  ;;  %v3642_v42 = vmul.f32 %v638_v0, %v3351_v56  ;;  %vm650_vm15 = vcmp.eq.f32.partialorder %v649_v38, 8.507059e+37  ;;  %vm675_vm0 = vweird.f32 %v3557_v50 }
 0x104   :  { %v686_v37 = vmul.f32 %v3593_v10, %v3562_v8  ;;  %v672_v61 = vsub.f32 1.0, %v671_v5  ;;  %v652_v44 = vor.u32 1.1754944e-38, %v651_v54  ;;  %v648_v12 = vsel %vm3634_vm14, %v3549_v58, %v644_v45 }
 0x105   :  { %v659_v27 = vadd.f32 %v2870_v16, %v658_v6  ;;  %v3630_v51 = vpop.eup %2875  ;;  %5316 = vst [vmem:[#allocation23_spill] sm:$0xff] %v3642_v42  ;;  %v681_v58 = vand.u32 2147483648, %v3557_v50  ;;  %vm690_vm1 = vweird.f32 %v3562_v8  ;;  %vm691_vm2 = vweird.f32 %v3593_v10 }
 0x106   :  { %750 = vrot.lane.b32.xlu1 %v3596_v33, %s3179_s30  ;;  %v687_v46 = vsub.f32 1.0, %v686_v37  ;;  %v701_v35 = vmul.f32 %v3630_v51, %v3583_v19  ;;  %v653_v13 = vsel %vm650_vm15, %v652_v44, %v648_v12  ;;  %v694_v15 = vand.u32 2147483647, %v3562_v8  ;;  %vm3668_vm6 = vmor %vm690_vm1, %vm691_vm2 }
 0x107   :  { %v663_v32 = vsel %vm3611_vm11, %v2870_v16, %v659_v27  ;;  %v2878_v26 = vpop.eup %2877  ;;  %v696_v2 = vand.u32 2147483648, %v3562_v8  ;;  %vm720_vm3 = vweird.f32 %v3591_v31  ;;  %vm676_vm5 = vweird.f32 %v3585_v20 }
 0x108   :  { %v668_v60 = vsel %vm665_vm13, %v667_v57, %v663_v32  ;;  %v688_v29 = vmul.f32 %v3593_v10, %v687_v46  ;;  %v716_v56 = vmul.f32 %v2878_v26, %v3591_v31  ;;  %v702_v9 = vsub.f32 1.0, %v701_v35  ;;  %vm3684_vm8 = vmor %vm675_vm0, %vm676_vm5  ;;  %v3746_v46 = vld [vmem:[#allocation8 + $0x10] sm:$0xff] }
 0x109   :  { %764 = vrot.lane.b32.xlu0 %v3560_v3, %s3179_s30  ;;  %v3639_v63 = vmul.f32 %v668_v60, %v3457_v1  ;;  %v673_v1 = vmul.f32 %v3585_v20, %v672_v61  ;;  %vm721_vm4 = vweird.f32 %v2878_v26  ;;  %v726_v39 = vand.u32 2147483648, %v3591_v31 }
 0x10a   :  { %v717_v16 = vsub.f32 1.0, %v716_v56  ;;  %v689_v11 = vadd.f32 %v3593_v10, %v688_v29  ;;  %v3674_v8 = vmul.f32 %v653_v13, %v3397_v23  ;;  %v724_v40 = vand.u32 2147483647, %v3591_v31  ;;  %vm3678_vm7 = vmor %vm720_vm3, %vm721_vm4  ;;  %v3776_v56 = vld [vmem:[#allocation8 + $0x8] sm:$0xff] }
 0x10b   :  { %5315 = vst [vmem:[#allocation22_spill] sm:$0xff] %v3639_v63  ;;  %774 = vrot.lane.b32.xlu2 %v3639_v63, %s3179_s30  ;;  %v674_v17 = vadd.f32 %v3585_v20, %v673_v1  ;;  %v679_v22 = vand.u32 2147483647, %v3557_v50  ;;  %v697_v25 = vor.u32 1.1754944e-38, %v696_v2  ;;  %vm695_vm9 = vcmp.eq.f32.partialorder %v694_v15, 8.507059e+37 }
 0x10c   :  { %v718_v4 = vmul.f32 %v2878_v26, %v717_v16  ;;  %5319 = vst [vmem:[#allocation24_spill] sm:$0xff] %v3674_v8  ;;  %v693_v23 = vsel %vm3668_vm6, %v3593_v10, %v689_v11  ;;  %v703_v31 = vmul.f32 %v3630_v51, %v702_v9  ;;  %v682_v6 = vor.u32 1.1754944e-38, %v681_v58 }
 0x10d   :  { %v678_v53 = vsel %vm3684_vm8, %v3585_v20, %v674_v17  ;;  %v727_v50 = vor.u32 1.1754944e-38, %v726_v39  ;;  %vm705_vm10 = vweird.f32 %v3583_v19  ;;  %vm706_vm11 = vweird.f32 %v3630_v51  ;;  %v846_v39 = vld [vmem:[#allocation8] sm:$0xff] }
 0x10e   :  { %809 = vrot.lane.b32.xlu1 %v3642_v42, %s3189_s4  ;;  %v719_v7 = vadd.f32 %v2878_v26, %v718_v4  ;;  %vm725_vm12 = vcmp.eq.f32.partialorder %v724_v40, 8.507059e+37  ;;  %vm680_vm13 = vcmp.eq.f32.partialorder %v679_v22, 8.507059e+37  ;;  %v698_v37 = vsel %vm695_vm9, %v697_v25, %v693_v23  ;;  %vm707_vm14 = vmor %vm705_vm10, %vm706_vm11  ;;  %v849_v4 = vld [vmem:[#allocation8 + $0x18] sm:$0xff] }
 0x10f   :  { %v711_v20 = vand.u32 2147483648, %v3583_v19  ;;  %v683_v43 = vsel %vm680_vm13, %v682_v6, %v678_v53  ;;  %v704_v24 = vadd.f32 %v3630_v51, %v703_v31  ;;  %v709_v57 = vand.u32 2147483647, %v3583_v19 }
 0x110   :  { %v723_v10 = vsel %vm3678_vm7, %v2878_v26, %v719_v7  ;;  %v3709_v27 = vmul.f32 %v698_v37, %v3476_v62  ;;  %v3712_v38 = vmul.f32 %v683_v43, %v3473_v14  ;;  %v3752_v55 = vperm.slane %v3746_v46, 1 }
 0x111   :  { %758 = vrot.lane.b32.xlu0 %v3642_v42, %s3179_s30  ;;  %v728_v5 = vsel %vm725_vm12, %v727_v50, %v723_v10  ;;  %v712_v54 = vor.u32 1.1754944e-38, %v711_v20  ;;  %v708_v0 = vsel %vm707_vm14, %v3630_v51, %v704_v24  ;;  %vm710_vm15 = vcmp.eq.f32.partialorder %v709_v57, 8.507059e+37 }
 0x112   :  { %5324 = vst [vmem:[#allocation25_spill] sm:$0xff] %v3709_v27  ;;  %v3716_v45 = vmul.f32 %v728_v5, %v3503_v30  ;;  %v5178_v30 = vlaneseq  ;;  %v3749_v51 = vperm.slane %v3746_v46, 4  ;;  %v3755_v60 = vperm.slane %v3746_v46, 7 }
 0x113   :  { %817 = vrot.lane.b32.xlu2 %v3674_v8, %s3189_s4  ;;  %5325 = vst [vmem:[#allocation26_spill] sm:$0xff] %v3712_v38  ;;  %v713_v62 = vsel %vm710_vm15, %v712_v54, %v708_v0  ;;  %v3759_v61 = vperm.slane %v3746_v46, 3  ;;  %v3762_v44 = vperm.slane %v3746_v46, 0  ;;  %v3765_v26 = vperm.slane %v3746_v46, 6 }
 0x114   :  { %5326 = vst [vmem:[#allocation27_spill] sm:$0xff] %v3716_v45  ;;  %v3725_v14 = vmul.f32 %v713_v62, %v3496_v21  ;;  %v3744_v32 = vand.u32 127, %v5178_v30  ;;  %v941_v29 = vmul.f32 %v3749_v51, %v3439_v49  ;;  %v1033_v35 = vmul.f32 %v3752_v55, %v3439_v49 }
 0x115   :  { %5328 = vst [vmem:[#allocation29_spill] sm:$0xff] %v3749_v51  ;;  %v1198_v58 = vmul.f32 %v3755_v60, %v3439_v49  ;;  %v3790_v17 = vperm.slane %v3776_v56, 4  ;;  %v3793_v18 = vperm.slane %v3776_v56, 3  ;;  %v3796_v49 = vperm.slane %v3776_v56, 1 }
 0x116   :  { %766 = vrot.lane.b32.xlu1 %v3674_v8, %s3179_s30  ;;  %5327 = vst [vmem:[#allocation28_spill] sm:$0xff] %v3725_v14  ;;  %vm780_vm0 = vcmp.lt.s32.totalorder %v3744_v32, 32  ;;  %v3799_v40 = vperm.slane %v3776_v56, 0  ;;  %v3802_v22 = vperm.slane %v3776_v56, 6  ;;  %v3805_v25 = vperm.slane %v3776_v56, 7 }
 0x117   :  { %5329 = vst [vmem:[#allocation30_spill] sm:$0xff] %v3752_v55  ;;  %v940_v47 = vmul.f32 %v3790_v17, %v3354_v59  ;;  %v3811_v31 = vperm.slane %v849_v4, 4  ;;  %v1032_v53 = vmul.f32 %v3796_v49, %v3354_v59  ;;  %v3816_v50 = vperm.slane %v846_v39, 4  ;;  %v3881_v8 = vld [vmem:[#allocation8 + $0x20] ss:$0 sm:$0xff] }
 0x118   :  { %5330 = vst [vmem:[#allocation31_spill] sm:$0xff] %v3755_v60  ;;  %v3818_v10 = vperm.slane %v849_v4, 1  ;;  %v1197_v37 = vmul.f32 %v3805_v25, %v3354_v59  ;;  %v3824_v24 = vperm.slane %v846_v39, 1  ;;  %vm5286_vm1 = vcmp.lt.s32.totalorder %v3744_v32, 96 }
 0x119   :  { %801 = vrot.lane.b32.xlu0 %v3596_v33, %s3189_s4  ;;  %5331 = vst [vmem:[#allocation32_spill] sm:$0xff] %v3759_v61  ;;  %v942_v62 = vmul.f32 %v3811_v31, %v3403_v28  ;;  %v3868_v30 = vperm.slane %v846_v39, 6 }
 0x11a   :  { %5332 = vst [vmem:[#allocation33_spill] sm:$0xff] %v3762_v44  ;;  %v1034_v59 = vmul.f32 %v3818_v10, %v3403_v28 }
 0x11b   :  { %811 = vrot.lane.b32.xlu2 %v3709_v27, %s3189_s4  ;;  %5333 = vst [vmem:[#allocation34_spill] sm:$0xff] %v3765_v26 }
 0x11c   :  { %5334 = vst [vmem:[#allocation35_spill] sm:$0xff] %v3790_v17 }
 0x11d   :  { %5335 = vst [vmem:[#allocation36_spill] sm:$0xff] %v3796_v49 }
 0x11e   :  { %752 = vrot.lane.b32.xlu1 %v3712_v38, %s3179_s30  ;;  %5336 = vst [vmem:[#allocation37_spill] sm:$0xff] %v3802_v22 }
 0x11f   :  { %5337 = vst [vmem:[#allocation38_spill] sm:$0xff] %v3805_v25 }
 0x120   :  { %5338 = vst [vmem:[#allocation39_spill] sm:$0xff] %v3811_v31 }
 0x121   :  { %776 = vrot.lane.b32.xlu0 %v3716_v45, %s3179_s30  ;;  %5339 = vst [vmem:[#allocation40_spill] sm:$0xff] %v3816_v50 }
 0x122   :  { %5340 = vst [vmem:[#allocation41_spill] sm:$0xff] %v3818_v10 }
 0x123   :  { %768 = vrot.lane.b32.xlu2 %v3725_v14, %s3179_s30 }
 0x126   :  { %760 = vrot.lane.b32.xlu1 %v3709_v27, %s3179_s30  ;;  %v3879_v27 = vperm.slane %v3746_v46, 5 }
 0x128   :  { %5351 = vst [vmem:[#allocation52_spill] sm:$0xff] %v3879_v27 }
 0x129   :  { %819 = vrot.lane.b32.xlu0 %v3725_v14, %s3189_s4 }
 0x12b   :  { %823 = vrot.lane.b32.xlu2 %v3516_v48, %s3189_s4 }
 0x12e   :  { %803 = vrot.lane.b32.xlu1 %v3712_v38, %s3189_s4 }
 0x131   :  { %825 = vrot.lane.b32.xlu0 %v3639_v63, %s3189_s4 }
 0x136   :  { %827 = vrot.lane.b32.xlu1 %v3716_v45, %s3189_s4 }
 0x13c   :  { %v755_v21 = vpop.permute.xlu2 %754 }
 0x144   :  { %v3741_v19 = vpop.permute.xlu2 %805 }
 0x14c   :  { %v3767_v12 = vpop.permute.xlu2 %762 }
 0x14d   :  { %v785_v1 = vsel %vm780_vm0, %v755_v21, %v3767_v12 }
 0x14e   :  { %v921_v13 = vmul.f32 %v3759_v61, %v785_v1  ;;  %v1013_v15 = vmul.f32 %v3762_v44, %v785_v1  ;;  %v1178_v2 = vmul.f32 %v3765_v26, %v785_v1  ;;  %v3845_v1 = vperm.slane %v846_v39, 5 }
 0x150   :  { %v3783_v16 = vadd.f32 %v941_v29, %v921_v13  ;;  %v3785_v11 = vadd.f32 %v1033_v35, %v1013_v15  ;;  %v3787_v9 = vadd.f32 %v1198_v58, %v1178_v2  ;;  %v3841_v29 = vperm.slane %v849_v4, 7  ;;  %5343 = vst [vmem:[#allocation44_spill] sm:$0xff] %v3845_v1 }
 0x151   :  { %v939_v35 = vmul.f32 %v3816_v50, %v3348_v52  ;;  %v3847_v58 = vperm.slane %v846_v39, 2  ;;  %v3849_v13 = vperm.slane %v849_v4, 5  ;;  %v1031_v15 = vmul.f32 %v3824_v24, %v3348_v52 }
 0x152   :  { %5342 = vst [vmem:[#allocation43_spill] sm:$0xff] %v3841_v29  ;;  %v1199_v38 = vmul.f32 %v3841_v29, %v3403_v28 }
 0x153   :  { %v798_v7 = vpop.permute.xlu1 %797  ;;  %v747_v34 = vpop.permute.xlu0 %746  ;;  %5344 = vst [vmem:[#allocation45_spill] sm:$0xff] %v3849_v13 }
 0x154   :  { %v789_v23 = vsel %vm780_vm0, %v747_v34, %v755_v21  ;;  %v3826_v57 = vpop.permute.xlu2 %756  ;;  %v3839_v21 = vperm.slane %v846_v39, 7  ;;  %v838_v2 = vsel %vm5286_vm1, %v798_v7, %v3741_v19 }
 0x155   :  { %v920_v6 = vmul.f32 %v3793_v18, %v789_v23  ;;  %v1012_v20 = vmul.f32 %v3799_v40, %v789_v23  ;;  %v1177_v43 = vmul.f32 %v3802_v22, %v789_v23  ;;  %v3858_v23 = vperm.slane %v849_v4, 0 }
 0x156   :  { %v1067_v63 = vmul.f32 %v3847_v58, %v838_v2 }
 0x157   :  { %v3828_v5 = vadd.f32 %v940_v47, %v920_v6  ;;  %v3831_v54 = vadd.f32 %v1032_v53, %v1012_v20  ;;  %v3833_v0 = vadd.f32 %v1197_v37, %v1177_v43  ;;  %v3856_v47 = vperm.slane %v849_v4, 3  ;;  %5346 = vst [vmem:[#allocation47_spill] sm:$0xff] %v3858_v23 }
 0x158   :  { %v3860_v53 = vperm.slane %v849_v4, 6  ;;  %v3862_v6 = vperm.slane %v849_v4, 2  ;;  %v3864_v20 = vperm.slane %v846_v39, 3  ;;  %v3866_v43 = vperm.slane %v846_v39, 0 }
 0x159   :  { %5341 = vst [vmem:[#allocation42_spill] sm:$0xff] %v3828_v5  ;;  %v3870_v5 = vld [vmem:[#allocation8 + $0x38] ss:$0 sm:$0xff]  ;;  %v1196_v4 = vmul.f32 %v3839_v21, %v3348_v52  ;;  %v975_v39 = vmul.f32 %v3845_v1, %v838_v2 }
 0x15a   :  { %5345 = vst [vmem:[#allocation46_spill] sm:$0xff] %v3856_v47 }
 0x15b   :  { %5347 = vst [vmem:[#allocation48_spill] sm:$0xff] %v3860_v53  ;;  %v822_v37 = vpop.permute.xlu1 %821  ;;  %v771_v14 = vpop.permute.xlu0 %770 }
 0x15c   :  { %5348 = vst [vmem:[#allocation49_spill] sm:$0xff] %v3862_v6  ;;  %v842_v45 = vsel %vm5286_vm1, %v822_v37, %v798_v7  ;;  %v781_v7 = vsel %vm780_vm0, %v3767_v12, %v771_v14  ;;  %v793_v28 = vsel %vm780_vm0, %v771_v14, %v747_v34  ;;  %v3898_v60 = vpop.permute.xlu2 %799 }
 0x15d   :  { %5349 = vst [vmem:[#allocation50_spill] sm:$0xff] %v3864_v20  ;;  %v978_v33 = vmul.f32 %v3849_v13, %v842_v45  ;;  %v922_v52 = vmul.f32 %v3856_v47, %v781_v7  ;;  %v1014_v61 = vmul.f32 %v3858_v23, %v781_v7  ;;  %v1179_v26 = vmul.f32 %v3860_v53, %v781_v7 }
 0x15e   :  { %5350 = vst [vmem:[#allocation51_spill] sm:$0xff] %v3870_v5  ;;  %v1070_v44 = vmul.f32 %v3862_v6, %v842_v45  ;;  %v919_v42 = vmul.f32 %v3864_v20, %v793_v28  ;;  %v1011_v29 = vmul.f32 %v3866_v43, %v793_v28  ;;  %v1176_v13 = vmul.f32 %v3868_v30, %v793_v28 }
 0x15f   :  { %v1235_v12 = vmul.f32 %v3870_v5, %v842_v45  ;;  %v958_v10 = vadd.f32 %v942_v62, %v922_v52  ;;  %v1050_v14 = vadd.f32 %v1034_v59, %v1014_v61  ;;  %v1215_v34 = vadd.f32 %v1199_v38, %v1179_v26  ;;  %v3917_v38 = vld [vmem:[#allocation8 + $0x30] ss:$0 sm:$0xff] }
 0x160   :  { %v1232_v47 = vmul.f32 %v3881_v8, %v838_v2  ;;  %v955_v23 = vadd.f32 %v939_v35, %v919_v42  ;;  %v1047_v55 = vadd.f32 %v1031_v15, %v1011_v29  ;;  %v1212_v7 = vadd.f32 %v1196_v4, %v1176_v13  ;;  %5359 = vst [vmem:[#allocation60_spill] sm:$0xff] %v3917_v38  ;;  %v3954_v2 = vld [vmem:[#allocation8 + $0x28] ss:$0 sm:$0xff] }
 0x161   :  { %v3902_v53 = vadd.f32 %v978_v33, %v958_v10  ;;  %v3904_v6 = vadd.f32 %v1070_v44, %v1050_v14  ;;  %v3906_v31 = vadd.f32 %v1235_v12, %v1215_v34  ;;  %v3909_v28 = vperm.slane %v3746_v46, 2 }
 0x162   :  { %v3911_v48 = vadd.f32 %v975_v39, %v955_v23  ;;  %v3913_v45 = vadd.f32 %v1067_v63, %v1047_v55  ;;  %v3915_v61 = vadd.f32 %v1232_v47, %v1212_v7  ;;  %v3938_v29 = vperm.slane %v3776_v56, 2 }
 0x163   :  { %5352 = vst [vmem:[#allocation53_spill] sm:$0xff] %v3902_v53  ;;  %v814_v42 = vpop.permute.xlu0 %813  ;;  %v944_v23 = vmul.f32 %v3790_v17, %v3513_v36  ;;  %v1036_v52 = vmul.f32 %v3796_v49, %v3513_v36  ;;  %v1200_v12 = vmul.f32 %v3839_v21, %v3523_v41  ;;  %v3974_v7 = vperm.slane %v3776_v56, 5 }
 0x164   :  { %5353 = vst [vmem:[#allocation54_spill] sm:$0xff] %v3904_v6  ;;  %v830_v33 = vsel %vm5286_vm1, %v814_v42, %v822_v37  ;;  %v3943_v13 = vsel %vm5286_vm1, %v3741_v19, %v814_v42  ;;  %v943_v19 = vmul.f32 %v3816_v50, %v3523_v41  ;;  %v1035_v37 = vmul.f32 %v3824_v24, %v3523_v41 }
 0x165   :  { %5354 = vst [vmem:[#allocation55_spill] sm:$0xff] %v3906_v31  ;;  %v977_v44 = vmul.f32 %v3879_v27, %v830_v33  ;;  %v1069_v26 = vmul.f32 %v3909_v28, %v830_v33  ;;  %v1234_v10 = vmul.f32 %v3917_v38, %v830_v33  ;;  %v3933_v62 = vpop.permute.xlu2 %774  ;;  %v1068_v47 = vmul.f32 %v3938_v29, %v3943_v13 }
 0x166   :  { %5355 = vst [vmem:[#allocation56_spill] sm:$0xff] %v3909_v28  ;;  %v1201_v33 = vmul.f32 %v3805_v25, %v3513_v36  ;;  %v1233_v41 = vmul.f32 %v3954_v2, %v3943_v13 }
 0x167   :  { %5356 = vst [vmem:[#allocation57_spill] sm:$0xff] %v3911_v48  ;;  %v3925_v46 = vadd.f32 %v977_v44, %v3783_v16  ;;  %v3928_v63 = vadd.f32 %v1069_v26, %v3785_v11  ;;  %v3931_v55 = vadd.f32 %v1234_v10, %v3787_v9  ;;  %v5364_v9 = vlaneseq }
 0x168   :  { %5357 = vst [vmem:[#allocation58_spill] sm:$0xff] %v3913_v45  ;;  %v3935_v59 = vpop.permute.xlu1 %772  ;;  %v3983_v26 = vadd.f32 %v1068_v47, %v3831_v54 }
 0x169   :  { %5358 = vst [vmem:[#allocation59_spill] sm:$0xff] %v3915_v61  ;;  %v3952_v15 = vshrl.u32 %v5364_v9, 7 }
 0x16a   :  { %5360 = vst [vmem:[#allocation61_spill] sm:$0xff] %v3925_v46 }
 0x16b   :  { %5361 = vst [vmem:[#allocation62_spill] sm:$0xff] %v3928_v63  ;;  %v749_v35 = vpop.permute.xlu0 %748  ;;  %vm1115_vm2 = vcmp.lt.s32.totalorder %v3952_v15, 1  ;;  %vm1280_vm3 = vcmp.lt.s32.totalorder %v3952_v15, 7 }
 0x16c   :  { %5362 = vst [vmem:[#allocation63_spill] sm:$0xff] %v3931_v55  ;;  %v794_v16 = vsel %vm780_vm0, %v3935_v59, %v749_v35  ;;  %v790_v11 = vsel %vm780_vm0, %v749_v35, %v3826_v57 }
 0x16d   :  { %5363 = vst [vmem:[#allocation64_spill] sm:$0xff] %v3943_v13  ;;  %v1015_v4 = vmul.f32 %v3866_v43, %v794_v16  ;;  %v3965_v39 = vpop.permute.xlu2 %817  ;;  %v1016_v14 = vmul.f32 %v3799_v40, %v790_v11  ;;  %v1180_v34 = vmul.f32 %v3868_v30, %v794_v16  ;;  %v1181_v44 = vmul.f32 %v3802_v22, %v790_v11 }
 0x16e   :  { %5365 = vst [vmem:[#allocation65_spill] sm:$0xff] %v3965_v39  ;;  %v923_v10 = vmul.f32 %v3864_v20, %v794_v16  ;;  %v924_v35 = vmul.f32 %v3793_v18, %v790_v11 }
 0x16f   :  { %5366 = vst [vmem:[#allocation66_spill] sm:$0xff] %v3983_v26  ;;  %v1051_v9 = vadd.f32 %v1035_v37, %v1015_v4  ;;  %v1052_v47 = vadd.f32 %v1036_v52, %v1016_v14  ;;  %v1216_v53 = vadd.f32 %v1200_v12, %v1180_v34  ;;  %v1217_v48 = vadd.f32 %v1201_v33, %v1181_v44 }
 0x170   :  { %v3976_v42 = vpop.permute.xlu1 %815  ;;  %v4002_v4 = vadd.f32 %v1233_v41, %v3833_v0  ;;  %v5231_v12 = vrot.slane %v3913_v45, 7  ;;  %v959_v14 = vadd.f32 %v943_v19, %v923_v10  ;;  %v5228_v44 = vrot.slane %v3983_v26, 7  ;;  %v5384_v45 = vld [vmem:[#allocation47_spill] sm:$0xff] }
 0x172   :  { %5367 = vst [vmem:[#allocation67_spill] sm:$0xff] %v4002_v4 }
 0x173   :  { %v808_v56 = vpop.permute.xlu0 %807 }
 0x174   :  { %v835_v36 = vsel %vm5286_vm1, %v808_v56, %v3976_v42  ;;  %v839_v54 = vsel %vm5286_vm1, %v3898_v60, %v808_v56  ;;  %v960_v56 = vadd.f32 %v944_v23, %v924_v35 }
 0x175   :  { %v1071_v46 = vmul.f32 %v3847_v58, %v839_v54  ;;  %v1072_v16 = vmul.f32 %v3938_v29, %v835_v36  ;;  %v979_v13 = vmul.f32 %v3845_v1, %v839_v54  ;;  %v1236_v11 = vmul.f32 %v3881_v8, %v839_v54  ;;  %v4015_v54 = vpop.permute.xlu2 %811 }
 0x176   :  { %v1237_v37 = vmul.f32 %v3954_v2, %v835_v36  ;;  %v980_v50 = vmul.f32 %v3974_v7, %v835_v36  ;;  %5370 = vst [vmem:[#allocation70_spill] sm:$0xff] %v4015_v54 }
 0x177   :  { %v4005_v20 = vadd.f32 %v1071_v46, %v1051_v9  ;;  %v4007_v52 = vadd.f32 %v1072_v16, %v1052_v47  ;;  %v4010_v34 = vadd.f32 %v1236_v11, %v1216_v53  ;;  %v5230_v46 = vrot.slane %v3915_v61, 1  ;;  %v5383_v61 = vld [vmem:[#allocation33_spill] sm:$0xff] }
 0x178   :  { %v4012_v33 = vadd.f32 %v1237_v37, %v1217_v48  ;;  %v4020_v9 = vpop.permute.xlu1 %750  ;;  %v995_v36 = vadd.f32 %v979_v13, %v959_v14  ;;  %v5229_v48 = vrot.slane %v4002_v4, 1  ;;  %v996_v10 = vadd.f32 %v980_v50, %v960_v56  ;;  %v5375_v56 = vld [vmem:[#allocation20_spill] sm:$0xff] }
 0x179   :  { %5368 = vst [vmem:[#allocation68_spill] sm:$0xff] %v4005_v20  ;;  %v5233_v0 = vrot.slane %v4005_v20, 7  ;;  %v5235_v41 = vrot.slane %v4007_v52, 7  ;;  %v5232_v19 = vrot.slane %v4010_v34, 1  ;;  %v945_v14 = vmul.f32 %v3749_v51, %v3560_v3  ;;  %v5387_v20 = vld [vmem:[#allocation32_spill] sm:$0xff] }
 0x17a   :  { %5369 = vst [vmem:[#allocation69_spill] sm:$0xff] %v4010_v34  ;;  %v5234_v53 = vrot.slane %v4012_v33, 1 }
 0x17b   :  { %v1124_v23 = vsel %vm1115_vm2, %v5231_v12, %v5233_v0  ;;  %v1125_v13 = vsel %vm1115_vm2, %v5228_v44, %v5235_v41  ;;  %v765_v35 = vpop.permute.xlu0 %764  ;;  %v4047_v50 = vsel %vm1280_vm3, %v5230_v46, %v5232_v19  ;;  %v5378_v12 = vld [vmem:[#allocation41_spill] sm:$0xff]  ;;  %v5379_v0 = vld [vmem:[#allocation31_spill] sm:$0xff]  ;;  %v857_v41 = vadd.s32 16, %v3952_v15 }
 0x17c   :  { %v4037_v47 = vadd.f32 %v1124_v23, %v995_v36  ;;  %v4039_v16 = vadd.f32 %v1125_v13, %v996_v10  ;;  %5372 = vst [vmem:[#allocation72_spill] sm:$0xff] %v4047_v50  ;;  %v4055_v11 = vsel %vm1280_vm3, %v5229_v48, %v5234_v53  ;;  %v5376_v36 = vld [vmem:[#allocation39_spill] sm:$0xff]  ;;  %v782_v23 = vsel %vm780_vm0, %v765_v35, %v3935_v59  ;;  %v5377_v48 = vld [vmem:[#allocation30_spill] sm:$0xff] }
 0x17d   :  { %5373 = vst [vmem:[#allocation73_spill] sm:$0xff] %v4055_v11  ;;  %v4057_v37 = vpop.permute.xlu2 %768  ;;  %v946_v10 = vmul.f32 %v5376_v36, %v5375_v56  ;;  %v786_v13 = vsel %vm780_vm0, %v3826_v57, %v765_v35  ;;  %v1037_v46 = vmul.f32 %v5377_v48, %v3560_v3  ;;  %v1038_v19 = vmul.f32 %v5378_v12, %v5375_v56  ;;  %v5381_v59 = vld [vmem:[#allocation43_spill] sm:$0xff] }
 0x17e   :  { %5371 = vst [vmem:[#allocation71_spill] sm:$0xff] %v4037_v47  ;;  %v1202_v53 = vmul.f32 %v5379_v0, %v3560_v3  ;;  %v1203_v11 = vmul.f32 %v5381_v59, %v5375_v56  ;;  %v4083_v57 = vadd.s32 8, %v3952_v15  ;;  %v5382_v35 = vld [vmem:[#allocation23_spill] sm:$0xff]  ;;  %v1017_v3 = vmul.f32 %v5383_v61, %v786_v13  ;;  %v5386_v0 = vld [vmem:[#allocation48_spill] sm:$0xff]  ;;  %v5388_v59 = vld [vmem:[#allocation46_spill] sm:$0xff] }
 0x17f   :  { %5374 = vst [vmem:[#allocation74_spill] sm:$0xff] %v4057_v37  ;;  %v948_v26 = vmul.f32 %v3790_v17, %v5382_v35  ;;  %v1018_v54 = vmul.f32 %v5384_v45, %v782_v23  ;;  %v5385_v37 = vld [vmem:[#allocation34_spill] sm:$0xff]  ;;  %v1040_v56 = vmul.f32 %v3796_v49, %v5382_v35  ;;  %v1183_v17 = vmul.f32 %v5386_v0, %v782_v23 }
 0x180   :  { %v4069_v44 = vpop.permute.xlu1 %809  ;;  %v1182_v47 = vmul.f32 %v5385_v37, %v786_v13  ;;  %v1205_v48 = vmul.f32 %v3805_v25, %v5382_v35  ;;  %v877_v45 = vand.u32 15, %v857_v41  ;;  %v925_v51 = vmul.f32 %v5387_v20, %v786_v13 }
 0x181   :  { %v836_v61 = vsel %vm5286_vm1, %v4069_v44, %v3965_v39  ;;  %v870_v0 = vand.u32 15, %v4083_v57  ;;  %v926_v35 = vmul.f32 %v5388_v59, %v782_v23  ;;  %v1053_v25 = vadd.f32 %v1037_v46, %v1017_v3  ;;  %v5389_v57 = vld [vmem:[#allocation49_spill] sm:$0xff] }
 0x182   :  { %v1054_v12 = vadd.f32 %v1038_v19, %v1018_v54  ;;  %v1218_v36 = vadd.f32 %v1202_v53, %v1182_v47  ;;  %v1076_v41 = vmul.f32 %v3938_v29, %v836_v61  ;;  %v1219_v39 = vadd.f32 %v1203_v11, %v1183_v17  ;;  %v5393_v53 = vld [vmem:[#allocation45_spill] sm:$0xff] }
 0x183   :  { %v4078_v4 = vpop.permute.xlu0 %758  ;;  %vm4121_vm4 = vcmp.eq.s32.totalorder %v877_v45, 0  ;;  %v5390_v46 = vmov 0  ;;  %vm4188_vm5 = vcmp.eq.s32.totalorder %v870_v0, 15 }
 0x184   :  { %5380 = vst [vmem:[#allocation20_spill] sm:$0xff] %v4078_v4  ;;  %v791_v50 = vsel %vm780_vm0, %v4020_v9, %v4078_v4  ;;  %v5391_v46 = vsel %vm4121_vm4, 4294967295, %v5390_v46 }
 0x185   :  { %v1020_v37 = vmul.f32 %v3799_v40, %v791_v50  ;;  %v1185_v4 = vmul.f32 %v3802_v22, %v791_v50  ;;  %v824_v1 = vpop.permute.xlu2 %823  ;;  %5392 = vst [vmem:[#allocation23_spill] sm:$0xff] %v5391_v46  ;;  %v928_v3 = vmul.f32 %v3793_v18, %v791_v50 }
 0x186   :  { %v831_v22 = vsel %vm5286_vm1, %v3976_v42, %v824_v1  ;;  %v843_v34 = vsel %vm5286_vm1, %v824_v1, %v3898_v60  ;;  %v1241_v60 = vmul.f32 %v3954_v2, %v836_v61 }
 0x187   :  { %v1073_v13 = vmul.f32 %v3909_v28, %v831_v22  ;;  %v1074_v49 = vmul.f32 %v5389_v57, %v843_v34  ;;  %v1056_v54 = vadd.f32 %v1040_v56, %v1020_v37  ;;  %v1221_v19 = vadd.f32 %v1205_v48, %v1185_v4  ;;  %v5451_v28 = vld [vmem:[#allocation74_spill] sm:$0xff] }
 0x188   :  { %v981_v17 = vmul.f32 %v3879_v27, %v831_v22  ;;  %v982_v47 = vmul.f32 %v5393_v53, %v843_v34  ;;  %v1238_v42 = vmul.f32 %v3917_v38, %v831_v22  ;;  %v1239_v11 = vmul.f32 %v3870_v5, %v843_v34  ;;  %v4134_v45 = vpop.permute.xlu1 %766 }
 0x189   :  { %v4130_v1 = vadd.f32 %v1073_v13, %v1053_v25  ;;  %v4132_v23 = vadd.f32 %v1074_v49, %v1054_v12  ;;  %v961_v37 = vadd.f32 %v945_v14, %v925_v51  ;;  %v962_v4 = vadd.f32 %v946_v10, %v926_v35  ;;  %v4165_v35 = vld [vmem:[#allocation10] sm:$0xf] }
 0x18a   :  { %v4137_v48 = vadd.f32 %v1238_v42, %v1218_v36  ;;  %v4139_v56 = vadd.f32 %v1239_v11, %v1219_v39  ;;  %v4143_v5 = vadd.f32 %v1076_v41, %v1056_v54  ;;  %v4145_v25 = vadd.f32 %v1241_v60, %v1221_v19  ;;  %5400 = vst [vmem:[#allocation77_spill] sm:$0xff] %v4165_v35 }
 0x18b   :  { %5394 = vst [vmem:[#allocation32_spill] sm:$0xff] %v4130_v1  ;;  %v5258_v22 = vrot.slane %v4130_v1, 7  ;;  %v5257_v34 = vrot.slane %v4132_v23, 7  ;;  %v997_v49 = vadd.f32 %v981_v17, %v961_v37  ;;  %v998_v12 = vadd.f32 %v982_v47, %v962_v4 }
 0x18c   :  { %5395 = vst [vmem:[#allocation46_spill] sm:$0xff] %v4132_v23  ;;  %v5256_v13 = vrot.slane %v4137_v48, 1  ;;  %v5255_v50 = vrot.slane %v4139_v56, 1  ;;  %v795_v51 = vsel %vm780_vm0, %v3933_v62, %v4020_v9  ;;  %v5398_v39 = vrot.slane %v3928_v63, 7  ;;  %v5425_v23 = vld [vmem:[#allocation31_spill] sm:$0xff] }
 0x18d   :  { %5396 = vst [vmem:[#allocation75_spill] sm:$0xff] %v4137_v48  ;;  %v5399_v36 = vrot.slane %v3904_v6, 7  ;;  %v964_v41 = vadd.f32 %v948_v26, %v928_v3  ;;  %v5403_v19 = vrot.slane %v3931_v55, 1  ;;  %v5405_v47 = vrot.slane %v3906_v31, 1  ;;  %v5427_v31 = vld [vmem:[#allocation35_spill] sm:$0xff]  ;;  %v5431_v55 = vld [vmem:[#allocation69_spill] sm:$0xff] }
 0x18e   :  { %5397 = vst [vmem:[#allocation76_spill] sm:$0xff] %v4139_v56  ;;  %v1126_v14 = vsel %vm1115_vm2, %v5398_v39, %v5258_v22  ;;  %v984_v26 = vmul.f32 %v3974_v7, %v836_v61  ;;  %v5407_v11 = vmov 0  ;;  %v5260_v60 = vrot.slane %v4143_v5, 7 }
 0x18f   :  { %v1127_v10 = vsel %vm1115_vm2, %v5399_v36, %v5257_v34  ;;  %v4167_v54 = vadd.f32 %v1126_v14, %v997_v49  ;;  %v4177_v17 = vsel %vm1280_vm3, %v5403_v19, %v5256_v13  ;;  %v4185_v42 = vsel %vm1280_vm3, %v5405_v47, %v5255_v50  ;;  %v5412_v36 = vld [vmem:[#allocation21_spill] sm:$0xff] }
 0x190   :  { %v4169_v9 = vadd.f32 %v1127_v10, %v998_v12  ;;  %5404 = vst [vmem:[#allocation80_spill] sm:$0xff] %v4177_v17  ;;  %v5408_v11 = vsel %vm4188_vm5, 4294967295, %v5407_v11  ;;  %v5259_v3 = vrot.slane %v4145_v25, 1  ;;  %v1019_v37 = vmul.f32 %v3866_v43, %v795_v51 }
 0x191   :  { %5401 = vst [vmem:[#allocation78_spill] sm:$0xff] %v4167_v54  ;;  %v4196_v4 = vperm.slane %v4165_v35, 1  ;;  %v1184_v49 = vmul.f32 %v3868_v30, %v795_v51  ;;  %v1000_v12 = vadd.f32 %v984_v26, %v964_v41  ;;  %v5410_v61 = vrot.slane %v4007_v52, 7 }
 0x192   :  { %5402 = vst [vmem:[#allocation79_spill] sm:$0xff] %v4169_v9  ;;  %v5411_v39 = vrot.slane %v4012_v33, 1  ;;  %v1039_v10 = vmul.f32 %v3824_v24, %v5412_v36  ;;  %v1204_v52 = vmul.f32 %v3839_v21, %v5412_v36  ;;  %v753_v33 = vpop.permute.xlu1 %752  ;;  %v5421_v9 = vld [vmem:[#allocation43_spill] sm:$0xff]  ;;  %v5432_v6 = vrot.slane %v5431_v55, 1 }
 0x193   :  { %5406 = vst [vmem:[#allocation81_spill] sm:$0xff] %v4185_v42  ;;  %v1121_v0 = vsel %vm1115_vm2, %v5410_v61, %v5260_v60  ;;  %v4222_v61 = vpop.permute.xlu0 %801  ;;  %v783_v55 = vsel %vm780_vm0, %v4134_v45, %v3933_v62 }
 0x194   :  { %5409 = vst [vmem:[#allocation82_spill] sm:$0xff] %v5408_v11  ;;  %v1286_v14 = vsel %vm1280_vm3, %v5411_v39, %v5259_v3  ;;  %v1149_v41 = vsel %vm4121_vm4, 0.0, %v1121_v0  ;;  %v5414_v39 = vld [vmem:[#allocation50_spill] sm:$0xff]  ;;  %v1055_v13 = vadd.f32 %v1039_v10, %v1019_v37  ;;  %v840_v0 = vsel %vm5286_vm1, %v4222_v61, %v4069_v44 }
 0x195   :  { %v1310_v19 = vsel %vm4188_vm5, 0.0, %v1286_v14  ;;  %v4219_v47 = vadd.f32 %v1149_v41, %v1000_v12  ;;  %5413 = vst [vmem:[#allocation21_spill] sm:$0xff] %v4222_v61  ;;  %v927_v50 = vmul.f32 %v5414_v39, %v795_v51  ;;  %v1220_v34 = vadd.f32 %v1204_v52, %v1184_v49  ;;  %v5417_v51 = vld [vmem:[#allocation44_spill] sm:$0xff]  ;;  %v5418_v44 = vld [vmem:[#allocation22_spill] sm:$0xff]  ;;  %v5419_v49 = vld [vmem:[#allocation39_spill] sm:$0xff] }
 0x196   :  { %v1326_v26 = vadd.f32 %v1310_v19, %v4039_v16  ;;  %v1075_v12 = vmul.f32 %v3847_v58, %v840_v0  ;;  %v1240_v41 = vmul.f32 %v3881_v8, %v840_v0  ;;  %v5416_v16 = vld [vmem:[#allocation40_spill] sm:$0xff]  ;;  %v983_v37 = vmul.f32 %v5417_v51, %v840_v0  ;;  %v5426_v61 = vld [vmem:[#allocation25_spill] sm:$0xff]  ;;  %v5438_v11 = vld [vmem:[#allocation38_spill] sm:$0xff] }
 0x197   :  { %v947_v19 = vmul.f32 %v5416_v16, %v5412_v36  ;;  %v950_v52 = vmul.f32 %v5419_v49, %v5418_v44  ;;  %v1207_v54 = vmul.f32 %v5421_v9, %v5418_v44  ;;  %v5422_v0 = vld [vmem:[#allocation24_spill] sm:$0xff]  ;;  %v4258_v42 = vmul.f32 %v5427_v31, %v5426_v61 }
 0x198   :  { %v4230_v14 = vadd.f32 %v4196_v4, %v1326_v26  ;;  %v4238_v10 = vadd.f32 %v1075_v12, %v1055_v13  ;;  %v4240_v3 = vadd.f32 %v1240_v41, %v1220_v34  ;;  %v5420_v26 = vld [vmem:[#allocation41_spill] sm:$0xff]  ;;  %v5424_v34 = vld [vmem:[#allocation30_spill] sm:$0xff]  ;;  %v1206_v1 = vmul.f32 %v5425_v23, %v5422_v0 }
 0x199   :  { %v1042_v60 = vmul.f32 %v5420_v26, %v5418_v44  ;;  %v963_v56 = vadd.f32 %v947_v19, %v927_v50  ;;  %v5423_v13 = vld [vmem:[#allocation29_spill] sm:$0xff]  ;;  %v1041_v41 = vmul.f32 %v5424_v34, %v5422_v0  ;;  %v4261_v50 = vperm.slane %v4165_v35, 0  ;;  %v5428_v19 = vld [vmem:[#allocation68_spill] sm:$0xff]  ;;  %v5443_v35 = vld [vmem:[#allocation27_spill] sm:$0xff] }
 0x19a   :  { %5415 = vst [vmem:[#allocation50_spill] sm:$0xff] %v4230_v14  ;;  %v2584_v22 = vmul.f32 -1.442695, %v4230_v14  ;;  %v5270_v36 = vrot.slane %v4238_v10, 7  ;;  %v949_v12 = vmul.f32 %v5423_v13, %v5422_v0  ;;  %v5429_v44 = vrot.slane %v5428_v19, 7  ;;  %v5435_v19 = vld [vmem:[#allocation36_spill] sm:$0xff] }
 0x19b   :  { %v5430_v17 = vrot.slane %v4240_v3, 1  ;;  %v4304_v46 = vmul.f32 %v5438_v11, %v5426_v61 }
 0x19c   :  { %2879 = vpow2.f32 %v2584_v22  ;;  %v999_v22 = vadd.f32 %v983_v37, %v963_v56  ;;  %v1120_v48 = vsel %vm1115_vm2, %v5429_v44, %v5270_v36  ;;  %v5433_v37 = vld [vmem:[#allocation28_spill] sm:$0xff]  ;;  %v4285_v44 = vmul.f32 %v5435_v19, %v5426_v61  ;;  %v761_v36 = vpop.permute.xlu1 %760  ;;  %v777_v61 = vpop.permute.xlu0 %776 }
 0x19d   :  { %v1285_v0 = vsel %vm1280_vm3, %v5432_v6, %v5430_v17  ;;  %v1148_v31 = vsel %vm4121_vm4, 0.0, %v1120_v48  ;;  %v4281_v63 = vmul.f32 %v5423_v13, %v5433_v37  ;;  %v5436_v17 = vld [vmem:[#allocation71_spill] sm:$0xff]  ;;  %v5437_v13 = vld [vmem:[#allocation20_spill] sm:$0xff]  ;;  %v4308_v62 = vmul.f32 %v5425_v23, %v5433_v37 }
 0x19e   :  { %v1309_v56 = vsel %vm4188_vm5, 0.0, %v1285_v0  ;;  %v4291_v6 = vadd.f32 %v1148_v31, %v999_v22  ;;  %v4296_v0 = vmul.f32 %v5424_v34, %v5433_v37  ;;  %v787_v19 = vsel %vm780_vm0, %v5437_v13, %v4134_v45  ;;  %v5440_v22 = vld [vmem:[#allocation26_spill] sm:$0xff]  ;;  %v5441_v34 = vld [vmem:[#allocation64_spill] sm:$0xff]  ;;  %v5445_v37 = vld [vmem:[#allocation47_spill] sm:$0xff] }
 0x19f   :  { %5434 = vst [vmem:[#allocation40_spill] sm:$0xff] %v4281_v63  ;;  %v1325_v48 = vadd.f32 %v1309_v56, %v5436_v17  ;;  %v951_v31 = vmul.f32 %v5416_v16, %v5440_v22  ;;  %v976_v17 = vmul.f32 %v3974_v7, %v5441_v34  ;;  %v4319_v45 = vmul.f32 %v5419_v49, %v5443_v35  ;;  %v5446_v16 = vld [vmem:[#allocation48_spill] sm:$0xff] }
 0x1a0   :  { %5439 = vst [vmem:[#allocation44_spill] sm:$0xff] %v4308_v62  ;;  %v1043_v11 = vmul.f32 %v3824_v24, %v5440_v22  ;;  %v930_v23 = vmul.f32 %v5388_v59, %v783_v55  ;;  %v1022_v13 = vmul.f32 %v5445_v37, %v783_v55  ;;  %v1187_v62 = vmul.f32 %v5446_v16, %v783_v55  ;;  %v5449_v24 = vld [vmem:[#allocation34_spill] sm:$0xff] }
 0x1a1   :  { %v4315_v38 = vadd.f32 %v4261_v50, %v1325_v48  ;;  %5444 = vst [vmem:[#allocation39_spill] sm:$0xff] %v4319_v45  ;;  %v929_v34 = vmul.f32 %v5387_v20, %v787_v19  ;;  %v5447_v48 = vld [vmem:[#allocation33_spill] sm:$0xff]  ;;  %v4333_v49 = vmul.f32 %v5420_v26, %v5443_v35  ;;  %v1186_v45 = vmul.f32 %v5449_v24, %v787_v19 }
 0x1a2   :  { %v2880_v56 = vpop.eup %2879  ;;  %v1021_v53 = vmul.f32 %v5447_v48, %v787_v19  ;;  %v792_v27 = vsel %vm780_vm0, %v753_v33, %v761_v36  ;;  %v796_v55 = vsel %vm780_vm0, %v777_v61, %v753_v33  ;;  %v4348_v26 = vmul.f32 %v5421_v9, %v5443_v35 }
 0x1a3   :  { %5442 = vst [vmem:[#allocation22_spill] sm:$0xff] %v4315_v38  ;;  %v4326_v14 = vadd.f32 1.0, %v2880_v56  ;;  %v2583_v63 = vmul.f32 -1.442695, %v4315_v38  ;;  %v5450_v56 = vld [vmem:[#allocation42_spill] sm:$0xff]  ;;  %v1208_v38 = vmul.f32 %v3839_v21, %v5440_v22  ;;  %v4350_v19 = vadd.f32 %v950_v52, %v930_v23 }
 0x1a4   :  { %5448 = vst [vmem:[#allocation41_spill] sm:$0xff] %v4333_v49  ;;  %v4342_v16 = vadd.f32 %v976_v17, %v5450_v56  ;;  %v4352_v49 = vadd.f32 %v1042_v60, %v1022_v13  ;;  %v4354_v57 = vadd.f32 %v1207_v54, %v1187_v62  ;;  %v788_v33 = vsel %vm780_vm0, %v761_v36, %v5451_v28  ;;  %v4364_v35 = vpop.permute.xlu1 %803 }
 0x1a5   :  { %2881 = vrcp.f32 %v4326_v14  ;;  %v4359_v17 = vadd.f32 %v949_v12, %v929_v34  ;;  %v1023_v21 = vmul.f32 %v3866_v43, %v796_v55  ;;  %v858_v22 = vadd.s32 24, %v3952_v15 }
 0x1a6   :  { %2883 = vpow2.f32 %v2583_v63  ;;  %v932_v63 = vmul.f32 %v3793_v18, %v792_v27  ;;  %v4366_v9 = vadd.f32 %v1041_v41, %v1021_v53  ;;  %v4368_v60 = vadd.f32 %v1206_v1, %v1186_v45  ;;  %v5452_v1 = vld [vmem:[#allocation37_spill] sm:$0xff]  ;;  %v5453_v45 = vld [vmem:[#allocation70_spill] sm:$0xff] }
 0x1a7   :  { %v4373_v54 = vsel %vm780_vm0, %v5451_v28, %v777_v61  ;;  %v863_v52 = vand.u32 15, %v3952_v15  ;;  %v4377_v36 = vmul.f32 %v5387_v20, %v788_v33  ;;  %v1024_v18 = vmul.f32 %v3799_v40, %v792_v27 }
 0x1a8   :  { %v1025_v43 = vmul.f32 %v5447_v48, %v788_v33  ;;  %v1188_v12 = vmul.f32 %v3868_v30, %v796_v55  ;;  %v1189_v41 = vmul.f32 %v5452_v1, %v792_v27  ;;  %v4386_v62 = vmul.f32 %v5449_v24, %v788_v33  ;;  %v4401_v24 = vpop.permute.xlu0 %819 }
 0x1a9   :  { %v931_v28 = vmul.f32 %v5414_v39, %v796_v55  ;;  %v841_v20 = vsel %vm5286_vm1, %v4364_v35, %v5453_v45  ;;  %v968_v40 = vadd.f32 %v4258_v42, %v932_v63  ;;  %v1059_v23 = vadd.f32 %v1043_v11, %v1023_v21 }
 0x1aa   :  { %v884_v13 = vand.u32 15, %v858_v22  ;;  %v1079_v30 = vmul.f32 %v3847_v58, %v841_v20  ;;  %v987_v48 = vmul.f32 %v5417_v51, %v841_v20  ;;  %v1244_v39 = vmul.f32 %v3881_v8, %v841_v20 }
 0x1ab   :  { %v4382_v53 = vpop.eup %2881  ;;  %v1060_v55 = vadd.f32 %v4285_v44, %v1024_v18  ;;  %v1224_v56 = vadd.f32 %v1208_v38, %v1188_v12  ;;  %v837_v58 = vsel %vm5286_vm1, %v5453_v45, %v4401_v24  ;;  %v1511_v42 = vand.u32 2147483647, %v4326_v14 }
 0x1ac   :  { %v2884_v61 = vpop.eup %2883  ;;  %v1503_v27 = vmul.f32 %v4382_v53, %v4326_v14  ;;  %v1095_v33 = vadd.f32 %v1079_v30, %v1059_v23  ;;  %v1513_v11 = vand.u32 2147483648, %v4326_v14  ;;  %v967_v51 = vadd.f32 %v951_v31, %v931_v28  ;;  %v5459_v31 = vld [vmem:[#allocation58_spill] sm:$0xff] }
 0x1ad   :  { %v4397_v34 = vadd.f32 1.0, %v2884_v61  ;;  %v4412_v8 = vadd.f32 %v4296_v0, %v1025_v43  ;;  %vm4414_vm6 = vcmp.eq.s32.totalorder %v863_v52, 0  ;;  %v1260_v44 = vadd.f32 %v1244_v39, %v1224_v56  ;;  %v5463_v39 = vld [vmem:[#allocation59_spill] sm:$0xff] }
 0x1ae   :  { %v1111_v38 = vrot.slane %v1095_v33, 7  ;;  %v1504_v21 = vsub.f32 1.0, %v1503_v27  ;;  %vm4418_vm7 = vcmp.eq.s32.totalorder %v884_v13, 15  ;;  %v1003_v18 = vadd.f32 %v987_v48, %v967_v51 }
 0x1af   :  { %2885 = vrcp.f32 %v4397_v34  ;;  %v1080_v12 = vmul.f32 %v3938_v29, %v837_v58  ;;  %v5458_v1 = vrot.slane %v4238_v10, 7  ;;  %v5460_v52 = vrot.slane %v5459_v31, 7  ;;  %v5461_v10 = vld [vmem:[#allocation57_spill] sm:$0xff] }
 0x1b0   :  { %v1276_v28 = vrot.slane %v1260_v44, 1  ;;  %v988_v45 = vmul.f32 %v3974_v7, %v837_v58  ;;  %v1225_v20 = vadd.f32 %v4304_v46, %v1189_v41  ;;  %v4435_v13 = vor.u32 1.1754944e-38, %v1513_v11 }
 0x1b1   :  { %v1116_v0 = vsel %vm1115_vm2, %v5458_v1, %v1111_v38  ;;  %v1128_v43 = vsel %vm1115_vm2, %v1111_v38, %v5460_v52  ;;  %v1096_v29 = vadd.f32 %v1080_v12, %v1060_v55  ;;  %v5462_v27 = vrot.slane %v4240_v3, 1  ;;  %v5465_v38 = vld [vmem:[#allocation72_spill] sm:$0xff] }
 0x1b2   :  { %v1140_v61 = vsel %vm4414_vm6, 0.0, %v1128_v43  ;;  %v1168_v23 = vadd.f32 %v1116_v0, %v1003_v18  ;;  %v5464_v56 = vrot.slane %v5463_v39, 1  ;;  %v1245_v11 = vmul.f32 %v3954_v2, %v837_v58  ;;  %v5467_v2 = vld [vmem:[#allocation66_spill] sm:$0xff] }
 0x1b3   :  { %v1156_v30 = vadd.f32 %v1140_v61, %v5461_v10  ;;  %v1281_v48 = vsel %vm1280_vm3, %v5462_v27, %v1276_v28  ;;  %v1112_v33 = vrot.slane %v1096_v29, 7  ;;  %v1505_v3 = vmul.f32 %v4382_v53, %v1504_v21 }
 0x1b4   :  { %v1293_v7 = vsel %vm1280_vm3, %v1276_v28, %v5464_v56  ;;  %v1329_v55 = vadd.f32 %v1281_v48, %v4291_v6  ;;  %vm1507_vm8 = vweird.f32 %v4326_v14  ;;  %v1004_v18 = vadd.f32 %v988_v45, %v968_v40 }
 0x1b5   :  { %v4446_v46 = vpop.eup %2885  ;;  %v1317_v41 = vsel %vm4418_vm7, 0.0, %v1293_v7  ;;  %v1321_v44 = vadd.f32 %v5465_v38, %v1156_v30  ;;  %v5466_v0 = vrot.slane %v4143_v5, 7  ;;  %v5468_v58 = vrot.slane %v5467_v2, 7  ;;  %v5473_v7 = vld [vmem:[#allocation67_spill] sm:$0xff] }
 0x1b6   :  { %v1488_v51 = vmul.f32 %v4446_v46, %v4397_v34  ;;  %v1333_v12 = vadd.f32 %v1317_v41, %v1168_v23  ;;  %v4458_v1 = vadd.f32 %v4261_v50, %v1329_v55  ;;  %v1261_v61 = vadd.f32 %v1245_v11, %v1225_v20 }
 0x1b7   :  { %v1117_v6 = vsel %vm1115_vm2, %v5466_v0, %v1112_v33  ;;  %v1129_v21 = vsel %vm1115_vm2, %v1112_v33, %v5468_v58  ;;  %v4469_v52 = vadd.f32 %v4261_v50, %v1321_v44  ;;  %vm4478_vm9 = vcmp.eq.f32.partialorder %v1511_v42, 8.507059e+37  ;;  %v828_v42 = vpop.permute.xlu1 %827  ;;  %v5478_v58 = vld [vmem:[#allocation49_spill] sm:$0xff] }
 0x1b8   :  { %v1489_v31 = vsub.f32 1.0, %v1488_v51  ;;  %v1141_v40 = vsel %vm4414_vm6, 0.0, %v1129_v21  ;;  %v1169_v43 = vadd.f32 %v1117_v6, %v1004_v18  ;;  %v4474_v28 = vadd.f32 %v4261_v50, %v1333_v12  ;;  %v5477_v6 = vld [vmem:[#allocation56_spill] sm:$0xff] }
 0x1b9   :  { %v2587_v5 = vmul.f32 -1.442695, %v4458_v1  ;;  %v1157_v45 = vadd.f32 %v1141_v40, %v4342_v16  ;;  %v934_v10 = vmul.f32 %v5388_v59, %v4373_v54  ;;  %v1026_v30 = vmul.f32 %v5445_v37, %v4373_v54  ;;  %v5471_v16 = vld [vmem:[#allocation73_spill] sm:$0xff] }
 0x1ba   :  { %v1490_v29 = vmul.f32 %v4446_v46, %v1489_v31  ;;  %v2579_v50 = vmul.f32 -1.442695, %v4469_v52  ;;  %v2591_v27 = vmul.f32 -1.442695, %v4474_v28  ;;  %v1277_v48 = vrot.slane %v1261_v61, 1 }
 0x1bb   :  { %2887 = vpow2.f32 %v2587_v5  ;;  %v1322_v20 = vadd.f32 %v5471_v16, %v1157_v45  ;;  %v1506_v39 = vadd.f32 %v4382_v53, %v1505_v3  ;;  %vm1508_vm10 = vweird.f32 %v4382_v53  ;;  %v5482_v5 = vld [vmem:[#allocation48_spill] sm:$0xff] }
 0x1bc   :  { %v1498_v56 = vand.u32 2147483648, %v4397_v34  ;;  %2889 = vpow2.f32 %v2579_v50  ;;  %v5472_v59 = vrot.slane %v4145_v25, 1  ;;  %v5474_v41 = vrot.slane %v5473_v7, 1  ;;  %vm4515_vm11 = vmor %vm1507_vm8, %vm1508_vm10  ;;  %v5486_v7 = vld [vmem:[#allocation50_spill] sm:$0xff] }
 0x1bd   :  { %2891 = vpow2.f32 %v2591_v27  ;;  %v4502_v33 = vadd.f32 %v4196_v4, %v1322_v20  ;;  %v833_v25 = vsel %vm5286_vm1, %v4401_v24, %v828_v42  ;;  %v845_v51 = vsel %vm5286_vm1, %v828_v42, %v4364_v35  ;;  %v5484_v42 = vld [vmem:[#allocation40_spill] sm:$0xff] }
 0x1be   :  { %v1282_v37 = vsel %vm1280_vm3, %v5472_v59, %v1277_v48  ;;  %v1294_v55 = vsel %vm1280_vm3, %v1277_v48, %v5474_v41  ;;  %v1491_v44 = vadd.f32 %v4446_v46, %v1490_v29  ;;  %vm1493_vm12 = vweird.f32 %v4446_v46  ;;  %v5483_v48 = vld [vmem:[#allocation52_spill] sm:$0xff] }
 0x1bf   :  { %v1318_v11 = vsel %vm4418_vm7, 0.0, %v1294_v55  ;;  %v1330_v3 = vadd.f32 %v1282_v37, %v4219_v47  ;;  %v2580_v47 = vmul.f32 -1.442695, %v4502_v33  ;;  %v1510_v24 = vsel %vm4515_vm11, %v4382_v53, %v1506_v39 }
 0x1c0   :  { %v1334_v18 = vadd.f32 %v1318_v11, %v1169_v43  ;;  %vm1492_vm13 = vweird.f32 %v4397_v34  ;;  %v1496_v35 = vand.u32 2147483647, %v4397_v34  ;;  %v1081_v2 = vmul.f32 %v5477_v6, %v833_v25  ;;  %v5481_v43 = vld [vmem:[#allocation41_spill] sm:$0xff]  ;;  %v5488_v11 = vld [vmem:[#allocation39_spill] sm:$0xff] }
 0x1c1   :  { %v4528_v14 = vadd.f32 %v4196_v4, %v1330_v3  ;;  %v2888_v12 = vpop.eup %2887  ;;  %2893 = vpow2.f32 %v2580_v47  ;;  %v1082_v21 = vmul.f32 %v5478_v58, %v845_v51  ;;  %vm4535_vm14 = vmor %vm1492_vm13, %vm1493_vm12  ;;  %v1499_v53 = vor.u32 1.1754944e-38, %v1498_v56  ;;  %v5485_v56 = vld [vmem:[#allocation45_spill] sm:$0xff]  ;;  %v5489_v47 = vld [vmem:[#allocation22_spill] sm:$0xff] }
 0x1c2   :  { %v4531_v0 = vadd.f32 %v4196_v4, %v1334_v18  ;;  %v2890_v31 = vpop.eup %2889  ;;  %v1062_v34 = vadd.f32 %v5481_v43, %v1026_v30  ;;  %v1191_v45 = vmul.f32 %v5482_v5, %v4373_v54  ;;  %v4542_v61 = vadd.f32 1.0, %v2888_v12  ;;  %v5492_v43 = vld [vmem:[#allocation62_spill] sm:$0xff] }
 0x1c3   :  { %v2892_v4 = vpop.eup %2891  ;;  %v1515_v29 = vsel %vm4478_vm9, %v4435_v13, %v1510_v24  ;;  %v1495_v50 = vsel %vm4535_vm14, %v4446_v46, %v1491_v44  ;;  %v4550_v27 = vadd.f32 1.0, %v2890_v31  ;;  %v989_v16 = vmul.f32 %v5483_v48, %v833_v25 }
 0x1c4   :  { %v4553_v20 = vadd.f32 1.0, %v2892_v4  ;;  %2895 = vrcp.f32 %v4542_v61  ;;  %v2588_v54 = vmul.f32 -1.442695, %v4528_v14  ;;  %v4558_v30 = vadd.f32 %v1081_v2, %v4412_v8  ;;  %v5487_v8 = vld [vmem:[#allocation44_spill] sm:$0xff] }
 0x1c5   :  { %vm1497_vm15 = vcmp.eq.f32.partialorder %v1496_v35, 8.507059e+37  ;;  %2897 = vrcp.f32 %v4550_v27  ;;  %v2592_v13 = vmul.f32 -1.442695, %v4531_v0  ;;  %v4562_v23 = vadd.f32 %v1082_v21, %v1062_v34  ;;  %v5490_v35 = vld [vmem:[#allocation77_spill] sm:$0xff]  ;;  %v5491_v21 = vld [vmem:[#allocation60_spill] sm:$0xff] }
 0x1c6   :  { %v1500_v46 = vsel %vm1497_vm15, %v1499_v53, %v1495_v50  ;;  %v969_v39 = vadd.f32 %v5484_v42, %v4377_v36  ;;  %2899 = vrcp.f32 %v4553_v20  ;;  %v990_v59 = vmul.f32 %v5485_v56, %v845_v51 }
 0x1c7   :  { %v2894_v37 = vpop.eup %2893  ;;  %v4569_v41 = vmul.f32 %v1515_v29, %v5486_v7  ;;  %v1226_v55 = vadd.f32 %v5487_v8, %v4386_v62  ;;  %v970_v3 = vadd.f32 %v5488_v11, %v934_v10  ;;  %v1227_v38 = vadd.f32 %v4348_v26, %v1191_v45  ;;  %v5494_v45 = vld [vmem:[#allocation54_spill] sm:$0xff]  ;;  %v5497_v11 = vld [vmem:[#allocation61_spill] sm:$0xff] }
 0x1c8   :  { %2901 = vpow2.f32 %v2588_v54  ;;  %v4575_v44 = vadd.f32 1.0, %v2894_v37  ;;  %v4577_v18 = vadd.f32 %v989_v16, %v969_v39  ;;  %v1113_v36 = vrot.slane %v4558_v30, 7 }
 0x1c9   :  { %v4581_v24 = vmul.f32 %v1500_v46, %v5489_v47  ;;  %2903 = vpow2.f32 %v2592_v13  ;;  %v4584_v12 = vperm.slane %v5490_v35, 2  ;;  %v1114_v62 = vrot.slane %v4562_v23, 7 }
 0x1ca   :  { %v4587_v2 = vpop.eup %2895  ;;  %2905 = vrcp.f32 %v4575_v44  ;;  %v4591_v26 = vperm.slane %v5490_v35, 3  ;;  %v4593_v10 = vadd.f32 %v990_v59, %v970_v3  ;;  %v1246_v31 = vmul.f32 %v5491_v21, %v833_v25  ;;  %v5496_v25 = vld [vmem:[#allocation51_spill] sm:$0xff] }
 0x1cb   :  { %v4596_v40 = vpop.eup %2897  ;;  %v1548_v53 = vmul.f32 %v4587_v2, %v4542_v61  ;;  %v5493_v34 = vrot.slane %v5492_v43, 7  ;;  %v5495_v4 = vrot.slane %v5494_v45, 7  ;;  %v1247_v50 = vmul.f32 %v5496_v25, %v845_v51 }
 0x1cc   :  { %v4613_v16 = vpop.eup %2899  ;;  %v1428_v54 = vmul.f32 %v4596_v40, %v4550_v27  ;;  %vm1432_vm0 = vweird.f32 %v4550_v27  ;;  %vm1552_vm8 = vweird.f32 %v4542_v61  ;;  %v1556_v13 = vand.u32 2147483647, %v4542_v61 }
 0x1cd   :  { %v1130_v5 = vsel %vm1115_vm2, %v1113_v36, %v5493_v34  ;;  %v1131_v29 = vsel %vm1115_vm2, %v1114_v62, %v5495_v4  ;;  %v1436_v46 = vand.u32 2147483647, %v4550_v27  ;;  %v1549_v42 = vsub.f32 1.0, %v1548_v53  ;;  %v5498_v34 = vld [vmem:[#allocation53_spill] sm:$0xff] }
 0x1ce   :  { %v1608_v39 = vmul.f32 %v4613_v16, %v4553_v20  ;;  %v1142_v51 = vsel %vm4414_vm6, 0.0, %v1130_v5  ;;  %v2902_v59 = vpop.eup %2901  ;;  %v1429_v37 = vsub.f32 1.0, %v1428_v54  ;;  %v1438_v7 = vand.u32 2147483648, %v4550_v27  ;;  %v5511_v27 = vld [vmem:[#allocation55_spill] sm:$0xff] }
 0x1cf   :  { %v1143_v8 = vsel %vm4414_vm6, 0.0, %v1131_v29  ;;  %v1158_v3 = vadd.f32 %v1142_v51, %v5497_v11  ;;  %v2904_v47 = vpop.eup %2903  ;;  %v1550_v35 = vmul.f32 %v4587_v2, %v1549_v42  ;;  %v4630_v53 = vadd.f32 1.0, %v2902_v59 }
 0x1d0   :  { %v1609_v43 = vsub.f32 1.0, %v1608_v39  ;;  %v1159_v45 = vadd.f32 %v1143_v8, %v5498_v34  ;;  %v4633_v4 = vpop.eup %2905  ;;  %v1430_v5 = vmul.f32 %v4596_v40, %v1429_v37  ;;  %vm1553_vm9 = vweird.f32 %v4587_v2 }
 0x1d1   :  { %v4637_v25 = vadd.f32 1.0, %v2904_v47  ;;  %v4639_v63 = vadd.f32 %v1246_v31, %v1226_v55  ;;  %v1551_v29 = vadd.f32 %v4587_v2, %v1550_v35  ;;  %v1558_v54 = vand.u32 2147483648, %v4542_v61  ;;  %vm4652_vm10 = vmor %vm1552_vm8, %vm1553_vm9 }
 0x1d2   :  { %v1610_v42 = vmul.f32 %v4613_v16, %v1609_v43  ;;  %v1443_v39 = vmul.f32 %v4633_v4, %v4575_v44  ;;  %v1431_v51 = vadd.f32 %v4596_v40, %v1430_v5  ;;  %vm1433_vm6 = vweird.f32 %v4596_v40 }
 0x1d3   :  { %v1616_v59 = vand.u32 2147483647, %v4553_v20  ;;  %2907 = vrcp.f32 %v4630_v53  ;;  %vm1613_vm11 = vweird.f32 %v4613_v16  ;;  %v1618_v37 = vand.u32 2147483648, %v4553_v20  ;;  %vm4668_vm12 = vmor %vm1432_vm0, %vm1433_vm6 }
 0x1d4   :  { %v1611_v31 = vadd.f32 %v4613_v16, %v1610_v42  ;;  %v1444_v8 = vsub.f32 1.0, %v1443_v39  ;;  %v1555_v11 = vsel %vm4652_vm10, %v4587_v2, %v1551_v29  ;;  %2909 = vrcp.f32 %v4637_v25  ;;  %v5507_v29 = vld [vmem:[#allocation63_spill] sm:$0xff]  ;;  %v5509_v39 = vld [vmem:[#allocation80_spill] sm:$0xff] }
 0x1d5   :  { %v4663_v47 = vadd.f32 %v1247_v50, %v1227_v38  ;;  %v1278_v61 = vrot.slane %v4639_v63, 1  ;;  %vm1557_vm13 = vcmp.eq.f32.partialorder %v1556_v13, 8.507059e+37  ;;  %v1559_v43 = vor.u32 1.1754944e-38, %v1558_v54 }
 0x1d6   :  { %vm1612_vm14 = vweird.f32 %v4553_v20  ;;  %v1453_v34 = vand.u32 2147483648, %v4575_v44  ;;  %v1435_v2 = vsel %vm4668_vm12, %v4596_v40, %v1431_v51  ;;  %vm1437_vm15 = vcmp.eq.f32.partialorder %v1436_v46, 8.507059e+37 }
 0x1d7   :  { %v1439_v38 = vor.u32 1.1754944e-38, %v1438_v7  ;;  %vm4679_vm8 = vmor %vm1612_vm14, %vm1613_vm11  ;;  %vm4683_vm0 = vcmp.eq.f32.partialorder %v1616_v59, 8.507059e+37  ;;  %v1560_v13 = vsel %vm1557_vm13, %v1559_v43, %v1555_v11  ;;  %v1619_v5 = vor.u32 1.1754944e-38, %v1618_v37 }
 0x1d8   :  { %v1615_v20 = vsel %vm4679_vm8, %v4613_v16, %v1611_v31  ;;  %v1445_v40 = vmul.f32 %v4633_v4, %v1444_v8  ;;  %vm1447_vm9 = vweird.f32 %v4575_v44  ;;  %v5285_v7 = vrot.slane %v4663_v47, 1  ;;  %v5510_v16 = vld [vmem:[#allocation81_spill] sm:$0xff] }
 0x1d9   :  { %v4691_v46 = vpop.eup %2907  ;;  %v5508_v54 = vrot.slane %v5507_v29, 1  ;;  %v1323_v51 = vadd.f32 %v5509_v39, %v1158_v3  ;;  %v1324_v59 = vadd.f32 %v5510_v16, %v1159_v45  ;;  %v1440_v55 = vsel %vm1437_vm15, %v1439_v38, %v1435_v2  ;;  %v826_v45 = vpop.permute.xlu0 %825 }
 0x1da   :  { %v1451_v31 = vand.u32 2147483647, %v4575_v44  ;;  %v4706_v37 = vor.u32 1.1754944e-38, %v1453_v34  ;;  %v1563_v8 = vmul.f32 %v4691_v46, %v4630_v53  ;;  %v2910_v11 = vpop.eup %2909  ;;  %vm1448_vm6 = vweird.f32 %v4633_v4 }
 0x1db   :  { %v4701_v42 = vsel %vm1280_vm3, %v1278_v61, %v5508_v54  ;;  %v1571_v35 = vand.u32 2147483647, %v4630_v53  ;;  %v1573_v43 = vand.u32 2147483648, %v4630_v53  ;;  %v5512_v29 = vrot.slane %v5511_v27, 1  ;;  %v5514_v27 = vld [vmem:[#allocation21_spill] sm:$0xff]  ;;  %vm4766_vm15 = vmor %vm1447_vm9, %vm1448_vm6 }
 0x1dc   :  { %v4723_v34 = vsel %vm4683_vm0, %v1619_v5, %v1615_v20  ;;  %v4726_v2 = vmul.f32 %v1560_v13, %v4458_v1  ;;  %v1564_v38 = vsub.f32 1.0, %v1563_v8  ;;  %vm1567_vm10 = vweird.f32 %v4630_v53  ;;  %v5513_v5 = vld [vmem:[#allocation65_spill] sm:$0xff] }
 0x1dd   :  { %v4719_v3 = vsel %vm1280_vm3, %v5285_v7, %v5512_v29  ;;  %v1623_v54 = vmul.f32 %v2910_v11, %v4637_v25  ;;  %v4731_v39 = vmul.f32 %v1440_v55, %v4469_v52  ;;  %v4734_v16 = vadd.f32 %v4633_v4, %v1445_v40 }
 0x1de   :  { %vm1627_vm11 = vweird.f32 %v4637_v25  ;;  %v4738_v50 = vadd.f32 %v4584_v12, %v1323_v51  ;;  %v1565_v20 = vmul.f32 %v4691_v46, %v1564_v38  ;;  %v4742_v13 = vadd.f32 %v4591_v26, %v1324_v59 }
 0x1df   :  { %v1624_v1 = vsub.f32 1.0, %v1623_v54  ;;  %v832_v8 = vsel %vm5286_vm1, %v5513_v5, %v826_v45  ;;  %v1631_v52 = vand.u32 2147483647, %v4637_v25  ;;  %v1633_v40 = vand.u32 2147483648, %v4637_v25 }
 0x1e0   :  { %v2581_v55 = vmul.f32 -1.442695, %v4738_v50  ;;  %v844_v51 = vsel %vm5286_vm1, %v826_v45, %v5514_v27  ;;  %vm1568_vm12 = vweird.f32 %v4691_v46  ;;  %vm1628_vm13 = vweird.f32 %v2910_v11 }
 0x1e1   :  { %v1625_v29 = vmul.f32 %v2910_v11, %v1624_v1  ;;  %v2582_v59 = vmul.f32 -1.442695, %v4742_v13  ;;  %vm4755_vm14 = vcmp.eq.f32.partialorder %v1571_v35, 8.507059e+37  ;;  %v985_v54 = vmul.f32 %v5483_v48, %v832_v8  ;;  %vm4774_vm8 = vmor %vm1627_vm11, %vm1628_vm13 }
 0x1e2   :  { %2911 = vpow2.f32 %v2581_v55  ;;  %v1077_v5 = vmul.f32 %v5477_v6, %v832_v8  ;;  %v1078_v7 = vmul.f32 %v5478_v58, %v844_v51  ;;  %v1566_v35 = vadd.f32 %v4691_v46, %v1565_v20  ;;  %vm4795_vm9 = vmor %vm1567_vm10, %vm1568_vm12 }
 0x1e3   :  { %v1626_v1 = vadd.f32 %v2910_v11, %v1625_v29  ;;  %2913 = vpow2.f32 %v2582_v59  ;;  %v986_v55 = vmul.f32 %v5485_v56, %v844_v51  ;;  %v1574_v27 = vor.u32 1.1754944e-38, %v1573_v43  ;;  %v2967_v29 = vld [vmem:[#allocation8 + $0x38] ss:$0 sm:$0xff] }
 0x1e4   :  { %v1093_v58 = vadd.f32 %v1077_v5, %v4366_v9  ;;  %v1094_v48 = vadd.f32 %v1078_v7, %v4352_v49  ;;  %v1242_v44 = vmul.f32 %v5491_v21, %v832_v8  ;;  %v1450_v20 = vsel %vm4766_vm15, %v4633_v4, %v4734_v16 }
 0x1e5   :  { %vm4785_vm0 = vcmp.eq.f32.partialorder %v1451_v31, 8.507059e+37  ;;  %v1630_v25 = vsel %vm4774_vm8, %v2910_v11, %v1626_v1  ;;  %v1634_v43 = vor.u32 1.1754944e-38, %v1633_v40  ;;  %v1243_v59 = vmul.f32 %v2967_v29, %v844_v51  ;;  %v5527_v51 = vld [vmem:[#allocation46_spill] sm:$0xff]  ;;  %v5534_v29 = vld [vmem:[#allocation76_spill] sm:$0xff] }
 0x1e6   :  { %vm1632_vm6 = vcmp.eq.f32.partialorder %v1631_v52, 8.507059e+37  ;;  %v1001_v9 = vadd.f32 %v985_v54, %v4359_v17  ;;  %v1109_v21 = vrot.slane %v1093_v58, 7  ;;  %v1110_v4 = vrot.slane %v1094_v48, 7  ;;  %v5525_v52 = vld [vmem:[#allocation32_spill] sm:$0xff] }
 0x1e7   :  { %v1570_v7 = vsel %vm4795_vm9, %v4691_v46, %v1566_v35  ;;  %v1635_v31 = vsel %vm1632_vm6, %v1634_v43, %v1630_v25  ;;  %v1002_v11 = vadd.f32 %v986_v55, %v4350_v19  ;;  %v1258_v16 = vadd.f32 %v1242_v44, %v4368_v60 }
 0x1e8   :  { %v2912_v8 = vpop.eup %2911  ;;  %v1118_v53 = vsel %vm1115_vm2, %v1109_v21, %v1113_v36  ;;  %v1119_v17 = vsel %vm1115_vm2, %v1110_v4, %v1114_v62  ;;  %v5526_v40 = vrot.slane %v5525_v52, 7  ;;  %v5528_v19 = vrot.slane %v5527_v51, 7 }
 0x1e9   :  { %v2914_v54 = vpop.eup %2913  ;;  %v4821_v30 = vadd.f32 1.0, %v2912_v8  ;;  %v1259_v62 = vadd.f32 %v1243_v59, %v4354_v57  ;;  %v1170_v55 = vadd.f32 %v1118_v53, %v4577_v18  ;;  %v1575_v6 = vsel %vm4755_vm14, %v1574_v27, %v1570_v7 }
 0x1ea   :  { %v1122_v46 = vsel %vm1115_vm2, %v5526_v40, %v1109_v21  ;;  %v1123_v60 = vsel %vm1115_vm2, %v5528_v19, %v1110_v4  ;;  %v4828_v45 = vadd.f32 1.0, %v2914_v54  ;;  %v1171_v58 = vadd.f32 %v1119_v17, %v4593_v10  ;;  %v5530_v10 = vld [vmem:[#allocation75_spill] sm:$0xff] }
 0x1eb   :  { %v1150_v36 = vsel %vm4121_vm4, 0.0, %v1122_v46  ;;  %v1151_v23 = vsel %vm4121_vm4, 0.0, %v1123_v60  ;;  %2915 = vrcp.f32 %v4821_v30  ;;  %v1274_v48 = vrot.slane %v1258_v16, 1 }
 0x1ec   :  { %v1166_v35 = vadd.f32 %v1150_v36, %v1001_v9  ;;  %v1167_v1 = vadd.f32 %v1151_v23, %v1002_v11  ;;  %v4837_v44 = vmul.f32 %v4723_v34, %v4474_v28  ;;  %v1319_v57 = vsel %vm4418_vm7, 0.0, %v4701_v42  ;;  %v5536_v9 = vld [vmem:[#allocation78_spill] sm:$0xff] }
 0x1ed   :  { %v1320_v18 = vsel %vm4418_vm7, 0.0, %v4719_v3  ;;  %2917 = vrcp.f32 %v4828_v45  ;;  %v4847_v38 = vmul.f32 %v1635_v31, %v4531_v0  ;;  %v1275_v27 = vrot.slane %v1259_v62, 1  ;;  %v5537_v31 = vld [vmem:[#allocation79_spill] sm:$0xff] }
 0x1ee   :  { %v1283_v28 = vsel %vm1280_vm3, %v1274_v48, %v1278_v61  ;;  %v5531_v34 = vrot.slane %v5530_v10, 1  ;;  %v1455_v22 = vsel %vm4785_vm0, %v4706_v37, %v1450_v20  ;;  %v4861_v3 = vmul.f32 %v1575_v6, %v4528_v14 }
 0x1ef   :  { %v1331_v43 = vadd.f32 %v1283_v28, %v1166_v35  ;;  %v5533_v63 = vrot.slane %v4663_v47, 1  ;;  %v5535_v59 = vrot.slane %v5534_v29, 1  ;;  %v1335_v37 = vadd.f32 %v1319_v57, %v1170_v55 }
 0x1f0   :  { %v1287_v42 = vsel %vm1280_vm3, %v5531_v34, %v1274_v48  ;;  %v1336_v21 = vadd.f32 %v1320_v18, %v1171_v58  ;;  %v1718_v7 = vadd.f32 %v4847_v38, %v4861_v3  ;;  %v4900_v46 = vmul.f32 %v1455_v22, %v4502_v33 }
 0x1f1   :  { %v1311_v25 = vsel %vm4188_vm5, 0.0, %v1287_v42  ;;  %v1284_v61 = vsel %vm1280_vm3, %v1275_v27, %v5533_v63  ;;  %v1288_v49 = vsel %vm1280_vm3, %v5535_v59, %v1275_v27  ;;  %v4877_v4 = vadd.f32 %v4584_v12, %v1331_v43  ;;  %v4879_v47 = vpop.eup %2915 }
 0x1f2   :  { %v1327_v56 = vadd.f32 %v1311_v25, %v5536_v9  ;;  %v1312_v14 = vsel %vm4188_vm5, 0.0, %v1288_v49  ;;  %v1332_v20 = vadd.f32 %v1284_v61, %v1167_v1  ;;  %v4888_v16 = vadd.f32 %v4584_v12, %v1335_v37 }
 0x1f3   :  { %v1328_v11 = vadd.f32 %v1312_v14, %v5537_v31  ;;  %v2918_v8 = vpop.eup %2917  ;;  %v4894_v17 = vadd.f32 %v4591_v26, %v1336_v21  ;;  %v2589_v52 = vmul.f32 -1.442695, %v4877_v4  ;;  %v1458_v40 = vmul.f32 %v4879_v47, %v4821_v30 }
 0x1f4   :  { %v4885_v15 = vadd.f32 %v4584_v12, %v1327_v56  ;;  %v4891_v53 = vadd.f32 %v4591_v26, %v1332_v20  ;;  %v1473_v51 = vmul.f32 %v2918_v8, %v4828_v45  ;;  %v2593_v54 = vmul.f32 -1.442695, %v4888_v16 }
 0x1f5   :  { %v4904_v12 = vadd.f32 %v4591_v26, %v1328_v11  ;;  %2919 = vpow2.f32 %v2589_v52  ;;  %v2594_v5 = vmul.f32 -1.442695, %v4894_v17  ;;  %v1459_v33 = vsub.f32 1.0, %v1458_v40 }
 0x1f6   :  { %v2585_v19 = vmul.f32 -1.442695, %v4885_v15  ;;  %v2590_v60 = vmul.f32 -1.442695, %v4891_v53  ;;  %v1474_v36 = vsub.f32 1.0, %v1473_v51  ;;  %v4913_v62 = vadd.f32 %v4837_v44, %v4726_v2 }
 0x1f7   :  { %v2586_v23 = vmul.f32 -1.442695, %v4904_v12  ;;  %v1719_v26 = vrot.slane %v1718_v7, 4  ;;  %v1481_v35 = vand.u32 2147483647, %v4828_v45  ;;  %vm1478_vm2 = vweird.f32 %v2918_v8 }
 0x1f8   :  { %2921 = vpow2.f32 %v2585_v19  ;;  %v1475_v1 = vmul.f32 %v2918_v8, %v1474_v36  ;;  %v1460_v55 = vmul.f32 %v4879_v47, %v1459_v33  ;;  %v1690_v6 = vadd.f32 %v4569_v41, %v4900_v46 }
 0x1f9   :  { %2923 = vpow2.f32 %v2590_v60  ;;  %vm1477_vm3 = vweird.f32 %v4828_v45  ;;  %v1483_v58 = vand.u32 2147483648, %v4828_v45  ;;  %v1466_v57 = vand.u32 2147483647, %v4821_v30 }
 0x1fa   :  { %2925 = vpow2.f32 %v2586_v23  ;;  %v1476_v48 = vadd.f32 %v2918_v8, %v1475_v1  ;;  %v1683_v18 = vadd.f32 %v4581_v24, %v4731_v39  ;;  %v1712_v28 = vrot.slane %v4913_v62, 4  ;;  %vm4927_vm4 = vmor %vm1477_vm3, %vm1478_vm2 }
 0x1fb   :  { %2927 = vpow2.f32 %v2593_v54  ;;  %v2920_v27 = vpop.eup %2919  ;;  %v4925_v10 = vadd.f32 %v1719_v26, %v1718_v7  ;;  %v1461_v42 = vadd.f32 %v4879_v47, %v1460_v55  ;;  %vm1463_vm5 = vweird.f32 %v4879_v47 }
 0x1fc   :  { %2929 = vpow2.f32 %v2594_v5  ;;  %v1480_v22 = vsel %vm4927_vm4, %v2918_v8, %v1476_v48  ;;  %vm1482_vm7 = vcmp.eq.f32.partialorder %v1481_v35, 8.507059e+37  ;;  %v4935_v0 = vadd.f32 1.0, %v2920_v27 }
 0x1fd   :  { %v1468_v25 = vand.u32 2147483648, %v4821_v30  ;;  %v1484_v63 = vor.u32 1.1754944e-38, %v1483_v58  ;;  %vm1462_vm10 = vweird.f32 %v4821_v30  ;;  %v1691_v29 = vrot.slane %v1690_v6, 4 }
 0x1fe   :  { %v2922_v45 = vpop.eup %2921  ;;  %2931 = vrcp.f32 %v4935_v0  ;;  %vm4944_vm11 = vmor %vm1462_vm10, %vm1463_vm5  ;;  %vm4948_vm12 = vcmp.eq.f32.partialorder %v1466_v57, 8.507059e+37  ;;  %v1684_v37 = vrot.slane %v1683_v18, 4  ;;  %v1588_v11 = vand.u32 2147483648, %v4935_v0 }
 0x1ff   :  { %v2924_v43 = vpop.eup %2923  ;;  %v4938_v61 = vadd.f32 1.0, %v2922_v45  ;;  %v1485_v20 = vsel %vm1482_vm7, %v1484_v63, %v1480_v22  ;;  %v1465_v30 = vsel %vm4944_vm11, %v4879_v47, %v1461_v42  ;;  %v1469_v8 = vor.u32 1.1754944e-38, %v1468_v25 }
 0x200   :  { %v2926_v59 = vpop.eup %2925  ;;  %v4941_v49 = vadd.f32 1.0, %v2924_v43  ;;  %v1586_v40 = vand.u32 2147483647, %v4935_v0  ;;  %v4966_v51 = vadd.f32 %v1691_v29, %v1690_v6  ;;  %v4969_v19 = vmul.f32 %v1485_v20, %v4742_v13 }
 0x201   :  { %v2928_v14 = vpop.eup %2927  ;;  %v4952_v21 = vadd.f32 1.0, %v2926_v59  ;;  %2933 = vrcp.f32 %v4938_v61  ;;  %v4974_v60 = vsel %vm4948_vm12, %v1469_v8, %v1465_v30  ;;  %v4976_v54 = vadd.f32 %v1684_v37, %v1683_v18 }
 0x202   :  { %v2930_v7 = vpop.eup %2929  ;;  %v4958_v31 = vadd.f32 1.0, %v2928_v14  ;;  %2935 = vrcp.f32 %v4941_v49  ;;  %vm1582_vm13 = vweird.f32 %v4935_v0  ;;  %v1601_v36 = vand.u32 2147483647, %v4941_v49 }
 0x203   :  { %v4962_v52 = vadd.f32 1.0, %v2930_v7  ;;  %2937 = vrcp.f32 %v4952_v21  ;;  %v1543_v47 = vand.u32 2147483648, %v4952_v21  ;;  %v1541_v5 = vand.u32 2147483647, %v4952_v21 }
 0x204   :  { %v1603_v23 = vand.u32 2147483648, %v4941_v49  ;;  %2939 = vrcp.f32 %v4958_v31  ;;  %v2932_v13 = vpop.eup %2931  ;;  %v1589_v26 = vor.u32 1.1754944e-38, %v1588_v11  ;;  %vm4988_vm15 = vcmp.eq.f32.partialorder %v1586_v40, 8.507059e+37 }
 0x205   :  { %v4983_v33 = vor.u32 1.1754944e-38, %v1543_v47  ;;  %2941 = vrcp.f32 %v4962_v52  ;;  %v1663_v35 = vand.u32 2147483648, %v4962_v52  ;;  %v1578_v55 = vmul.f32 %v2932_v13, %v4935_v0 }
 0x206   :  { %vm1583_vm14 = vweird.f32 %v2932_v13  ;;  %vm1597_vm8 = vweird.f32 %v4941_v49  ;;  %v1604_v58 = vor.u32 1.1754944e-38, %v1603_v23  ;;  %v1661_v48 = vand.u32 2147483647, %v4962_v52 }
 0x207   :  { %v2934_v1 = vpop.eup %2933  ;;  %v4995_v18 = vor.u32 1.1754944e-38, %v1663_v35  ;;  %vm1522_vm9 = vweird.f32 %v4938_v61  ;;  %v1579_v42 = vsub.f32 1.0, %v1578_v55  ;;  %vm5000_vm3 = vcmp.eq.f32.partialorder %v1601_v36, 8.507059e+37  ;;  %vm1584_vm7 = vmor %vm1582_vm13, %vm1583_vm14 }
 0x208   :  { %v2936_v57 = vpop.eup %2935  ;;  %v1518_v27 = vmul.f32 %v2934_v1, %v4938_v61  ;;  %vm1523_vm6 = vweird.f32 %v2934_v1  ;;  %v1526_v25 = vand.u32 2147483647, %v4938_v61  ;;  %vm5006_vm5 = vcmp.eq.f32.partialorder %v1541_v5, 8.507059e+37 }
 0x209   :  { %v2938_v34 = vpop.eup %2937  ;;  %v1593_v45 = vmul.f32 %v2936_v57, %v4941_v49  ;;  %vm1598_vm2 = vweird.f32 %v2936_v57  ;;  %v1528_v59 = vand.u32 2147483648, %v4938_v61  ;;  %v1580_v56 = vmul.f32 %v2932_v13, %v1579_v42  ;;  %vm1524_vm0 = vmor %vm1522_vm9, %vm1523_vm6 }
 0x20a   :  { %v1533_v43 = vmul.f32 %v2938_v34, %v4952_v21  ;;  %vm1538_vm4 = vweird.f32 %v2938_v34  ;;  %v1519_v29 = vsub.f32 1.0, %v1518_v27  ;;  %v2940_v9 = vpop.eup %2939  ;;  %vm5012_vm10 = vcmp.eq.f32.partialorder %v1526_v25, 8.507059e+37  ;;  %vm1599_vm13 = vmor %vm1597_vm8, %vm1598_vm2 }
 0x20b   :  { %v1594_v37 = vsub.f32 1.0, %v1593_v45  ;;  %v2942_v20 = vpop.eup %2941  ;;  %v1529_v11 = vor.u32 1.1754944e-38, %v1528_v59  ;;  %v1638_v8 = vmul.f32 %v2940_v9, %v4958_v31  ;;  %v1581_v40 = vadd.f32 %v2932_v13, %v1580_v56 }
 0x20c   :  { %v1534_v30 = vsub.f32 1.0, %v1533_v43  ;;  %v1520_v7 = vmul.f32 %v2934_v1, %v1519_v29  ;;  %v1653_v5 = vmul.f32 %v2942_v20, %v4962_v52  ;;  %vm1658_vm12 = vweird.f32 %v2942_v20 }
 0x20d   :  { %v1595_v47 = vmul.f32 %v2936_v57, %v1594_v37  ;;  %vm5019_vm1 = vcmp.eq.f32.partialorder %v1661_v48, 8.507059e+37  ;;  %v1639_v55 = vsub.f32 1.0, %v1638_v8  ;;  %vm1643_vm11 = vweird.f32 %v2940_v9 }
 0x20e   :  { %v1535_v23 = vmul.f32 %v2938_v34, %v1534_v30  ;;  %v1521_v35 = vadd.f32 %v2934_v1, %v1520_v7  ;;  %v1585_v27 = vsel %vm1584_vm7, %v2932_v13, %v1581_v40  ;;  %v1654_v45 = vsub.f32 1.0, %v1653_v5 }
 0x20f   :  { %v1596_v42 = vadd.f32 %v2936_v57, %v1595_v47  ;;  %v1646_v48 = vand.u32 2147483647, %v4958_v31  ;;  %v1590_v43 = vsel %vm4988_vm15, %v1589_v26, %v1585_v27  ;;  %v1640_v29 = vmul.f32 %v2940_v9, %v1639_v55 }
 0x210   :  { %v1536_v25 = vadd.f32 %v2938_v34, %v1535_v23  ;;  %v1525_v0 = vsel %vm1524_vm0, %v2934_v1, %v1521_v35  ;;  %vm5554_vm14 = vweird.f32 %v4952_v21  ;;  %v1655_v59 = vmul.f32 %v2942_v20, %v1654_v45 }
 0x211   :  { %vm1539_vm7 = vmor %vm5554_vm14, %vm1538_vm4  ;;  %v1600_v13 = vsel %vm1599_vm13, %v2936_v57, %v1596_v42  ;;  %v5039_v61 = vmul.f32 %v1590_v43, %v4877_v4  ;;  %v1530_v56 = vsel %vm5012_vm10, %v1529_v11, %v1525_v0  ;;  %v1641_v49 = vadd.f32 %v2940_v9, %v1640_v29 }
 0x212   :  { %v1540_v6 = vsel %vm1539_vm7, %v2938_v34, %v1536_v25  ;;  %v1605_v26 = vsel %vm5000_vm3, %v1604_v58, %v1600_v13  ;;  %vm5045_vm15 = vcmp.eq.f32.partialorder %v1646_v48, 8.507059e+37  ;;  %v1656_v57 = vadd.f32 %v2942_v20, %v1655_v59 }
 0x213   :  { %v1545_v21 = vsel %vm5006_vm5, %v4983_v33, %v1540_v6  ;;  %v5053_v4 = vmul.f32 %v1605_v26, %v4891_v53  ;;  %vm5557_vm8 = vweird.f32 %v4958_v31  ;;  %v1648_v58 = vand.u32 2147483648, %v4958_v31 }
 0x214   :  { %vm5058_vm0 = vmor %vm5557_vm8, %vm1643_vm11  ;;  %vm5560_vm9 = vweird.f32 %v4962_v52  ;;  %v5067_v22 = vmul.f32 %v1545_v21, %v4904_v12  ;;  %v5073_v33 = vmul.f32 %v4974_v60, %v4738_v50  ;;  %v5076_v63 = vmul.f32 %v1530_v56, %v4885_v15 }
 0x215   :  { %vm1659_vm6 = vmor %vm5560_vm9, %vm1658_vm12  ;;  %v1645_v53 = vsel %vm5058_vm0, %v2940_v9, %v1641_v49  ;;  %v1649_v14 = vor.u32 1.1754944e-38, %v1648_v58  ;;  %v1686_v31 = vrot.slane %v4976_v54, 2  ;;  %v1693_v52 = vrot.slane %v4966_v51, 2 }
 0x216   :  { %v1660_v37 = vsel %vm1659_vm6, %v2942_v20, %v1656_v57  ;;  %v1697_v9 = vadd.f32 %v5076_v63, %v5073_v33  ;;  %v1704_v50 = vadd.f32 %v5067_v22, %v4969_v19  ;;  %v1713_v15 = vadd.f32 %v1712_v28, %v4913_v62 }
 0x217   :  { %v1665_v12 = vsel %vm5019_vm1, %v4995_v18, %v1660_v37  ;;  %v1650_v20 = vsel %vm5045_vm15, %v1649_v14, %v1645_v53  ;;  %v1687_v30 = vadd.f32 %v1686_v31, %v4976_v54  ;;  %v1694_v18 = vadd.f32 %v1693_v52, %v4966_v51 }
 0x218   :  { %v5091_v60 = vmul.f32 %v1665_v12, %v4894_v17  ;;  %v5098_v7 = vmul.f32 %v1650_v20, %v4888_v16  ;;  %v1698_v11 = vrot.slane %v1697_v9, 4  ;;  %v1705_v8 = vrot.slane %v1704_v50, 4 }
 0x219   :  { %v1714_v40 = vrot.slane %v1713_v15, 2  ;;  %v1688_v62 = vrot.slane %v1687_v30, 1  ;;  %v1695_v28 = vrot.slane %v1694_v18, 1  ;;  %v1721_v17 = vrot.slane %v4925_v10, 2 }
 0x21a   :  { %v1732_v47 = vadd.f32 %v5091_v60, %v5053_v4  ;;  %v1699_v5 = vadd.f32 %v1698_v11, %v1697_v9  ;;  %v1706_v36 = vadd.f32 %v1705_v8, %v1704_v50  ;;  %v1725_v54 = vadd.f32 %v5098_v7, %v5039_v61 }
 0x21b   :  { %v1715_v23 = vadd.f32 %v1714_v40, %v1713_v15  ;;  %v1722_v16 = vadd.f32 %v1721_v17, %v4925_v10  ;;  %v1689_v45 = vadd.f32 %v1688_v62, %v1687_v30  ;;  %v1696_v43 = vadd.f32 %v1695_v28, %v1694_v18 }
 0x21c   :  { %v1733_v51 = vrot.slane %v1732_v47, 4  ;;  %v1700_v35 = vrot.slane %v1699_v5, 2  ;;  %v1707_v55 = vrot.slane %v1706_v36, 2  ;;  %v1726_v42 = vrot.slane %v1725_v54, 4 }
 0x21d   :  { %v1716_v27 = vrot.slane %v1715_v23, 1  ;;  %v1723_v48 = vrot.slane %v1722_v16, 1  ;;  %vm1747_vm1 = vcmask 1041409   ;;  %vm1820_vm2 = vcmp.lt.s32.totalorder %v3744_v32, 64 }
 0x21e   :  { %v1734_v25 = vadd.f32 %v1733_v51, %v1732_v47  ;;  %v1701_v0 = vadd.f32 %v1700_v35, %v1699_v5  ;;  %v1708_v29 = vadd.f32 %v1707_v55, %v1706_v36  ;;  %v1727_v13 = vadd.f32 %v1726_v42, %v1725_v54 }
 0x21f   :  { %v1717_v59 = vadd.f32 %v1716_v27, %v1715_v23  ;;  %v1724_v56 = vadd.f32 %v1723_v48, %v1722_v16  ;;  %vm5561_vm3 = vcmp.lt.s32.totalorder %v3744_v32, 96  ;;  %vm1869_vm4 = vcmask 254976  }
 0x220   :  { %v1735_v6 = vrot.slane %v1734_v25, 2  ;;  %v1702_v26 = vrot.slane %v1701_v0, 1  ;;  %v1709_v49 = vrot.slane %v1708_v29, 1  ;;  %v1728_v1 = vrot.slane %v1727_v13, 2 }
 0x221   :  { %v1749_v57 = vsel %vm1747_vm1, %v1724_v56, %v1696_v43  ;;  %v1748_v53 = vsel %vm1747_vm1, %v1717_v59, %v1689_v45  ;;  %vm2017_vm8 = vcmask 1040384   ;;  %vm2019_vm0 = vcmask 1042434  }
 0x222   :  { %v1736_v21 = vadd.f32 %v1735_v6, %v1734_v25  ;;  %v1729_v10 = vadd.f32 %v1728_v1, %v1727_v13  ;;  %v1710_v34 = vadd.f32 %v1709_v49, %v1708_v29  ;;  %v1703_v37 = vadd.f32 %v1702_v26, %v1701_v0 }
 0x223   :  { %v1755_v52 = vrot.slane %v1749_v57, 1  ;;  %v1754_v9 = vrot.slane %v1748_v53, 1  ;;  %vm2021_vm9 = vcmask 1041408   ;;  %vm2024_vm6 = vcmask 1043459  }
 0x224   :  { %v1737_v58 = vrot.slane %v1736_v21, 1  ;;  %v1730_v14 = vrot.slane %v1729_v10, 1  ;;  %v1767_v11 = vadd.f32 %v1749_v57, %v1710_v34  ;;  %v1766_v40 = vadd.f32 %v1748_v53, %v1703_v37 }
 0x226   :  { %v1738_v31 = vadd.f32 %v1737_v58, %v1736_v21  ;;  %v1731_v12 = vadd.f32 %v1730_v14, %v1729_v10 }
 0x228   :  { %v1771_v50 = vadd.f32 %v1755_v52, %v1738_v31  ;;  %v1751_v15 = vsel %vm1747_vm1, %v1738_v31, %v1710_v34  ;;  %v1770_v20 = vadd.f32 %v1754_v9, %v1731_v12  ;;  %v1750_v18 = vsel %vm1747_vm1, %v1731_v12, %v1703_v37 }
 0x229   :  { %v1753_v30 = vrot.slane %v1751_v15, 1  ;;  %v1752_v17 = vrot.slane %v1750_v18, 1  ;;  %v1765_v36 = vadd.f32 %v1751_v15, %v1696_v43  ;;  %v1764_v13 = vadd.f32 %v1750_v18, %v1689_v45 }
 0x22a   :  { %v1782_v8 = vrot.slane %v1771_v50, 7  ;;  %v1780_v47 = vrot.slane %v1770_v20, 7 }
 0x22b   :  { %v1769_v62 = vadd.f32 %v1753_v30, %v1724_v56  ;;  %v1768_v27 = vadd.f32 %v1752_v17, %v1717_v59 }
 0x22c   :  { %v1783_v28 = vsel %vm1747_vm1, %v1782_v8, %v1767_v11  ;;  %v1781_v23 = vsel %vm1747_vm1, %v1780_v47, %v1766_v40  ;;  %v1858_v8 = vld [vmem:[%s5171_s5] sm:$0x3] }
 0x22d   :  { %v1786_v5 = vrot.slane %v1783_v28, 1  ;;  %v1778_v54 = vrot.slane %v1769_v62, 7  ;;  %v1785_v51 = vrot.slane %v1781_v23, 1  ;;  %v1795_v48 = vadd.f32 %v1783_v28, %v1766_v40 }
 0x22e   :  { %v1794_v0 = vadd.f32 %v1781_v23, %v1765_v36  ;;  %v1861_v47 = vperm.slane %v1858_v8, 0 }
 0x22f   :  { %v1798_v16 = vadd.f32 %v1786_v5, %v1770_v20  ;;  %v1779_v35 = vsel %vm1747_vm1, %v1778_v54, %v1765_v36  ;;  %v1797_v55 = vadd.f32 %v1785_v51, %v1769_v62  ;;  %v1931_v62 = vperm.slane %v1858_v8, 1 }
 0x230   :  { %v1784_v42 = vrot.slane %v1779_v35, 1  ;;  %v1793_v26 = vadd.f32 %v1779_v35, %v1764_v13 }
 0x231   :  { %v1809_v25 = vrot.slane %v1798_v16, 7  ;;  %v1807_v29 = vrot.slane %v1797_v55, 7 }
 0x232   :  { %v1796_v56 = vadd.f32 %v1784_v42, %v1768_v27  ;;  %v2812_v42 = vld [vmem:[%s5172_s6 + $0x1] ss:$0 sm:$0xff] }
 0x233   :  { %v1810_v6 = vsel %vm1747_vm1, %v1809_v25, %v1795_v48  ;;  %v1808_v43 = vsel %vm1747_vm1, %v1807_v29, %v1794_v0  ;;  %v2813_v48 = vld [vmem:[%s5172_s6] ss:$0 sm:$0xff] }
 0x234   :  { %1818 = vrot.lane.b32.xlu1 %v1810_v6, %s3187_s15  ;;  %v1805_v49 = vrot.slane %v1796_v56, 7  ;;  %1816 = vrot.lane.b32.xlu0 %v1808_v43, %s3187_s15 }
 0x236   :  { %v1806_v1 = vsel %vm1747_vm1, %v1805_v49, %v1793_v26 }
 0x237   :  { %1814 = vrot.lane.b32.xlu2 %v1806_v1, %s3187_s15 }
 0x291   :  { %v1815_v21 = vpop.permute.xlu2 %1814 }
 0x2a6   :  { %v1819_v59 = vpop.permute.xlu1 %1818  ;;  %v1817_v45 = vpop.permute.xlu0 %1816 }
 0x2a7   :  { %v1821_v10 = vsel %vm1820_vm2, %v1817_v45, %v1819_v59  ;;  %v1822_v57 = vsel %vm1820_vm2, %v1815_v21, %v1817_v45  ;;  %vm2026_vm2 = vcmask 1042433  }
 0x2a8   :  { %v1825_v34 = vrot.slane %v1822_v57, 1  ;;  %v1826_v58 = vrot.slane %v1821_v10, 1  ;;  %v1831_v14 = vadd.f32 %v1822_v57, %v1793_v26  ;;  %v1832_v31 = vadd.f32 %v1821_v10, %v1794_v0 }
 0x2aa   :  { %v1833_v53 = vadd.f32 %v1825_v34, %v1796_v56  ;;  %v1834_v37 = vadd.f32 %v1826_v58, %v1797_v55  ;;  %v3190_v56 = vmov 0  }
 0x2ab   :  { %2807 = vset.pattern.permute.xlu0 %v3190_v56 }
 0x2ac   :  { %v1841_v52 = vrot.slane %v1834_v37, 7  ;;  %v1839_v12 = vrot.slane %v1833_v53, 7 }
 0x2ae   :  { %v1840_v9 = vsel %vm1747_vm1, %v1839_v12, %v1831_v14  ;;  %v1842_v50 = vsel %vm1747_vm1, %v1841_v52, %v1832_v31 }
 0x2af   :  { %1845 = vrot.lane.b32.xlu2 %v1840_v9, %s3189_s4  ;;  %1847 = vrot.lane.b32.xlu0 %v1842_v50, %s3189_s4 }
 0x309   :  { %v1846_v15 = vpop.permute.xlu2 %1845 }
 0x321   :  { %v1848_v20 = vpop.permute.xlu0 %1847 }
 0x322   :  { %v1849_v30 = vsel %vm5561_vm3, %v1846_v15, %v1848_v20 }
 0x323   :  { %v1851_v18 = vrot.slane %v1849_v30, 1  ;;  %v1854_v11 = vadd.f32 %v1849_v30, %v1831_v14 }
 0x325   :  { %v1855_v40 = vadd.f32 %v1851_v18, %v1833_v53  ;;  %v1856_v28 = vmul.f32 0.00390625, %v1854_v11 }
 0x327   :  { %v1857_v17 = vmul.f32 0.00390625, %v1855_v40  ;;  %v1862_v23 = vmul.f32 %v1861_v47, %v1856_v28  ;;  %v1932_v54 = vmul.f32 %v1931_v62, %v1856_v28  ;;  %v2764_v28 = vld [vmem:[#allocation13 + $0x38] sm:$0xff] }
 0x328   :  { %2329 = vmatpush.bf16.msrb.mxu0 %v2764_v28 }
 0x329   :  { %v1933_v5 = vmul.f32 %v1931_v62, %v1857_v17  ;;  %v1863_v36 = vmul.f32 %v1861_v47, %v1857_v17  ;;  %v2780_v62 = vld [vmem:[#allocation13 + $0xb8] sm:$0xff] }
 0x32a   :  { %v2772_v17 = vld [vmem:[#allocation13 + $0x78] sm:$0xff]  ;;  %2367 = vmatpush.bf16.msrb.mxu2 %v2780_v62 }
 0x32b   :  { %v1936_v51 = vrot.slane %v1933_v5, 7  ;;  %v1866_v16 = vrot.slane %v1863_v36, 7  ;;  %v2788_v5 = vld [vmem:[#allocation13 + $0xf8] sm:$0xff]  ;;  %2348 = vmatpush.bf16.msrb.mxu1 %v2772_v17 }
 0x32c   :  { %v1859_v36 = vld [vmem:[#allocation11] sm:$0xff]  ;;  %2386 = vmatpush.bf16.msrb.mxu3 %v2788_v5 }
 0x32d   :  { %v1937_v32 = vsel %vm1747_vm1, %v1936_v51, %v1932_v54  ;;  %v1867_v35 = vsel %vm1747_vm1, %v1866_v16, %v1862_v23  ;;  %v2779_v23 = vld [vmem:[#allocation13 + $0xb0] sm:$0xff]  ;;  %v1902_v16 = vperm.slane %v1859_v36, 0 }
 0x32e   :  { %v1939_v55 = vsel %vm1869_vm4, %v1937_v32, 0.0  ;;  %v1870_v27 = vsel %vm1869_vm4, %v1867_v35, 0.0  ;;  %v2763_v54 = vld [vmem:[#allocation13 + $0x30] sm:$0xff]  ;;  %v1903_v35 = vperm.slane %v1859_v36, 2  ;;  %2368 = vmatpush.bf16.msrb.mxu2 %v2779_v23 }
 0x32f   :  { %1940 = vadd.xlane.f32.xlu2 %v1939_v55  ;;  %1871 = vadd.xlane.f32.xlu1 %v1870_v27  ;;  %v2771_v51 = vld [vmem:[#allocation13 + $0x70] sm:$0xff]  ;;  %v1904_v55 = vperm.slane %v1859_v36, 4  ;;  %v1905_v27 = vperm.slane %v1859_v36, 6 }
 0x330   :  { %v2787_v32 = vld [vmem:[#allocation13 + $0xf0] sm:$0xff]  ;;  %2330 = vmatpush.bf16.msrb.mxu0 %v2763_v54  ;;  %2349 = vmatpush.bf16.msrb.mxu1 %v2771_v51 }
 0x331   :  { %2387 = vmatpush.bf16.msrb.mxu3 %v2787_v32  ;;  %v1912_v56 = vperm.slane %v1904_v55, 0  ;;  %v2759_v23 = vld [vmem:[#allocation13 + $0x10] sm:$0xff] }
 0x332   :  { %v2783_v55 = vld [vmem:[#allocation13 + $0xd0] sm:$0xff] }
 0x3a2   :  { %v1941_v25 = vpop.xlane.xlu2 %1940  ;;  %v1872_v0 = vpop.xlane.xlu1 %1871 }
 0x3a3   :  { %v1944_v29 = vadd.f32 %v2812_v42, %v1941_v25  ;;  %v1875_v13 = vadd.f32 %v2813_v48, %v1872_v0  ;;  %v2778_v42 = vld [vmem:[#allocation13 + $0xa8] sm:$0xff]  ;;  %v1910_v0 = vperm.slane %v1902_v16, 0 }
 0x3a4   :  { %v2762_v48 = vld [vmem:[#allocation13 + $0x28] sm:$0xff]  ;;  %2369 = vmatpush.bf16.msrb.mxu2 %v2778_v42 }
 0x3a5   :  { %v2596_v6 = vmul.f32 -1.442695, %v1944_v29  ;;  %v2595_v43 = vmul.f32 -1.442695, %v1875_v13  ;;  %v2770_v25 = vld [vmem:[#allocation13 + $0x68] sm:$0xff]  ;;  %2331 = vmatpush.bf16.msrb.mxu0 %v2762_v48 }
 0x3a6   :  { %2350 = vmatpush.bf16.msrb.mxu1 %v2770_v25 }
 0x3a7   :  { %2943 = vpow2.f32 %v2596_v6  ;;  %v1913_v6 = vperm.slane %v1905_v27, 0 }
 0x3a8   :  { %2945 = vpow2.f32 %v2595_v43 }
 0x3ad   :  { %v2944_v26 = vpop.eup %2943 }
 0x3ae   :  { %v2946_v49 = vpop.eup %2945  ;;  %v1948_v1 = vadd.f32 1.0, %v2944_v26  ;;  %v1860_v26 = vld [vmem:[%s5174_s8] sm:$0xf] }
 0x3af   :  { %v1879_v59 = vadd.f32 1.0, %v2946_v49  ;;  %v1970_v49 = vperm.slane %v1859_v36, 1 }
 0x3b0   :  { %2947 = vrcp.f32 %v1948_v1  ;;  %v1960_v15 = vand.u32 2147483648, %v1948_v1  ;;  %vm1954_vm14 = vweird.f32 %v1948_v1  ;;  %v1958_v30 = vand.u32 2147483647, %v1948_v1 }
 0x3b1   :  { %2949 = vrcp.f32 %v1879_v59  ;;  %v1891_v53 = vand.u32 2147483648, %v1879_v59  ;;  %v1889_v31 = vand.u32 2147483647, %v1879_v59  ;;  %vm1885_vm10 = vweird.f32 %v1879_v59 }
 0x3b2   :  { %v1961_v8 = vor.u32 1.1754944e-38, %v1960_v15  ;;  %vm1959_vm15 = vcmp.eq.f32.partialorder %v1958_v30, 8.507059e+37 }
 0x3b3   :  { %v1892_v12 = vor.u32 1.1754944e-38, %v1891_v53  ;;  %vm1890_vm13 = vcmp.eq.f32.partialorder %v1889_v31, 8.507059e+37  ;;  %v1920_v53 = vperm.slane %v1860_v26, 1 }
 0x3b6   :  { %v2948_v21 = vpop.eup %2947 }
 0x3b7   :  { %v2950_v45 = vpop.eup %2949  ;;  %v1950_v10 = vmul.f32 %v2948_v21, %v1948_v1  ;;  %vm1955_vm12 = vweird.f32 %v2948_v21  ;;  %v1971_v1 = vperm.slane %v1859_v36, 3 }
 0x3b8   :  { %v1881_v57 = vmul.f32 %v2950_v45, %v1879_v59  ;;  %vm1886_vm5 = vweird.f32 %v2950_v45  ;;  %vm1956_vm7 = vmor %vm1954_vm14, %vm1955_vm12  ;;  %v1972_v59 = vperm.slane %v1859_v36, 5 }
 0x3b9   :  { %v1951_v34 = vsub.f32 1.0, %v1950_v10  ;;  %vm1887_vm11 = vmor %vm1885_vm10, %vm1886_vm5  ;;  %v2761_v10 = vld [vmem:[#allocation13 + $0x20] sm:$0xff]  ;;  %v1979_v15 = vperm.slane %v1971_v1, 1 }
 0x3ba   :  { %v1882_v58 = vsub.f32 1.0, %v1881_v57  ;;  %v2769_v57 = vld [vmem:[#allocation13 + $0x60] sm:$0xff]  ;;  %2332 = vmatpush.bf16.msrb.mxu0 %v2761_v10 }
 0x3bb   :  { %v1952_v37 = vmul.f32 %v2948_v21, %v1951_v34  ;;  %2351 = vmatpush.bf16.msrb.mxu1 %v2769_v57  ;;  %v2773_v10 = vld [vmem:[#allocation13 + $0x80] sm:$0xff] }
 0x3bc   :  { %v1883_v14 = vmul.f32 %v2950_v45, %v1882_v58  ;;  %v1919_v58 = vperm.slane %v1860_v26, 0  ;;  %v2757_v57 = vld [vmem:[#allocation13] sm:$0xff] }
 0x3bd   :  { %v1953_v9 = vadd.f32 %v2948_v21, %v1952_v37  ;;  %v1921_v37 = vperm.slane %v1860_v26, 2 }
 0x3be   :  { %v1884_v52 = vadd.f32 %v2950_v45, %v1883_v14  ;;  %v2785_v14 = vld [vmem:[#allocation13 + $0xe0] sm:$0xff] }
 0x3bf   :  { %v1957_v11 = vsel %vm1956_vm7, %v2948_v21, %v1953_v9  ;;  %v1973_v21 = vperm.slane %v1859_v36, 7  ;;  %v1922_v9 = vperm.slane %v1860_v26, 3  ;;  %v2775_v36 = vld [vmem:[#allocation13 + $0x90] sm:$0xff]  ;;  %v2766_v26 = vld [vmem:[#allocation13 + $0x48] sm:$0xff] }
 0x3c0   :  { %v1888_v50 = vsel %vm1887_vm11, %v2950_v45, %v1884_v52  ;;  %v1962_v40 = vsel %vm1959_vm15, %v1961_v8, %v1957_v11  ;;  %v2777_v45 = vld [vmem:[#allocation13 + $0xa0] sm:$0xff]  ;;  %v2760_v11 = vld [vmem:[#allocation13 + $0x18] sm:$0xff] }
 0x3c1   :  { %v1893_v20 = vsel %vm1890_vm13, %v1892_v12, %v1888_v50  ;;  %v1964_v47 = vmul.f32 %v1962_v40, %v1944_v29  ;;  %v2786_v29 = vld [vmem:[#allocation13 + $0xe8] sm:$0xff]  ;;  %2370 = vmatpush.bf16.msrb.mxu2 %v2777_v45  ;;  %v1978_v50 = vperm.slane %v1970_v49, 1  ;;  %v1981_v30 = vperm.slane %v1973_v21, 1  ;;  %v2768_v8 = vld [vmem:[#allocation13 + $0x58] sm:$0xff]  ;;  %2333 = vmatpush.bf16.msrb.mxu0 %v2760_v11 }
 0x3c2   :  { %v1895_v18 = vmul.f32 %v1893_v20, %v1875_v13  ;;  %v1911_v13 = vperm.slane %v1903_v35, 0  ;;  %2388 = vmatpush.bf16.msrb.mxu3 %v2786_v29  ;;  %v1980_v20 = vperm.slane %v1972_v59, 1  ;;  %2352 = vmatpush.bf16.msrb.mxu1 %v2768_v8  ;;  %v2767_v35 = vld [vmem:[#allocation13 + $0x50] sm:$0xff]  ;;  %v2758_v29 = vld [vmem:[#allocation13 + $0x8] sm:$0xff] }
 0x3c3   :  { %v2782_v49 = vld [vmem:[#allocation13 + $0xc8] sm:$0xff] }
 0x3c4   :  { %1898 = vperm.xlu0 %2807, %v1895_v18   ;;  %v2776_v18 = vld [vmem:[#allocation13 + $0x98] sm:$0xff] }
 0x3c5   :  { %2371 = vmatpush.bf16.msrb.mxu2 %v2776_v18  ;;  %2334 = vmatpush.bf16.msrb.mxu0 %v2759_v23 }
 0x3c6   :  { %2389 = vmatpush.bf16.msrb.mxu3 %v2785_v14  ;;  %2353 = vmatpush.bf16.msrb.mxu1 %v2767_v35 }
 0x3c9   :  { %2372 = vmatpush.bf16.msrb.mxu2 %v2775_v36  ;;  %2335 = vmatpush.bf16.msrb.mxu0 %v2758_v29 }
 0x3ca   :  { %2354 = vmatpush.bf16.msrb.mxu1 %v2766_v26 }
 0x3cc   :  { %1967 = vperm.xlu0 %2807, %v1964_v47   ;;  %v2784_v47 = vld [vmem:[#allocation13 + $0xd8] sm:$0xff] }
 0x3cd   :  { %2390 = vmatpush.bf16.msrb.mxu3 %v2784_v47  ;;  %2336 = vmatpush.bf16.msrb.mxu0 %v2757_v57 }
 0x3d1   :  { %2391 = vmatpush.bf16.msrb.mxu3 %v2783_v55 }
 0x3d5   :  { %2392 = vmatpush.bf16.msrb.mxu3 %v2782_v49 }
 0x436   :  { %v1899_v43 = vpop.permute.xlu0 %1898 }
 0x437   :  { %v1914_v34 = vmul.f32 %v1910_v0, %v1899_v43  ;;  %v1915_v31 = vmul.f32 %v1911_v13, %v1899_v43  ;;  %v1916_v52 = vmul.f32 %v1912_v56, %v1899_v43  ;;  %v1917_v12 = vmul.f32 %v1913_v6, %v1899_v43  ;;  %v2774_v0 = vld [vmem:[#allocation13 + $0x88] sm:$0xff] }
 0x438   :  { %2373 = vmatpush.bf16.msrb.mxu2 %v2774_v0 }
 0x439   :  { %v1927_v40 = vadd.f32 %v1919_v58, %v1914_v34  ;;  %v1928_v62 = vadd.f32 %v1920_v53, %v1915_v31  ;;  %v1929_v28 = vadd.f32 %v1921_v37, %v1916_v52  ;;  %v1930_v17 = vadd.f32 %v1922_v9, %v1917_v12  ;;  %v2765_v34 = vld [vmem:[#allocation13 + $0x40] sm:$0xff] }
 0x43a   :  { %v2781_v58 = vld [vmem:[#allocation13 + $0xc0] sm:$0xff]  ;;  %2355 = vmatpush.bf16.msrb.mxu1 %v2765_v34 }
 0x43b   :  { %2393 = vmatpush.bf16.msrb.mxu3 %v2781_v58 }
 0x43c   :  { %2374 = vmatpush.bf16.msrb.mxu2 %v2773_v10 }
 0x43e   :  { %v1968_v5 = vpop.permute.xlu0 %1967 }
 0x43f   :  { %v1982_v54 = vmul.f32 %v1978_v50, %v1968_v5  ;;  %v1983_v51 = vmul.f32 %v1979_v15, %v1968_v5  ;;  %v1984_v16 = vmul.f32 %v1980_v20, %v1968_v5  ;;  %v1985_v32 = vmul.f32 %v1981_v30, %v1968_v5 }
 0x441   :  { %v1986_v27 = vadd.f32 %v1982_v54, %v1927_v40  ;;  %v1987_v42 = vadd.f32 %v1983_v51, %v1928_v62  ;;  %v1988_v48 = vadd.f32 %v1984_v16, %v1929_v28  ;;  %v1989_v25 = vadd.f32 %v1985_v32, %v1930_v17 }
 0x443   :  { %v1990_v13 = vsub.f32 0.0, %v1986_v27  ;;  %v1991_v56 = vsub.f32 0.0, %v1987_v42  ;;  %v1992_v6 = vsub.f32 0.0, %v1988_v48  ;;  %v1993_v43 = vsub.f32 0.0, %v1989_v25 }
 0x445   :  { %v1994_v1 = vmul.f32 1.442695, %v1990_v13  ;;  %v1996_v59 = vmul.f32 1.442695, %v1991_v56  ;;  %v1998_v21 = vmul.f32 1.442695, %v1992_v6 }
 0x446   :  { %v2000_v45 = vmul.f32 1.442695, %v1993_v43 }
 0x447   :  { %2951 = vpow2.f32 %v1994_v1 }
 0x448   :  { %2953 = vpow2.f32 %v1996_v59 }
 0x449   :  { %2955 = vpow2.f32 %v1998_v21 }
 0x44a   :  { %2957 = vpow2.f32 %v2000_v45 }
 0x44d   :  { %v2952_v53 = vpop.eup %2951 }
 0x44e   :  { %v2954_v37 = vpop.eup %2953  ;;  %v2002_v14 = vadd.f32 1.0, %v2952_v53 }
 0x44f   :  { %v2956_v31 = vpop.eup %2955  ;;  %v2003_v52 = vadd.f32 1.0, %v2954_v37 }
 0x450   :  { %v2958_v12 = vpop.eup %2957  ;;  %v2004_v9 = vadd.f32 1.0, %v2956_v31  ;;  %2959 = vrcp.f32 %v2002_v14  ;;  %v2968_v14 = vld [vmem:[#allocation2] sm:$0xff] }
 0x451   :  { %v2005_v50 = vadd.f32 1.0, %v2958_v12  ;;  %2961 = vrcp.f32 %v2003_v52 }
 0x452   :  { %2963 = vrcp.f32 %v2004_v9 }
 0x453   :  { %2965 = vrcp.f32 %v2005_v50 }
 0x456   :  { %v2960_v15 = vpop.eup %2959 }
 0x457   :  { %v2962_v20 = vpop.eup %2961 }
 0x458   :  { %v2964_v30 = vpop.eup %2963  ;;  %v2014_v18 = vrot.slane %v2962_v20, 7 }
 0x459   :  { %v2966_v11 = vpop.eup %2965  ;;  %v2015_v8 = vrot.slane %v2964_v30, 6 }
 0x45a   :  { %v2016_v40 = vrot.slane %v2966_v11, 5  ;;  %v2018_v47 = vsel %vm2017_vm8, %v2960_v15, %v2014_v18  ;;  %v2023_v54 = vsel %vm1747_vm1, %v2960_v15, %v2014_v18  ;;  %v2969_v11 = vld [vmem:[#allocation2 + $0x8] sm:$0xff] }
 0x45c   :  { %v2020_v62 = vsel %vm2019_vm0, %v2015_v8, %v2016_v40  ;;  %v2025_v51 = vsel %vm2024_vm6, %v2015_v8, %v2016_v40 }
 0x45d   :  { %v2022_v28 = vsel %vm2021_vm9, %v2018_v47, %v2020_v62  ;;  %v2027_v6 = vsel %vm2026_vm2, %v2023_v54, %v2025_v51 }
 0x45e   :  { %v2029_v17 = vperm.slane %v2022_v28, 0  ;;  %v2030_v5 = vperm.slane %v2022_v28, 1  ;;  %v2031_v36 = vperm.slane %v2022_v28, 2  ;;  %v2032_v23 = vperm.slane %v2022_v28, 3 }
 0x460   :  { %v2045_v16 = vmul.f32 %v2029_v17, %v4731_v39  ;;  %v2049_v32 = vmul.f32 %v2029_v17, %v4581_v24  ;;  %v2046_v35 = vmul.f32 %v2030_v5, %v4900_v46  ;;  %v2050_v55 = vmul.f32 %v2030_v5, %v4569_v41 }
 0x461   :  { %v2047_v27 = vmul.f32 %v2031_v36, %v5073_v33  ;;  %v2051_v42 = vmul.f32 %v2031_v36, %v5076_v63  ;;  %v2048_v48 = vmul.f32 %v2032_v23, %v4969_v19  ;;  %v2052_v25 = vmul.f32 %v2032_v23, %v5067_v22  ;;  %v2970_v23 = vld [vmem:[#allocation2 + $0x10] sm:$0xff] }
 0x462   :  { %v2061_v0 = vpack.c.bf16 %v2049_v32, %v2045_v16  ;;  %v2062_v29 = vpack.c.bf16 %v2050_v55, %v2046_v35  ;;  %v2028_v24 = vrot.slane %v2027_v6, 1 }
 0x463   :  { %v2063_v13 = vpack.c.bf16 %v2051_v42, %v2047_v27  ;;  %v2064_v56 = vpack.c.bf16 %v2052_v25, %v2048_v48  ;;  %v2971_v42 = vld [vmem:[#allocation2 + $0x18] sm:$0xff] }
 0x464   :  { %2337 = vmatmul.bf16.vlgmr.msrb.gmra.mxu0 %v2061_v0  ;;  %2356 = vmatmul.bf16.vlgmr.msrb.gmra.mxu1 %v2062_v29  ;;  %v2033_v39 = vperm.slane %v2028_v24, 0  ;;  %v2034_v41 = vperm.slane %v2028_v24, 1  ;;  %v2035_v46 = vperm.slane %v2028_v24, 2  ;;  %v2036_v33 = vperm.slane %v2028_v24, 3 }
 0x465   :  { %2375 = vmatmul.bf16.vlgmr.msrb.gmra.mxu2 %v2063_v13  ;;  %2394 = vmatmul.bf16.vlgmr.msrb.gmra.mxu3 %v2064_v56 }
 0x466   :  { %v2053_v63 = vmul.f32 %v2033_v39, %v4726_v2  ;;  %v2057_v19 = vmul.f32 %v2033_v39, %v4837_v44  ;;  %v2054_v22 = vmul.f32 %v2034_v41, %v4861_v3  ;;  %v2058_v43 = vmul.f32 %v2034_v41, %v4847_v38  ;;  %v2814_v2 = vld [vmem:[%s5176_s10] ss:$0 sm:$0xff]  ;;  %s3191_s10 = smov [#allocation14]  }
 0x467   :  { %v2055_v26 = vmul.f32 %v2035_v46, %v5039_v61  ;;  %v2059_v49 = vmul.f32 %v2035_v46, %v5098_v7  ;;  %v2056_v1 = vmul.f32 %v2036_v33, %v5053_v4  ;;  %v2060_v59 = vmul.f32 %v2036_v33, %v5091_v60  ;;  %s2417_s22 = sshll.u32 %s3191_s10, 4  ;;  %s2418_s22 = int_to_ptr.vmem [resolvable:$true] %s2417_s22 }
 0x468   :  { %v2065_v21 = vpack.c.bf16 %v2057_v19, %v2053_v63  ;;  %v2066_v45 = vpack.c.bf16 %v2058_v43, %v2054_v22 }
 0x469   :  { %v2067_v10 = vpack.c.bf16 %v2059_v49, %v2055_v26  ;;  %v2068_v57 = vpack.c.bf16 %v2060_v59, %v2056_v1 }
 0x474   :  { %2342 = vmatmul.bf16.gmra.mxu0 %v2065_v21  ;;  %2361 = vmatmul.bf16.gmra.mxu1 %v2066_v45 }
 0x475   :  { %2380 = vmatmul.bf16.gmra.mxu2 %v2067_v10  ;;  %2399 = vmatmul.bf16.gmra.mxu3 %v2068_v57 }
 0x4e1   :  { %v2338_v44 = vpop.f32.mrf.mxu0  ;;  %v2357_v38 = vpop.f32.mrf.mxu1 }
 0x4e2   :  { %v2339_v3 = vadd.f32 %v2814_v2, %v2338_v44 }
 0x4e4   :  { %v2358_v61 = vadd.f32 %v2357_v38, %v2339_v3 }
 0x4e8   :  { %v2376_v7 = vpop.f32.mrf.mxu2  ;;  %v2395_v4 = vpop.f32.mrf.mxu3 }
 0x4e9   :  { %v2377_v34 = vadd.f32 %v2376_v7, %v2358_v61  ;;  %v2340_v60 = vpop.f32.mrf.mxu0  ;;  %v2359_v58 = vpop.f32.mrf.mxu1 }
 0x4ea   :  { %v2341_v37 = vadd.f32 %v2814_v2, %v2340_v60 }
 0x4eb   :  { %v2396_v53 = vadd.f32 %v2395_v4, %v2377_v34 }
 0x4ec   :  { %v2360_v52 = vadd.f32 %v2359_v58, %v2341_v37 }
 0x4ed   :  { %v2405_v31 = vadd.f32 %v2968_v14, %v2396_v53 }
 0x4ef   :  { %2409 = vst [vmem:[#allocation14] sm:$0xff] %v2405_v31 }
 0x4f0   :  { %v2378_v12 = vpop.f32.mrf.mxu2  ;;  %v2397_v9 = vpop.f32.mrf.mxu3 }
 0x4f1   :  { %v2379_v50 = vadd.f32 %v2378_v12, %v2360_v52  ;;  %v2343_v15 = vpop.f32.mrf.mxu0  ;;  %v2362_v18 = vpop.f32.mrf.mxu1 }
 0x4f2   :  { %v2344_v30 = vadd.f32 %v2814_v2, %v2343_v15 }
 0x4f3   :  { %v2398_v20 = vadd.f32 %v2397_v9, %v2379_v50 }
 0x4f4   :  { %v2363_v40 = vadd.f32 %v2362_v18, %v2344_v30 }
 0x4f5   :  { %v2406_v8 = vadd.f32 %v2969_v11, %v2398_v20 }
 0x4f7   :  { %2410 = vst [vmem:[#allocation14 + $0x8] sm:$0xff] %v2406_v8 }
 0x4f8   :  { %v2381_v47 = vpop.f32.mrf.mxu2  ;;  %v2400_v62 = vpop.f32.mrf.mxu3 }
 0x4f9   :  { %v2382_v28 = vadd.f32 %v2381_v47, %v2363_v40  ;;  %v2345_v17 = vpop.f32.mrf.mxu0  ;;  %v2364_v51 = vpop.f32.mrf.mxu1 }
 0x4fa   :  { %v2346_v36 = vadd.f32 %v2814_v2, %v2345_v17 }
 0x4fb   :  { %v2401_v5 = vadd.f32 %v2400_v62, %v2382_v28 }
 0x4fc   :  { %v2365_v16 = vadd.f32 %v2364_v51, %v2346_v36 }
 0x4fd   :  { %v2407_v54 = vadd.f32 %v2970_v23, %v2401_v5 }
 0x4ff   :  { %2411 = vst [vmem:[#allocation14 + $0x10] sm:$0xff] %v2407_v54 }
 0x500   :  { %v2383_v32 = vpop.f32.mrf.mxu2  ;;  %v2402_v55 = vpop.f32.mrf.mxu3 }
 0x501   :  { %v2384_v35 = vadd.f32 %v2383_v32, %v2365_v16 }
 0x503   :  { %v2403_v27 = vadd.f32 %v2402_v55, %v2384_v35 }
 0x505   :  { %v2408_v48 = vadd.f32 %v2971_v42, %v2403_v27 }
 0x507   :  { %2412 = vst [vmem:[#allocation14 + $0x18] sm:$0xff] %v2408_v48 }
 0x508   :  { %2425 = dma.vmem_to_hbm [thread:$0]  %s2418_s22, 512, %s2420_s25, [#allocation4], %s3182_s20, %s3182_s20, %s3183_s21  }
 0x509   :  { %3172 = dma.done.wait [#allocation4], 512  }
 0x50a   :  { %3173 = vsyncadd [#allocation4], 4294966784 }
 0x50b   :  { %2430 = vsyncpa [#allocation3], 1 }
 0x50c   :  { %2431 = vsyncpa [#allocation6], 1 }
 0x50d   :  { %2432 = vsyncpa [#allocation9], 1 }
 0x50e   :  { %2433 = vsyncpa [#allocation12], 1 }
 0x50f   :  { %2434 = vsyncpa [#allocation4], 1 }

</bundles_post_ra>
